<compile_context>
chip_gen: v7x
topology: tpu7x:2x2x1
jax: 0.10.0
libtpu: 0.0.40
codegen_flags: <defaults>
</compile_context>

<pallas_src>
import jax
import jax.numpy as jnp
from jax.experimental import pallas as pl
from jax.experimental.pallas import tpu as pltpu

EPS = 1e-6


def _rmsnorm(v, g):
    # matches torch: x * g / sqrt(mean(x**2, -1, keepdim) + eps), via rsqrt (EUP)
    ms = jnp.mean(v * v, axis=-1, keepdims=True)
    return v * (g * jax.lax.rsqrt(ms + EPS))


def mtp_kernel(h_ref, x_ref,
               g_norm_ref, w_lin_h_ref, w_lin_x_ref, b_lin_ref,
               g_attn_ref, wqkv_ref, wo_ref,
               g_moe_ref, w13_ref, w2_ref,
               o_ref,
               y_scr, nrm_scr, acc_scr):
    f = pl.program_id(1)
    n_f = pl.num_programs(1)
    blk_b, S, H = h_ref.shape
    M = blk_b * S
    bf16 = jnp.bfloat16

    # ---------------- f == 0: MTP linear + attention branch ----------------
    @pl.when(f == 0)
    def _prologue():
        h = h_ref[...].reshape(M, H)
        x = x_ref[...].reshape(M, H)

        # MTP: norm, concat, linear (concat folded into split matmul, bf16 MXU)
        xn = _rmsnorm(x, g_norm_ref[...])
        y = (jnp.dot(h.astype(bf16), w_lin_h_ref[...],
                     preferred_element_type=jnp.float32)
             + jnp.dot(xn.astype(bf16), w_lin_x_ref[...],
                       preferred_element_type=jnp.float32)
             + b_lin_ref[...])

        # Block: y = y + attn(attn_norm(y))
        # TODO(synk): MLA internals not provided; causal single-head SDPA sub.
        a_in = _rmsnorm(y, g_attn_ref[...]).astype(bf16)
        qkv = jnp.dot(a_in, wqkv_ref[...], preferred_element_type=jnp.float32)
        q = qkv[:, :H].reshape(blk_b, S, H)          # 1/sqrt(H) folded into wq
        k = qkv[:, H:2 * H].reshape(blk_b, S, H)
        v = qkv[:, 2 * H:].reshape(blk_b, S, H)

        # scores: contract last dims directly (no k.T relayout), batched over b
        s = jax.lax.dot_general(q, k, (((2,), (2,)), ((0,), (0,))),
                                preferred_element_type=jnp.float32)
        # TODO(synk): at production S switch to flash-style KV tiling; S is tiny.
        row = jax.lax.broadcasted_iota(jnp.int32, (S, S), 0)
        col = jax.lax.broadcasted_iota(jnp.int32, (S, S), 1)
        s = jnp.where((col <= row)[None, :, :], s, -jnp.inf)
        s = s - jnp.max(s, axis=-1, keepdims=True)
        p = jnp.exp(s)
        p = p * pl.reciprocal(jnp.sum(p, axis=-1, keepdims=True), approx=True)
        ctx = jax.lax.dot_general(p, v, (((2,), (1,)), ((0,), (0,))),
                                  preferred_element_type=jnp.float32)
        y = y + jnp.dot(ctx.reshape(M, H).astype(bf16), wo_ref[...],
                        preferred_element_type=jnp.float32)

        y_scr[...] = y
        nrm_scr[...] = _rmsnorm(y, g_moe_ref[...])
        acc_scr[...] = jnp.zeros_like(acc_scr)

    # --------- every f: one streamed [gate|up] / down tile of the FFN --------
    # TODO(synk): MoE internals not provided; single dense SwiGLU expert sub.
    ft = w2_ref.shape[0]
    m_in = nrm_scr[...].astype(bf16)
    gu = jnp.dot(m_in, w13_ref[...], preferred_element_type=jnp.float32)
    act = (jax.nn.silu(gu[:, :ft]) * gu[:, ft:]).astype(bf16)
    acc_scr[...] += jnp.dot(act, w2_ref[...], preferred_element_type=jnp.float32)

    # ---------------- last f: residual add + write out ----------------
    @pl.when(f == n_f - 1)
    def _epilogue():
        o_ref[...] = (y_scr[...] + acc_scr[...]).reshape(
            blk_b, S, H).astype(o_ref.dtype)


def _mtp_call(h, x, kp, block_b, f_tile, weight_bufs):
    B, S, H = x.shape
    F = kp["w2"].shape[0]
    nb, nf = B // block_b, F // f_tile
    M = block_b * S

    def const_spec(shape):
        n = len(shape)
        kwargs = {}
        if weight_bufs is not None:
            # Constant index map across the whole grid -> fetched once; request
            # a single buffer to halve the weight VMEM footprint.
            kwargs["pipeline_mode"] = pl.Buffered(weight_bufs)
        return pl.BlockSpec(shape, lambda b, f, _n=n: (0,) * _n, **kwargs)

    grid_spec = pltpu.PrefetchScalarGridSpec(
        num_scalar_prefetch=0,
        grid=(nb, nf),
        in_specs=[
            pl.BlockSpec((block_b, S, H), lambda b, f: (b, 0, 0)),   # h
            pl.BlockSpec((block_b, S, H), lambda b, f: (b, 0, 0)),   # x
            const_spec((1, H)),                   # g_norm
            const_spec((H, H)),                   # w_lin (h half)
            const_spec((H, H)),                   # w_lin (x half)
            const_spec((1, H)),                   # b_lin
            const_spec((1, H)),                   # g_attn
            const_spec((H, 3 * H)),               # wqkv (fused, q pre-scaled)
            const_spec((H, H)),                   # wo
            const_spec((1, H)),                   # g_moe
            pl.BlockSpec((H, 2 * f_tile), lambda b, f: (0, f)),  # w13 streamed
            pl.BlockSpec((f_tile, H), lambda b, f: (f, 0)),      # w2  streamed
        ],
        out_specs=pl.BlockSpec((block_b, S, H), lambda b, f: (b, 0, 0)),
        scratch_shapes=[
            pltpu.VMEM((M, H), jnp.float32),   # y residual (carried over f)
            pltpu.VMEM((M, H), jnp.float32),   # moe_norm(y) (carried over f)
            pltpu.VMEM((M, H), jnp.float32),   # FFN accumulator
        ],
    )
    return pl.pallas_call(
        mtp_kernel,
        out_shape=jax.ShapeDtypeStruct((B, S, H), jnp.float32),
        grid_spec=grid_spec,
        compiler_params=pltpu.CompilerParams(
            dimension_semantics=("parallel", "arbitrary"),
            vmem_limit_bytes=48 * 1024 * 1024),
    )(h, x,
      kp["g_norm"], kp["w_lin_h"], kp["w_lin_x"], kp["b_lin"],
      kp["g_attn"], kp["wqkv"], kp["wo"],
      kp["g_moe"], kp["w13"], kp["w2"])


def mtp_forward(h, x, kp, *, block_b=None):
    B, S, H = x.shape
    F = kp["w2"].shape[0]
    f_tile = kp["f_tile"]
    if block_b is None:
        block_b = B
    assert B % block_b == 0 and F % f_tile == 0
    try:
        return _mtp_call(h, x, kp, block_b, f_tile, weight_bufs=1)
    except Exception:
        # TODO(synk): pl.Buffered(1) single-buffering unavailable in this Pallas
        # build; fall back to default double-buffered weight blocks.
        return _mtp_call(h, x, kp, block_b, f_tile, weight_bufs=None)


def init_params(key, H, F):
    """Logical (reference) parameters, f32, torch-equivalent layout."""
    ks = jax.random.split(key, 9)

    def lin(k, fan_in, shape):
        return jax.random.normal(k, shape, jnp.float32) / jnp.sqrt(
            jnp.float32(fan_in))

    return dict(
        g_norm=jnp.ones((1, H), jnp.float32),
        w_lin=lin(ks[0], 2 * H, (2 * H, H)),     # nn.Linear(2H, H).weight^T
        b_lin=lin(ks[1], 2 * H, (1, H)),
        g_attn=jnp.ones((1, H), jnp.float32),
        wq=lin(ks[2], H, (H, H)),
        wk=lin(ks[3], H, (H, H)),
        wv=lin(ks[4], H, (H, H)),
        wo=lin(ks[5], H, (H, H)),
        g_moe=jnp.ones((1, H), jnp.float32),
        w1=lin(ks[6], H, (H, F)),
        w3=lin(ks[7], H, (H, F)),
        w2=lin(ks[8], F, (F, H)),
    )


def pack_params(p, H, F, f_tile):
    """Kernel-ready params: bf16 weights, fused QKV, tile-interleaved fused
    gate/up ([gate_f | up_f] contiguous per F-tile), softmax scale folded in."""
    assert F % f_tile == 0
    nf = F // f_tile
    bf = jnp.bfloat16
    w1 = p["w1"].reshape(H, nf, f_tile)
    w3 = p["w3"].reshape(H, nf, f_tile)
    w13 = jnp.concatenate([w1, w3], axis=2).reshape(H, 2 * F)
    wqkv = jnp.concatenate(
        [p["wq"] * (H ** -0.5), p["wk"], p["wv"]], axis=1)
    return dict(
        g_norm=p["g_norm"], b_lin=p["b_lin"],
        g_attn=p["g_attn"], g_moe=p["g_moe"],
        w_lin_h=p["w_lin"][:H].astype(bf),
        w_lin_x=p["w_lin"][H:].astype(bf),
        wqkv=wqkv.astype(bf),
        wo=p["wo"].astype(bf),
        w13=w13.astype(bf),
        w2=p["w2"].astype(bf),
        f_tile=f_tile,
    )


def mtp_reference(h, x, p):
    """Pure-JAX f32 reference with the original (unfused) semantics."""
    def rmsnorm(v, g):
        rms = jnp.sqrt(jnp.mean(v * v, axis=-1, keepdims=True) + EPS)
        return v * g / rms

    H = x.shape[-1]
    S = x.shape[1]
    xn = rmsnorm(x, p["g_norm"][0])
    y = h @ p["w_lin"][:H] + xn @ p["w_lin"][H:] + p["b_lin"][0]
    a_in = rmsnorm(y, p["g_attn"][0])
    q, k, v = a_in @ p["wq"], a_in @ p["wk"], a_in @ p["wv"]
    s = jnp.einsum("bqd,bkd->bqk", q, k) / jnp.sqrt(jnp.float32(H))
    mask = jnp.tril(jnp.ones((S, S), bool))
    s = jnp.where(mask, s, -jnp.inf)
    pa = jax.nn.softmax(s, axis=-1)
    y = y + jnp.einsum("bqk,bkd->bqd", pa, v) @ p["wo"]
    m_in = rmsnorm(y, p["g_moe"][0])
    ff = (jax.nn.silu(m_in @ p["w1"]) * (m_in @ p["w3"])) @ p["w2"]
    return y + ff


if __name__ == "__main__":
    B, S, H, F = 2, 8, 128, 256   # small shapes consistent with the module
    key = jax.random.PRNGKey(0)
    k_h, k_x, k_p = jax.random.split(key, 3)

    h = jax.random.normal(k_h, (B, S, H), jnp.float32)
    x = jax.random.normal(k_x, (B, S, H), jnp.float32)
    params = init_params(k_p, H, F)
    # f_tile=128 -> 2 FFN tiles, so the streamed-reduction path is exercised.
    kparams = pack_params(params, H, F, f_tile=128)

    out = jax.block_until_ready(mtp_forward(h, x, kparams))

    ref = mtp_reference(h, x, params)
    assert out.shape == (B, S, H)
    max_err = float(jnp.max(jnp.abs(out - ref)))
    # bf16 matmuls + approx reciprocal -> ~1e-2 relative error expected.
    assert jnp.allclose(out, ref, rtol=5e-2, atol=5e-2), max_err

    print("KERNEL_OK")
</pallas_src>

<mosaic_0001>
module attributes {stable_mosaic.version = 11 : i64} {
  func.func @mtp_kernel(%arg0: i32, %arg1: i32, %arg2: memref<2x8x128xf32, #tpu.memory_space<vmem>>, %arg3: memref<2x8x128xf32, #tpu.memory_space<vmem>>, %arg4: memref<1x128xf32, #tpu.memory_space<vmem>>, %arg5: memref<128x128xbf16, #tpu.memory_space<vmem>>, %arg6: memref<128x128xbf16, #tpu.memory_space<vmem>>, %arg7: memref<1x128xf32, #tpu.memory_space<vmem>>, %arg8: memref<1x128xf32, #tpu.memory_space<vmem>>, %arg9: memref<128x384xbf16, #tpu.memory_space<vmem>>, %arg10: memref<128x128xbf16, #tpu.memory_space<vmem>>, %arg11: memref<1x128xf32, #tpu.memory_space<vmem>>, %arg12: memref<128x256xbf16, #tpu.memory_space<vmem>>, %arg13: memref<128x128xbf16, #tpu.memory_space<vmem>>, %arg14: memref<2x8x128xf32, #tpu.memory_space<vmem>>, %arg15: memref<16x128xf32, #tpu.memory_space<vmem>>, %arg16: memref<16x128xf32, #tpu.memory_space<vmem>>, %arg17: memref<16x128xf32, #tpu.memory_space<vmem>>) attributes {dimension_semantics = [#tpu.dimension_semantics<parallel>, #tpu.dimension_semantics<arbitrary>], iteration_bounds = array<i64: 1, 2>, scalar_prefetch = 0 : i64, scratch_operands = 3 : i64, tpu.core_type = #tpu.core_type<tc>, window_params = [{transform_indices = @transform_0, window_bounds = array<i64: 2, 8, 128>}, {transform_indices = @transform_1, window_bounds = array<i64: 2, 8, 128>}, {pipeline_mode = #tpu.pipeline_mode<synchronous>, transform_indices = @transform_2, window_bounds = array<i64: 1, 128>}, {pipeline_mode = #tpu.pipeline_mode<synchronous>, transform_indices = @transform_3, window_bounds = array<i64: 128, 128>}, {pipeline_mode = #tpu.pipeline_mode<synchronous>, transform_indices = @transform_4, window_bounds = array<i64: 128, 128>}, {pipeline_mode = #tpu.pipeline_mode<synchronous>, transform_indices = @transform_5, window_bounds = array<i64: 1, 128>}, {pipeline_mode = #tpu.pipeline_mode<synchronous>, transform_indices = @transform_6, window_bounds = array<i64: 1, 128>}, {pipeline_mode = #tpu.pipeline_mode<synchronous>, transform_indices = @transform_7, window_bounds = array<i64: 128, 384>}, {pipeline_mode = #tpu.pipeline_mode<synchronous>, transform_indices = @transform_8, window_bounds = array<i64: 128, 128>}, {pipeline_mode = #tpu.pipeline_mode<synchronous>, transform_indices = @transform_9, window_bounds = array<i64: 1, 128>}, {transform_indices = @transform_10, window_bounds = array<i64: 128, 256>}, {transform_indices = @transform_11, window_bounds = array<i64: 128, 128>}, {transform_indices = @transform_12, window_bounds = array<i64: 2, 8, 128>}]} {
    %c0_i32 = arith.constant 0 : i32
    %0 = arith.cmpi eq, %arg1, %c0_i32 : i32
    %1 = arith.extui %0 : i1 to i32
    %c0_i32_0 = arith.constant 0 : i32
    %2 = arith.cmpi ne, %1, %c0_i32_0 : i32
    scf.if %2 {
      %c0_13 = arith.constant 0 : index
      %c0_14 = arith.constant 0 : index
      %c0_15 = arith.constant 0 : index
      %25 = vector.load %arg2[%c0_13, %c0_14, %c0_15] : memref<2x8x128xf32, #tpu.memory_space<vmem>>, vector<2x8x128xf32>
      %26 = vector.shape_cast %25 : vector<2x8x128xf32> to vector<16x128xf32>
      %c0_16 = arith.constant 0 : index
      %c0_17 = arith.constant 0 : index
      %c0_18 = arith.constant 0 : index
      %27 = vector.load %arg3[%c0_16, %c0_17, %c0_18] : memref<2x8x128xf32, #tpu.memory_space<vmem>>, vector<2x8x128xf32>
      %28 = vector.shape_cast %27 : vector<2x8x128xf32> to vector<16x128xf32>
      %c0_19 = arith.constant 0 : index
      %c0_20 = arith.constant 0 : index
      %29 = vector.load %arg4[%c0_19, %c0_20] : memref<1x128xf32, #tpu.memory_space<vmem>>, vector<1x128xf32>
      %30 = arith.mulf %28, %28 : vector<16x128xf32>
      %cst_21 = arith.constant dense<0.000000e+00> : vector<16xf32>
      %31 = vector.multi_reduction <add>, %30, %cst_21 [1] : vector<16x128xf32> to vector<16xf32>
      %32 = vector.shape_cast %31 : vector<16xf32> to vector<16x1xf32>
      %cst_22 = arith.constant 1.280000e+02 : f32
      %33 = vector.broadcast %cst_22 : f32 to vector<16x1xf32>
      %34 = arith.divf %32, %33 : vector<16x1xf32>
      %cst_23 = arith.constant 9.99999997E-7 : f32
      %35 = vector.broadcast %cst_23 : f32 to vector<16x1xf32>
      %36 = arith.addf %34, %35 : vector<16x1xf32>
      %37 = math.rsqrt %36 : vector<16x1xf32>
      %38 = vector.broadcast %29 : vector<1x128xf32> to vector<16x128xf32>
      %39 = vector.broadcast %37 : vector<16x1xf32> to vector<16x128xf32>
      %40 = arith.mulf %38, %39 : vector<16x128xf32>
      %41 = arith.mulf %28, %40 : vector<16x128xf32>
      %42 = arith.truncf %26 : vector<16x128xf32> to vector<16x128xbf16>
      %c0_24 = arith.constant 0 : index
      %c0_25 = arith.constant 0 : index
      %43 = vector.load %arg5[%c0_24, %c0_25] : memref<128x128xbf16, #tpu.memory_space<vmem>>, vector<128x128xbf16>
      %cst_26 = arith.constant dense<0.000000e+00> : vector<16x128xf32>
      %44 = tpu.matmul %42, %43, %cst_26 {dimension_numbers = #tpu.dot_dimension_numbers<[1], [0], [0], [1], [0, 0, 1, 1], [], []>} : vector<16x128xbf16>, vector<128x128xbf16>, vector<16x128xf32> -> vector<16x128xf32>
      %45 = arith.truncf %41 : vector<16x128xf32> to vector<16x128xbf16>
      %c0_27 = arith.constant 0 : index
      %c0_28 = arith.constant 0 : index
      %46 = vector.load %arg6[%c0_27, %c0_28] : memref<128x128xbf16, #tpu.memory_space<vmem>>, vector<128x128xbf16>
      %cst_29 = arith.constant dense<0.000000e+00> : vector<16x128xf32>
      %47 = tpu.matmul %45, %46, %cst_29 {dimension_numbers = #tpu.dot_dimension_numbers<[1], [0], [0], [1], [0, 0, 1, 1], [], []>} : vector<16x128xbf16>, vector<128x128xbf16>, vector<16x128xf32> -> vector<16x128xf32>
      %48 = arith.addf %44, %47 : vector<16x128xf32>
      %c0_30 = arith.constant 0 : index
      %c0_31 = arith.constant 0 : index
      %49 = vector.load %arg7[%c0_30, %c0_31] : memref<1x128xf32, #tpu.memory_space<vmem>>, vector<1x128xf32>
      %50 = vector.broadcast %49 : vector<1x128xf32> to vector<16x128xf32>
      %51 = arith.addf %48, %50 : vector<16x128xf32>
      %c0_32 = arith.constant 0 : index
      %c0_33 = arith.constant 0 : index
      %52 = vector.load %arg8[%c0_32, %c0_33] : memref<1x128xf32, #tpu.memory_space<vmem>>, vector<1x128xf32>
      %53 = arith.mulf %51, %51 : vector<16x128xf32>
      %cst_34 = arith.constant dense<0.000000e+00> : vector<16xf32>
      %54 = vector.multi_reduction <add>, %53, %cst_34 [1] : vector<16x128xf32> to vector<16xf32>
      %55 = vector.shape_cast %54 : vector<16xf32> to vector<16x1xf32>
      %cst_35 = arith.constant 1.280000e+02 : f32
      %56 = vector.broadcast %cst_35 : f32 to vector<16x1xf32>
      %57 = arith.divf %55, %56 : vector<16x1xf32>
      %cst_36 = arith.constant 9.99999997E-7 : f32
      %58 = vector.broadcast %cst_36 : f32 to vector<16x1xf32>
      %59 = arith.addf %57, %58 : vector<16x1xf32>
      %60 = math.rsqrt %59 : vector<16x1xf32>
      %61 = vector.broadcast %52 : vector<1x128xf32> to vector<16x128xf32>
      %62 = vector.broadcast %60 : vector<16x1xf32> to vector<16x128xf32>
      %63 = arith.mulf %61, %62 : vector<16x128xf32>
      %64 = arith.mulf %51, %63 : vector<16x128xf32>
      %65 = arith.truncf %64 : vector<16x128xf32> to vector<16x128xbf16>
      %c0_37 = arith.constant 0 : index
      %c0_38 = arith.constant 0 : index
      %66 = vector.load %arg9[%c0_37, %c0_38] : memref<128x384xbf16, #tpu.memory_space<vmem>>, vector<128x384xbf16>
      %cst_39 = arith.constant dense<0.000000e+00> : vector<16x384xf32>
      %67 = tpu.matmul %65, %66, %cst_39 {dimension_numbers = #tpu.dot_dimension_numbers<[1], [0], [0], [1], [0, 0, 1, 1], [], []>} : vector<16x128xbf16>, vector<128x384xbf16>, vector<16x384xf32> -> vector<16x384xf32>
      %68 = vector.extract_strided_slice %67 {offsets = [0, 0], sizes = [16, 128], strides = [1, 1]} : vector<16x384xf32> to vector<16x128xf32>
      %69 = vector.shape_cast %68 : vector<16x128xf32> to vector<2x8x128xf32>
      %70 = vector.extract_strided_slice %67 {offsets = [0, 128], sizes = [16, 128], strides = [1, 1]} : vector<16x384xf32> to vector<16x128xf32>
      %71 = vector.shape_cast %70 : vector<16x128xf32> to vector<2x8x128xf32>
      %72 = vector.extract_strided_slice %67 {offsets = [0, 256], sizes = [16, 128], strides = [1, 1]} : vector<16x384xf32> to vector<16x128xf32>
      %73 = vector.shape_cast %72 : vector<16x128xf32> to vector<2x8x128xf32>
      %cst_40 = arith.constant dense<0.000000e+00> : vector<2x8x8xf32>
      %74 = tpu.matmul %69, %71, %cst_40 {dimension_numbers = #tpu.dot_dimension_numbers<[2], [2], [1], [1], [0, 0, 0, 1, 1, 1], [0], [0]>} : vector<2x8x128xf32>, vector<2x8x128xf32>, vector<2x8x8xf32> -> vector<2x8x8xf32>
      %75 = tpu.iota {dimensions = array<i32: 0>} : vector<8x8xi32>
      %76 = tpu.iota {dimensions = array<i32: 1>} : vector<8x8xi32>
      %77 = arith.cmpi sle, %76, %75 : vector<8x8xi32>
      %78 = vector.shape_cast %77 : vector<8x8xi1> to vector<1x8x8xi1>
      %cst_41 = arith.constant 0xFF800000 : f32
      %79 = vector.shape_cast %78 : vector<1x8x8xi1> to vector<1x8x8xi1>
      %80 = vector.broadcast %79 : vector<1x8x8xi1> to vector<2x8x8xi1>
      %81 = vector.broadcast %cst_41 : f32 to vector<2x8x8xf32>
      %82 = arith.select %80, %74, %81 : vector<2x8x8xi1>, vector<2x8x8xf32>
      %cst_42 = arith.constant dense<0xFF800000> : vector<2x8xf32>
      %83 = vector.multi_reduction <maximumf>, %82, %cst_42 [2] : vector<2x8x8xf32> to vector<2x8xf32>
      %84 = vector.shape_cast %83 : vector<2x8xf32> to vector<2x8x1xf32>
      %85 = vector.broadcast %84 : vector<2x8x1xf32> to vector<2x8x8xf32>
      %86 = arith.subf %82, %85 : vector<2x8x8xf32>
      %87 = math.exp %86 : vector<2x8x8xf32>
      %cst_43 = arith.constant dense<0.000000e+00> : vector<2x8xf32>
      %88 = vector.multi_reduction <add>, %87, %cst_43 [2] : vector<2x8x8xf32> to vector<2x8xf32>
      %89 = vector.shape_cast %88 : vector<2x8xf32> to vector<2x8x1xf32>
      %90 = tpu.reciprocal %89 {approx = true} : vector<2x8x1xf32> -> vector<2x8x1xf32>
      %91 = vector.broadcast %90 : vector<2x8x1xf32> to vector<2x8x8xf32>
      %92 = arith.mulf %87, %91 : vector<2x8x8xf32>
      %cst_44 = arith.constant dense<0.000000e+00> : vector<2x8x128xf32>
      %93 = tpu.matmul %92, %73, %cst_44 {dimension_numbers = #tpu.dot_dimension_numbers<[2], [1], [1], [2], [0, 0, 0, 1, 1, 2], [0], [0]>} : vector<2x8x8xf32>, vector<2x8x128xf32>, vector<2x8x128xf32> -> vector<2x8x128xf32>
      %94 = vector.shape_cast %93 : vector<2x8x128xf32> to vector<16x128xf32>
      %95 = arith.truncf %94 : vector<16x128xf32> to vector<16x128xbf16>
      %c0_45 = arith.constant 0 : index
      %c0_46 = arith.constant 0 : index
      %96 = vector.load %arg10[%c0_45, %c0_46] : memref<128x128xbf16, #tpu.memory_space<vmem>>, vector<128x128xbf16>
      %cst_47 = arith.constant dense<0.000000e+00> : vector<16x128xf32>
      %97 = tpu.matmul %95, %96, %cst_47 {dimension_numbers = #tpu.dot_dimension_numbers<[1], [0], [0], [1], [0, 0, 1, 1], [], []>} : vector<16x128xbf16>, vector<128x128xbf16>, vector<16x128xf32> -> vector<16x128xf32>
      %98 = arith.addf %51, %97 : vector<16x128xf32>
      %c0_48 = arith.constant 0 : index
      %c0_49 = arith.constant 0 : index
      %99 = vector.load %arg15[%c0_48, %c0_49] : memref<16x128xf32, #tpu.memory_space<vmem>>, vector<16x128xf32>
      tpu.vector_store %arg15[%c0_48, %c0_49], %98 {strides = array<i32>} : memref<16x128xf32, #tpu.memory_space<vmem>>, vector<16x128xf32>,
      %c0_50 = arith.constant 0 : index
      %c0_51 = arith.constant 0 : index
      %100 = vector.load %arg11[%c0_50, %c0_51] : memref<1x128xf32, #tpu.memory_space<vmem>>, vector<1x128xf32>
      %101 = arith.mulf %98, %98 : vector<16x128xf32>
      %cst_52 = arith.constant dense<0.000000e+00> : vector<16xf32>
      %102 = vector.multi_reduction <add>, %101, %cst_52 [1] : vector<16x128xf32> to vector<16xf32>
      %103 = vector.shape_cast %102 : vector<16xf32> to vector<16x1xf32>
      %cst_53 = arith.constant 1.280000e+02 : f32
      %104 = vector.broadcast %cst_53 : f32 to vector<16x1xf32>
      %105 = arith.divf %103, %104 : vector<16x1xf32>
      %cst_54 = arith.constant 9.99999997E-7 : f32
      %106 = vector.broadcast %cst_54 : f32 to vector<16x1xf32>
      %107 = arith.addf %105, %106 : vector<16x1xf32>
      %108 = math.rsqrt %107 : vector<16x1xf32>
      %109 = vector.broadcast %100 : vector<1x128xf32> to vector<16x128xf32>
      %110 = vector.broadcast %108 : vector<16x1xf32> to vector<16x128xf32>
      %111 = arith.mulf %109, %110 : vector<16x128xf32>
      %112 = arith.mulf %98, %111 : vector<16x128xf32>
      %c0_55 = arith.constant 0 : index
      %c0_56 = arith.constant 0 : index
      %113 = vector.load %arg16[%c0_55, %c0_56] : memref<16x128xf32, #tpu.memory_space<vmem>>, vector<16x128xf32>
      tpu.vector_store %arg16[%c0_55, %c0_56], %112 {strides = array<i32>} : memref<16x128xf32, #tpu.memory_space<vmem>>, vector<16x128xf32>,
      %cst_57 = arith.constant 0.000000e+00 : f32
      %114 = vector.broadcast %cst_57 : f32 to vector<16x128xf32>
      %c0_58 = arith.constant 0 : index
      %c0_59 = arith.constant 0 : index
      %115 = vector.load %arg17[%c0_58, %c0_59] : memref<16x128xf32, #tpu.memory_space<vmem>>, vector<16x128xf32>
      tpu.vector_store %arg17[%c0_58, %c0_59], %114 {strides = array<i32>} : memref<16x128xf32, #tpu.memory_space<vmem>>, vector<16x128xf32>,
    } else {
    }
    %c0 = arith.constant 0 : index
    %c0_1 = arith.constant 0 : index
    %3 = vector.load %arg16[%c0, %c0_1] : memref<16x128xf32, #tpu.memory_space<vmem>>, vector<16x128xf32>
    %4 = arith.truncf %3 : vector<16x128xf32> to vector<16x128xbf16>
    %c0_2 = arith.constant 0 : index
    %c0_3 = arith.constant 0 : index
    %5 = vector.load %arg12[%c0_2, %c0_3] : memref<128x256xbf16, #tpu.memory_space<vmem>>, vector<128x256xbf16>
    %cst = arith.constant dense<0.000000e+00> : vector<16x256xf32>
    %6 = tpu.matmul %4, %5, %cst {dimension_numbers = #tpu.dot_dimension_numbers<[1], [0], [0], [1], [0, 0, 1, 1], [], []>} : vector<16x128xbf16>, vector<128x256xbf16>, vector<16x256xf32> -> vector<16x256xf32>
    %7 = vector.extract_strided_slice %6 {offsets = [0, 0], sizes = [16, 128], strides = [1, 1]} : vector<16x256xf32> to vector<16x128xf32>
    %8 = arith.negf %7 : vector<16x128xf32>
    %9 = math.exp %8 : vector<16x128xf32>
    %cst_4 = arith.constant 1.000000e+00 : f32
    %10 = vector.broadcast %cst_4 : f32 to vector<16x128xf32>
    %11 = arith.addf %10, %9 : vector<16x128xf32>
    %12 = arith.divf %10, %11 : vector<16x128xf32>
    %13 = arith.mulf %7, %12 : vector<16x128xf32>
    %14 = vector.extract_strided_slice %6 {offsets = [0, 128], sizes = [16, 128], strides = [1, 1]} : vector<16x256xf32> to vector<16x128xf32>
    %15 = arith.mulf %13, %14 : vector<16x128xf32>
    %16 = arith.truncf %15 : vector<16x128xf32> to vector<16x128xbf16>
    %c0_5 = arith.constant 0 : index
    %c0_6 = arith.constant 0 : index
    %17 = vector.load %arg17[%c0_5, %c0_6] : memref<16x128xf32, #tpu.memory_space<vmem>>, vector<16x128xf32>
    %c0_7 = arith.constant 0 : index
    %c0_8 = arith.constant 0 : index
    %18 = vector.load %arg13[%c0_7, %c0_8] : memref<128x128xbf16, #tpu.memory_space<vmem>>, vector<128x128xbf16>
    %cst_9 = arith.constant dense<0.000000e+00> : vector<16x128xf32>
    %19 = tpu.matmul %16, %18, %cst_9 {dimension_numbers = #tpu.dot_dimension_numbers<[1], [0], [0], [1], [0, 0, 1, 1], [], []>} : vector<16x128xbf16>, vector<128x128xbf16>, vector<16x128xf32> -> vector<16x128xf32>
    %20 = arith.addf %17, %19 : vector<16x128xf32>
    %c0_10 = arith.constant 0 : index
    %c0_11 = arith.constant 0 : index
    %21 = vector.load %arg17[%c0_10, %c0_11] : memref<16x128xf32, #tpu.memory_space<vmem>>, vector<16x128xf32>
    tpu.vector_store %arg17[%c0_10, %c0_11], %20 {strides = array<i32>} : memref<16x128xf32, #tpu.memory_space<vmem>>, vector<16x128xf32>,
    %c1_i32 = arith.constant 1 : i32
    %22 = arith.cmpi eq, %arg1, %c1_i32 : i32
    %23 = arith.extui %22 : i1 to i32
    %c0_i32_12 = arith.constant 0 : i32
    %24 = arith.cmpi ne, %23, %c0_i32_12 : i32
    scf.if %24 {
      %c0_13 = arith.constant 0 : index
      %c0_14 = arith.constant 0 : index
      %25 = vector.load %arg15[%c0_13, %c0_14] : memref<16x128xf32, #tpu.memory_space<vmem>>, vector<16x128xf32>
      %c0_15 = arith.constant 0 : index
      %c0_16 = arith.constant 0 : index
      %26 = vector.load %arg17[%c0_15, %c0_16] : memref<16x128xf32, #tpu.memory_space<vmem>>, vector<16x128xf32>
      %27 = arith.addf %25, %26 : vector<16x128xf32>
      %28 = vector.shape_cast %27 : vector<16x128xf32> to vector<2x8x128xf32>
      %c0_17 = arith.constant 0 : index
      %c0_18 = arith.constant 0 : index
      %c0_19 = arith.constant 0 : index
      %29 = vector.load %arg14[%c0_17, %c0_18, %c0_19] : memref<2x8x128xf32, #tpu.memory_space<vmem>>, vector<2x8x128xf32>
      tpu.vector_store %arg14[%c0_17, %c0_18, %c0_19], %28 {strides = array<i32>} : memref<2x8x128xf32, #tpu.memory_space<vmem>>, vector<2x8x128xf32>,
    } else {
    }
    return
  }
  func.func @transform_0(%arg0: i32, %arg1: i32) -> (i32, i32, i32) {
    %c0_i32 = arith.constant 0 : i32
    %c0_i32_0 = arith.constant 0 : i32
    %c0_i32_1 = arith.constant 0 : i32
    return %arg0, %c0_i32, %c0_i32_0 : i32, i32, i32
  }
  func.func @transform_1(%arg0: i32, %arg1: i32) -> (i32, i32, i32) {
    %c0_i32 = arith.constant 0 : i32
    %c0_i32_0 = arith.constant 0 : i32
    %c0_i32_1 = arith.constant 0 : i32
    return %arg0, %c0_i32, %c0_i32_0 : i32, i32, i32
  }
  func.func @transform_2(%arg0: i32, %arg1: i32) -> (i32, i32) {
    %c0_i32 = arith.constant 0 : i32
    %c0_i32_0 = arith.constant 0 : i32
    %c0_i32_1 = arith.constant 0 : i32
    return %c0_i32, %c0_i32_0 : i32, i32
  }
  func.func @transform_3(%arg0: i32, %arg1: i32) -> (i32, i32) {
    %c0_i32 = arith.constant 0 : i32
    %c0_i32_0 = arith.constant 0 : i32
    %c0_i32_1 = arith.constant 0 : i32
    return %c0_i32, %c0_i32_0 : i32, i32
  }
  func.func @transform_4(%arg0: i32, %arg1: i32) -> (i32, i32) {
    %c0_i32 = arith.constant 0 : i32
    %c0_i32_0 = arith.constant 0 : i32
    %c0_i32_1 = arith.constant 0 : i32
    return %c0_i32, %c0_i32_0 : i32, i32
  }
  func.func @transform_5(%arg0: i32, %arg1: i32) -> (i32, i32) {
    %c0_i32 = arith.constant 0 : i32
    %c0_i32_0 = arith.constant 0 : i32
    %c0_i32_1 = arith.constant 0 : i32
    return %c0_i32, %c0_i32_0 : i32, i32
  }
  func.func @transform_6(%arg0: i32, %arg1: i32) -> (i32, i32) {
    %c0_i32 = arith.constant 0 : i32
    %c0_i32_0 = arith.constant 0 : i32
    %c0_i32_1 = arith.constant 0 : i32
    return %c0_i32, %c0_i32_0 : i32, i32
  }
  func.func @transform_7(%arg0: i32, %arg1: i32) -> (i32, i32) {
    %c0_i32 = arith.constant 0 : i32
    %c0_i32_0 = arith.constant 0 : i32
    %c0_i32_1 = arith.constant 0 : i32
    return %c0_i32, %c0_i32_0 : i32, i32
  }
  func.func @transform_8(%arg0: i32, %arg1: i32) -> (i32, i32) {
    %c0_i32 = arith.constant 0 : i32
    %c0_i32_0 = arith.constant 0 : i32
    %c0_i32_1 = arith.constant 0 : i32
    return %c0_i32, %c0_i32_0 : i32, i32
  }
  func.func @transform_9(%arg0: i32, %arg1: i32) -> (i32, i32) {
    %c0_i32 = arith.constant 0 : i32
    %c0_i32_0 = arith.constant 0 : i32
    %c0_i32_1 = arith.constant 0 : i32
    return %c0_i32, %c0_i32_0 : i32, i32
  }
  func.func @transform_10(%arg0: i32, %arg1: i32) -> (i32, i32) {
    %c0_i32 = arith.constant 0 : i32
    %c0_i32_0 = arith.constant 0 : i32
    return %c0_i32, %arg1 : i32, i32
  }
  func.func @transform_11(%arg0: i32, %arg1: i32) -> (i32, i32) {
    %c0_i32 = arith.constant 0 : i32
    %c0_i32_0 = arith.constant 0 : i32
    return %arg1, %c0_i32 : i32, i32
  }
  func.func @transform_12(%arg0: i32, %arg1: i32) -> (i32, i32, i32) {
    %c0_i32 = arith.constant 0 : i32
    %c0_i32_0 = arith.constant 0 : i32
    %c0_i32_1 = arith.constant 0 : i32
    return %arg0, %c0_i32, %c0_i32_0 : i32, i32, i32
  }
}

module attributes {stable_mosaic.version = 11 : i64} {
  func.func @mtp_kernel(%arg0: i32, %arg1: i32, %arg2: memref<2x8x128xf32, #tpu.memory_space<vmem>>, %arg3: memref<2x8x128xf32, #tpu.memory_space<vmem>>, %arg4: memref<1x128xf32, #tpu.memory_space<vmem>>, %arg5: memref<128x128xbf16, #tpu.memory_space<vmem>>, %arg6: memref<128x128xbf16, #tpu.memory_space<vmem>>, %arg7: memref<1x128xf32, #tpu.memory_space<vmem>>, %arg8: memref<1x128xf32, #tpu.memory_space<vmem>>, %arg9: memref<128x384xbf16, #tpu.memory_space<vmem>>, %arg10: memref<128x128xbf16, #tpu.memory_space<vmem>>, %arg11: memref<1x128xf32, #tpu.memory_space<vmem>>, %arg12: memref<128x256xbf16, #tpu.memory_space<vmem>>, %arg13: memref<128x128xbf16, #tpu.memory_space<vmem>>, %arg14: memref<2x8x128xf32, #tpu.memory_space<vmem>>, %arg15: memref<16x128xf32, #tpu.memory_space<vmem>>, %arg16: memref<16x128xf32, #tpu.memory_space<vmem>>, %arg17: memref<16x128xf32, #tpu.memory_space<vmem>>) attributes {dimension_semantics = [#tpu.dimension_semantics<parallel>, #tpu.dimension_semantics<arbitrary>], iteration_bounds = array<i64: 1, 2>, scalar_prefetch = 0 : i64, scratch_operands = 3 : i64, tpu.core_type = #tpu.core_type<tc>, window_params = [{transform_indices = @transform_0, window_bounds = array<i64: 2, 8, 128>}, {transform_indices = @transform_1, window_bounds = array<i64: 2, 8, 128>}, {pipeline_mode = #tpu.pipeline_mode<synchronous>, transform_indices = @transform_2, window_bounds = array<i64: 1, 128>}, {pipeline_mode = #tpu.pipeline_mode<synchronous>, transform_indices = @transform_3, window_bounds = array<i64: 128, 128>}, {pipeline_mode = #tpu.pipeline_mode<synchronous>, transform_indices = @transform_4, window_bounds = array<i64: 128, 128>}, {pipeline_mode = #tpu.pipeline_mode<synchronous>, transform_indices = @transform_5, window_bounds = array<i64: 1, 128>}, {pipeline_mode = #tpu.pipeline_mode<synchronous>, transform_indices = @transform_6, window_bounds = array<i64: 1, 128>}, {pipeline_mode = #tpu.pipeline_mode<synchronous>, transform_indices = @transform_7, window_bounds = array<i64: 128, 384>}, {pipeline_mode = #tpu.pipeline_mode<synchronous>, transform_indices = @transform_8, window_bounds = array<i64: 128, 128>}, {pipeline_mode = #tpu.pipeline_mode<synchronous>, transform_indices = @transform_9, window_bounds = array<i64: 1, 128>}, {transform_indices = @transform_10, window_bounds = array<i64: 128, 256>}, {transform_indices = @transform_11, window_bounds = array<i64: 128, 128>}, {transform_indices = @transform_12, window_bounds = array<i64: 2, 8, 128>}]} {
    %c0_i32 = arith.constant 0 : i32
    %0 = arith.cmpi eq, %arg1, %c0_i32 : i32
    %1 = arith.extui %0 : i1 to i32
    %c0_i32_0 = arith.constant 0 : i32
    %2 = arith.cmpi ne, %1, %c0_i32_0 : i32
    scf.if %2 {
      %c0_13 = arith.constant 0 : index
      %c0_14 = arith.constant 0 : index
      %c0_15 = arith.constant 0 : index
      %25 = vector.load %arg2[%c0_13, %c0_14, %c0_15] : memref<2x8x128xf32, #tpu.memory_space<vmem>>, vector<2x8x128xf32>
      %26 = vector.shape_cast %25 : vector<2x8x128xf32> to vector<16x128xf32>
      %c0_16 = arith.constant 0 : index
      %c0_17 = arith.constant 0 : index
      %c0_18 = arith.constant 0 : index
      %27 = vector.load %arg3[%c0_16, %c0_17, %c0_18] : memref<2x8x128xf32, #tpu.memory_space<vmem>>, vector<2x8x128xf32>
      %28 = vector.shape_cast %27 : vector<2x8x128xf32> to vector<16x128xf32>
      %c0_19 = arith.constant 0 : index
      %c0_20 = arith.constant 0 : index
      %29 = vector.load %arg4[%c0_19, %c0_20] : memref<1x128xf32, #tpu.memory_space<vmem>>, vector<1x128xf32>
      %30 = arith.mulf %28, %28 : vector<16x128xf32>
      %cst_21 = arith.constant dense<0.000000e+00> : vector<16xf32>
      %31 = vector.multi_reduction <add>, %30, %cst_21 [1] : vector<16x128xf32> to vector<16xf32>
      %32 = vector.shape_cast %31 : vector<16xf32> to vector<16x1xf32>
      %cst_22 = arith.constant 1.280000e+02 : f32
      %33 = vector.broadcast %cst_22 : f32 to vector<16x1xf32>
      %34 = arith.divf %32, %33 : vector<16x1xf32>
      %cst_23 = arith.constant 9.99999997E-7 : f32
      %35 = vector.broadcast %cst_23 : f32 to vector<16x1xf32>
      %36 = arith.addf %34, %35 : vector<16x1xf32>
      %37 = math.rsqrt %36 : vector<16x1xf32>
      %38 = vector.broadcast %29 : vector<1x128xf32> to vector<16x128xf32>
      %39 = vector.broadcast %37 : vector<16x1xf32> to vector<16x128xf32>
      %40 = arith.mulf %38, %39 : vector<16x128xf32>
      %41 = arith.mulf %28, %40 : vector<16x128xf32>
      %42 = arith.truncf %26 : vector<16x128xf32> to vector<16x128xbf16>
      %c0_24 = arith.constant 0 : index
      %c0_25 = arith.constant 0 : index
      %43 = vector.load %arg5[%c0_24, %c0_25] : memref<128x128xbf16, #tpu.memory_space<vmem>>, vector<128x128xbf16>
      %cst_26 = arith.constant dense<0.000000e+00> : vector<16x128xf32>
      %44 = tpu.matmul %42, %43, %cst_26 {dimension_numbers = #tpu.dot_dimension_numbers<[1], [0], [0], [1], [0, 0, 1, 1], [], []>} : vector<16x128xbf16>, vector<128x128xbf16>, vector<16x128xf32> -> vector<16x128xf32>
      %45 = arith.truncf %41 : vector<16x128xf32> to vector<16x128xbf16>
      %c0_27 = arith.constant 0 : index
      %c0_28 = arith.constant 0 : index
      %46 = vector.load %arg6[%c0_27, %c0_28] : memref<128x128xbf16, #tpu.memory_space<vmem>>, vector<128x128xbf16>
      %cst_29 = arith.constant dense<0.000000e+00> : vector<16x128xf32>
      %47 = tpu.matmul %45, %46, %cst_29 {dimension_numbers = #tpu.dot_dimension_numbers<[1], [0], [0], [1], [0, 0, 1, 1], [], []>} : vector<16x128xbf16>, vector<128x128xbf16>, vector<16x128xf32> -> vector<16x128xf32>
      %48 = arith.addf %44, %47 : vector<16x128xf32>
      %c0_30 = arith.constant 0 : index
      %c0_31 = arith.constant 0 : index
      %49 = vector.load %arg7[%c0_30, %c0_31] : memref<1x128xf32, #tpu.memory_space<vmem>>, vector<1x128xf32>
      %50 = vector.broadcast %49 : vector<1x128xf32> to vector<16x128xf32>
      %51 = arith.addf %48, %50 : vector<16x128xf32>
      %c0_32 = arith.constant 0 : index
      %c0_33 = arith.constant 0 : index
      %52 = vector.load %arg8[%c0_32, %c0_33] : memref<1x128xf32, #tpu.memory_space<vmem>>, vector<1x128xf32>
      %53 = arith.mulf %51, %51 : vector<16x128xf32>
      %cst_34 = arith.constant dense<0.000000e+00> : vector<16xf32>
      %54 = vector.multi_reduction <add>, %53, %cst_34 [1] : vector<16x128xf32> to vector<16xf32>
      %55 = vector.shape_cast %54 : vector<16xf32> to vector<16x1xf32>
      %cst_35 = arith.constant 1.280000e+02 : f32
      %56 = vector.broadcast %cst_35 : f32 to vector<16x1xf32>
      %57 = arith.divf %55, %56 : vector<16x1xf32>
      %cst_36 = arith.constant 9.99999997E-7 : f32
      %58 = vector.broadcast %cst_36 : f32 to vector<16x1xf32>
      %59 = arith.addf %57, %58 : vector<16x1xf32>
      %60 = math.rsqrt %59 : vector<16x1xf32>
      %61 = vector.broadcast %52 : vector<1x128xf32> to vector<16x128xf32>
      %62 = vector.broadcast %60 : vector<16x1xf32> to vector<16x128xf32>
      %63 = arith.mulf %61, %62 : vector<16x128xf32>
      %64 = arith.mulf %51, %63 : vector<16x128xf32>
      %65 = arith.truncf %64 : vector<16x128xf32> to vector<16x128xbf16>
      %c0_37 = arith.constant 0 : index
      %c0_38 = arith.constant 0 : index
      %66 = vector.load %arg9[%c0_37, %c0_38] : memref<128x384xbf16, #tpu.memory_space<vmem>>, vector<128x384xbf16>
      %cst_39 = arith.constant dense<0.000000e+00> : vector<16x384xf32>
      %67 = tpu.matmul %65, %66, %cst_39 {dimension_numbers = #tpu.dot_dimension_numbers<[1], [0], [0], [1], [0, 0, 1, 1], [], []>} : vector<16x128xbf16>, vector<128x384xbf16>, vector<16x384xf32> -> vector<16x384xf32>
      %68 = vector.extract_strided_slice %67 {offsets = [0, 0], sizes = [16, 128], strides = [1, 1]} : vector<16x384xf32> to vector<16x128xf32>
      %69 = vector.shape_cast %68 : vector<16x128xf32> to vector<2x8x128xf32>
      %70 = vector.extract_strided_slice %67 {offsets = [0, 128], sizes = [16, 128], strides = [1, 1]} : vector<16x384xf32> to vector<16x128xf32>
      %71 = vector.shape_cast %70 : vector<16x128xf32> to vector<2x8x128xf32>
      %72 = vector.extract_strided_slice %67 {offsets = [0, 256], sizes = [16, 128], strides = [1, 1]} : vector<16x384xf32> to vector<16x128xf32>
      %73 = vector.shape_cast %72 : vector<16x128xf32> to vector<2x8x128xf32>
      %cst_40 = arith.constant dense<0.000000e+00> : vector<2x8x8xf32>
      %74 = tpu.matmul %69, %71, %cst_40 {dimension_numbers = #tpu.dot_dimension_numbers<[2], [2], [1], [1], [0, 0, 0, 1, 1, 1], [0], [0]>} : vector<2x8x128xf32>, vector<2x8x128xf32>, vector<2x8x8xf32> -> vector<2x8x8xf32>
      %75 = tpu.iota {dimensions = array<i32: 0>} : vector<8x8xi32>
      %76 = tpu.iota {dimensions = array<i32: 1>} : vector<8x8xi32>
      %77 = arith.cmpi sle, %76, %75 : vector<8x8xi32>
      %78 = vector.shape_cast %77 : vector<8x8xi1> to vector<1x8x8xi1>
      %cst_41 = arith.constant 0xFF800000 : f32
      %79 = vector.shape_cast %78 : vector<1x8x8xi1> to vector<1x8x8xi1>
      %80 = vector.broadcast %79 : vector<1x8x8xi1> to vector<2x8x8xi1>
      %81 = vector.broadcast %cst_41 : f32 to vector<2x8x8xf32>
      %82 = arith.select %80, %74, %81 : vector<2x8x8xi1>, vector<2x8x8xf32>
      %cst_42 = arith.constant dense<0xFF800000> : vector<2x8xf32>
      %83 = vector.multi_reduction <maximumf>, %82, %cst_42 [2] : vector<2x8x8xf32> to vector<2x8xf32>
      %84 = vector.shape_cast %83 : vector<2x8xf32> to vector<2x8x1xf32>
      %85 = vector.broadcast %84 : vector<2x8x1xf32> to vector<2x8x8xf32>
      %86 = arith.subf %82, %85 : vector<2x8x8xf32>
      %87 = math.exp %86 : vector<2x8x8xf32>
      %cst_43 = arith.constant dense<0.000000e+00> : vector<2x8xf32>
      %88 = vector.multi_reduction <add>, %87, %cst_43 [2] : vector<2x8x8xf32> to vector<2x8xf32>
      %89 = vector.shape_cast %88 : vector<2x8xf32> to vector<2x8x1xf32>
      %90 = tpu.reciprocal %89 {approx = true} : vector<2x8x1xf32> -> vector<2x8x1xf32>
      %91 = vector.broadcast %90 : vector<2x8x1xf32> to vector<2x8x8xf32>
      %92 = arith.mulf %87, %91 : vector<2x8x8xf32>
      %cst_44 = arith.constant dense<0.000000e+00> : vector<2x8x128xf32>
      %93 = tpu.matmul %92, %73, %cst_44 {dimension_numbers = #tpu.dot_dimension_numbers<[2], [1], [1], [2], [0, 0, 0, 1, 1, 2], [0], [0]>} : vector<2x8x8xf32>, vector<2x8x128xf32>, vector<2x8x128xf32> -> vector<2x8x128xf32>
      %94 = vector.shape_cast %93 : vector<2x8x128xf32> to vector<16x128xf32>
      %95 = arith.truncf %94 : vector<16x128xf32> to vector<16x128xbf16>
      %c0_45 = arith.constant 0 : index
      %c0_46 = arith.constant 0 : index
      %96 = vector.load %arg10[%c0_45, %c0_46] : memref<128x128xbf16, #tpu.memory_space<vmem>>, vector<128x128xbf16>
      %cst_47 = arith.constant dense<0.000000e+00> : vector<16x128xf32>
      %97 = tpu.matmul %95, %96, %cst_47 {dimension_numbers = #tpu.dot_dimension_numbers<[1], [0], [0], [1], [0, 0, 1, 1], [], []>} : vector<16x128xbf16>, vector<128x128xbf16>, vector<16x128xf32> -> vector<16x128xf32>
      %98 = arith.addf %51, %97 : vector<16x128xf32>
      %c0_48 = arith.constant 0 : index
      %c0_49 = arith.constant 0 : index
      %99 = vector.load %arg15[%c0_48, %c0_49] : memref<16x128xf32, #tpu.memory_space<vmem>>, vector<16x128xf32>
      tpu.vector_store %arg15[%c0_48, %c0_49], %98 {strides = array<i32>} : memref<16x128xf32, #tpu.memory_space<vmem>>, vector<16x128xf32>,
      %c0_50 = arith.constant 0 : index
      %c0_51 = arith.constant 0 : index
      %100 = vector.load %arg11[%c0_50, %c0_51] : memref<1x128xf32, #tpu.memory_space<vmem>>, vector<1x128xf32>
      %101 = arith.mulf %98, %98 : vector<16x128xf32>
      %cst_52 = arith.constant dense<0.000000e+00> : vector<16xf32>
      %102 = vector.multi_reduction <add>, %101, %cst_52 [1] : vector<16x128xf32> to vector<16xf32>
      %103 = vector.shape_cast %102 : vector<16xf32> to vector<16x1xf32>
      %cst_53 = arith.constant 1.280000e+02 : f32
      %104 = vector.broadcast %cst_53 : f32 to vector<16x1xf32>
      %105 = arith.divf %103, %104 : vector<16x1xf32>
      %cst_54 = arith.constant 9.99999997E-7 : f32
      %106 = vector.broadcast %cst_54 : f32 to vector<16x1xf32>
      %107 = arith.addf %105, %106 : vector<16x1xf32>
      %108 = math.rsqrt %107 : vector<16x1xf32>
      %109 = vector.broadcast %100 : vector<1x128xf32> to vector<16x128xf32>
      %110 = vector.broadcast %108 : vector<16x1xf32> to vector<16x128xf32>
      %111 = arith.mulf %109, %110 : vector<16x128xf32>
      %112 = arith.mulf %98, %111 : vector<16x128xf32>
      %c0_55 = arith.constant 0 : index
      %c0_56 = arith.constant 0 : index
      %113 = vector.load %arg16[%c0_55, %c0_56] : memref<16x128xf32, #tpu.memory_space<vmem>>, vector<16x128xf32>
      tpu.vector_store %arg16[%c0_55, %c0_56], %112 {strides = array<i32>} : memref<16x128xf32, #tpu.memory_space<vmem>>, vector<16x128xf32>,
      %cst_57 = arith.constant 0.000000e+00 : f32
      %114 = vector.broadcast %cst_57 : f32 to vector<16x128xf32>
      %c0_58 = arith.constant 0 : index
      %c0_59 = arith.constant 0 : index
      %115 = vector.load %arg17[%c0_58, %c0_59] : memref<16x128xf32, #tpu.memory_space<vmem>>, vector<16x128xf32>
      tpu.vector_store %arg17[%c0_58, %c0_59], %114 {strides = array<i32>} : memref<16x128xf32, #tpu.memory_space<vmem>>, vector<16x128xf32>,
    } else {
    }
    %c0 = arith.constant 0 : index
    %c0_1 = arith.constant 0 : index
    %3 = vector.load %arg16[%c0, %c0_1] : memref<16x128xf32, #tpu.memory_space<vmem>>, vector<16x128xf32>
    %4 = arith.truncf %3 : vector<16x128xf32> to vector<16x128xbf16>
    %c0_2 = arith.constant 0 : index
    %c0_3 = arith.constant 0 : index
    %5 = vector.load %arg12[%c0_2, %c0_3] : memref<128x256xbf16, #tpu.memory_space<vmem>>, vector<128x256xbf16>
    %cst = arith.constant dense<0.000000e+00> : vector<16x256xf32>
    %6 = tpu.matmul %4, %5, %cst {dimension_numbers = #tpu.dot_dimension_numbers<[1], [0], [0], [1], [0, 0, 1, 1], [], []>} : vector<16x128xbf16>, vector<128x256xbf16>, vector<16x256xf32> -> vector<16x256xf32>
    %7 = vector.extract_strided_slice %6 {offsets = [0, 0], sizes = [16, 128], strides = [1, 1]} : vector<16x256xf32> to vector<16x128xf32>
    %8 = arith.negf %7 : vector<16x128xf32>
    %9 = math.exp %8 : vector<16x128xf32>
    %cst_4 = arith.constant 1.000000e+00 : f32
    %10 = vector.broadcast %cst_4 : f32 to vector<16x128xf32>
    %11 = arith.addf %10, %9 : vector<16x128xf32>
    %12 = arith.divf %10, %11 : vector<16x128xf32>
    %13 = arith.mulf %7, %12 : vector<16x128xf32>
    %14 = vector.extract_strided_slice %6 {offsets = [0, 128], sizes = [16, 128], strides = [1, 1]} : vector<16x256xf32> to vector<16x128xf32>
    %15 = arith.mulf %13, %14 : vector<16x128xf32>
    %16 = arith.truncf %15 : vector<16x128xf32> to vector<16x128xbf16>
    %c0_5 = arith.constant 0 : index
    %c0_6 = arith.constant 0 : index
    %17 = vector.load %arg17[%c0_5, %c0_6] : memref<16x128xf32, #tpu.memory_space<vmem>>, vector<16x128xf32>
    %c0_7 = arith.constant 0 : index
    %c0_8 = arith.constant 0 : index
    %18 = vector.load %arg13[%c0_7, %c0_8] : memref<128x128xbf16, #tpu.memory_space<vmem>>, vector<128x128xbf16>
    %cst_9 = arith.constant dense<0.000000e+00> : vector<16x128xf32>
    %19 = tpu.matmul %16, %18, %cst_9 {dimension_numbers = #tpu.dot_dimension_numbers<[1], [0], [0], [1], [0, 0, 1, 1], [], []>} : vector<16x128xbf16>, vector<128x128xbf16>, vector<16x128xf32> -> vector<16x128xf32>
    %20 = arith.addf %17, %19 : vector<16x128xf32>
    %c0_10 = arith.constant 0 : index
    %c0_11 = arith.constant 0 : index
    %21 = vector.load %arg17[%c0_10, %c0_11] : memref<16x128xf32, #tpu.memory_space<vmem>>, vector<16x128xf32>
    tpu.vector_store %arg17[%c0_10, %c0_11], %20 {strides = array<i32>} : memref<16x128xf32, #tpu.memory_space<vmem>>, vector<16x128xf32>,
    %c1_i32 = arith.constant 1 : i32
    %22 = arith.cmpi eq, %arg1, %c1_i32 : i32
    %23 = arith.extui %22 : i1 to i32
    %c0_i32_12 = arith.constant 0 : i32
    %24 = arith.cmpi ne, %23, %c0_i32_12 : i32
    scf.if %24 {
      %c0_13 = arith.constant 0 : index
      %c0_14 = arith.constant 0 : index
      %25 = vector.load %arg15[%c0_13, %c0_14] : memref<16x128xf32, #tpu.memory_space<vmem>>, vector<16x128xf32>
      %c0_15 = arith.constant 0 : index
      %c0_16 = arith.constant 0 : index
      %26 = vector.load %arg17[%c0_15, %c0_16] : memref<16x128xf32, #tpu.memory_space<vmem>>, vector<16x128xf32>
      %27 = arith.addf %25, %26 : vector<16x128xf32>
      %28 = vector.shape_cast %27 : vector<16x128xf32> to vector<2x8x128xf32>
      %c0_17 = arith.constant 0 : index
      %c0_18 = arith.constant 0 : index
      %c0_19 = arith.constant 0 : index
      %29 = vector.load %arg14[%c0_17, %c0_18, %c0_19] : memref<2x8x128xf32, #tpu.memory_space<vmem>>, vector<2x8x128xf32>
      tpu.vector_store %arg14[%c0_17, %c0_18, %c0_19], %28 {strides = array<i32>} : memref<2x8x128xf32, #tpu.memory_space<vmem>>, vector<2x8x128xf32>,
    } else {
    }
    return
  }
  func.func @transform_0(%arg0: i32, %arg1: i32) -> (i32, i32, i32) {
    %c0_i32 = arith.constant 0 : i32
    %c0_i32_0 = arith.constant 0 : i32
    %c0_i32_1 = arith.constant 0 : i32
    return %arg0, %c0_i32, %c0_i32_0 : i32, i32, i32
  }
  func.func @transform_1(%arg0: i32, %arg1: i32) -> (i32, i32, i32) {
    %c0_i32 = arith.constant 0 : i32
    %c0_i32_0 = arith.constant 0 : i32
    %c0_i32_1 = arith.constant 0 : i32
    return %arg0, %c0_i32, %c0_i32_0 : i32, i32, i32
  }
  func.func @transform_2(%arg0: i32, %arg1: i32) -> (i32, i32) {
    %c0_i32 = arith.constant 0 : i32
    %c0_i32_0 = arith.constant 0 : i32
    %c0_i32_1 = arith.constant 0 : i32
    return %c0_i32, %c0_i32_0 : i32, i32
  }
  func.func @transform_3(%arg0: i32, %arg1: i32) -> (i32, i32) {
    %c0_i32 = arith.constant 0 : i32
    %c0_i32_0 = arith.constant 0 : i32
    %c0_i32_1 = arith.constant 0 : i32
    return %c0_i32, %c0_i32_0 : i32, i32
  }
  func.func @transform_4(%arg0: i32, %arg1: i32) -> (i32, i32) {
    %c0_i32 = arith.constant 0 : i32
    %c0_i32_0 = arith.constant 0 : i32
    %c0_i32_1 = arith.constant 0 : i32
    return %c0_i32, %c0_i32_0 : i32, i32
  }
  func.func @transform_5(%arg0: i32, %arg1: i32) -> (i32, i32) {
    %c0_i32 = arith.constant 0 : i32
    %c0_i32_0 = arith.constant 0 : i32
    %c0_i32_1 = arith.constant 0 : i32
    return %c0_i32, %c0_i32_0 : i32, i32
  }
  func.func @transform_6(%arg0: i32, %arg1: i32) -> (i32, i32) {
    %c0_i32 = arith.constant 0 : i32
    %c0_i32_0 = arith.constant 0 : i32
    %c0_i32_1 = arith.constant 0 : i32
    return %c0_i32, %c0_i32_0 : i32, i32
  }
  func.func @transform_7(%arg0: i32, %arg1: i32) -> (i32, i32) {
    %c0_i32 = arith.constant 0 : i32
    %c0_i32_0 = arith.constant 0 : i32
    %c0_i32_1 = arith.constant 0 : i32
    return %c0_i32, %c0_i32_0 : i32, i32
  }
  func.func @transform_8(%arg0: i32, %arg1: i32) -> (i32, i32) {
    %c0_i32 = arith.constant 0 : i32
    %c0_i32_0 = arith.constant 0 : i32
    %c0_i32_1 = arith.constant 0 : i32
    return %c0_i32, %c0_i32_0 : i32, i32
  }
  func.func @transform_9(%arg0: i32, %arg1: i32) -> (i32, i32) {
    %c0_i32 = arith.constant 0 : i32
    %c0_i32_0 = arith.constant 0 : i32
    %c0_i32_1 = arith.constant 0 : i32
    return %c0_i32, %c0_i32_0 : i32, i32
  }
  func.func @transform_10(%arg0: i32, %arg1: i32) -> (i32, i32) {
    %c0_i32 = arith.constant 0 : i32
    %c0_i32_0 = arith.constant 0 : i32
    return %c0_i32, %arg1 : i32, i32
  }
  func.func @transform_11(%arg0: i32, %arg1: i32) -> (i32, i32) {
    %c0_i32 = arith.constant 0 : i32
    %c0_i32_0 = arith.constant 0 : i32
    return %arg1, %c0_i32 : i32, i32
  }
  func.func @transform_12(%arg0: i32, %arg1: i32) -> (i32, i32, i32) {
    %c0_i32 = arith.constant 0 : i32
    %c0_i32_0 = arith.constant 0 : i32
    %c0_i32_1 = arith.constant 0 : i32
    return %arg0, %c0_i32, %c0_i32_0 : i32, i32, i32
  }
}

</mosaic_0001>

<bundles_post_ra>
// kernel: tpu_custom_call.1
= control target key start
LH: loop header
LB: loop body
LE: loop exit
PB: predicated region body
PF: predicated region fallthrough
CT: control target
= control target key end

     0   :  { %s3428_s0 = inlined_call_operand.hbm [shape: f32[2,8,128], index: 0, kind: input, shape index: {}]   ;;  %s3429_s1 = inlined_call_operand.hbm [shape: f32[2,8,128], index: 1, kind: input, shape index: {}]   ;;  %s3430_s2 = inlined_call_operand.vmem [shape: f32[1,128], index: 2, kind: input, shape index: {}]   ;;  %s3431_s3 = inlined_call_operand.hbm [shape: bf16[128,128], index: 3, kind: input, shape index: {}]   ;;  %s3432_s4 = inlined_call_operand.hbm [shape: bf16[128,128], index: 4, kind: input, shape index: {}]   ;;  %s3433_s5 = inlined_call_operand.vmem [shape: f32[1,128], index: 5, kind: input, shape index: {}]   ;;  %s3434_s6 = inlined_call_operand.vmem [shape: f32[1,128], index: 6, kind: input, shape index: {}]   ;;  %s3435_s7 = inlined_call_operand.hbm [shape: bf16[128,384], index: 7, kind: input, shape index: {}]   ;;  %s3436_s8 = inlined_call_operand.hbm [shape: bf16[128,128], index: 8, kind: input, shape index: {}]   ;;  %s3437_s9 = inlined_call_operand.vmem [shape: f32[1,128], index: 9, kind: input, shape index: {}]   ;;  %s3438_s10 = inlined_call_operand.hbm [shape: bf16[128,512], index: 10, kind: input, shape index: {}]   ;;  %s3439_s11 = inlined_call_operand.hbm [shape: bf16[256,128], index: 11, kind: input, shape index: {}]   ;;  %s3440_s12 = inlined_call_operand.hbm [shape: f32[2,8,128], index: 12, kind: output, shape index: {}]  }
   0x1   :  { %3459 = sst [smem:[#allocation29_spill]] %s3428_s0 }
   0x2   :  { %3460 = sst [smem:[#allocation30_spill]] %s3429_s1 }
   0x3   :  { %3461 = sst [smem:[#allocation31_spill]] %s3430_s2 }
   0x4   :  { %3462 = sst [smem:[#allocation32_spill]] %s3431_s3 }
   0x5   :  { %3463 = sst [smem:[#allocation33_spill]] %s3432_s4 }
   0x6   :  { %3464 = sst [smem:[#allocation34_spill]] %s3433_s5 }
   0x7   :  { %3465 = sst [smem:[#allocation35_spill]] %s3434_s6 }
   0x8   :  { %3466 = sst [smem:[#allocation36_spill]] %s3437_s9 }
   0x9   :  { %3467 = sst [smem:[#allocation37_spill]] %s3438_s10 }
   0xa   :  { %3468 = sst [smem:[#allocation38_spill]] %s3440_s12 }
   0xb   :  { %17 = vsyncpa [#allocation6], 0 }
   0xc   :  { %18 = vsyncpa [#allocation9], 0 }
   0xd   :  { %19 = vsyncpa [#allocation12], 0 }
   0xe   :  { %20 = vsyncpa [#allocation15], 0 }
   0xf   :  { %21 = vsyncpa [#allocation7], 0  ;;  %s2952_s21 = smov 0   ;;  %s2954_s22 = smov 0  }
  0x10   :  { %s2956_s23 = smov 0   ;;  %s2958_s24 = smov 0  }
  0x11   :  { %s2960_s25 = smov 0   ;;  %s2962_s26 = smov 0  }
  0x12 LB: > { %3469 = sst [smem:[#allocation25_spill]] %s2853_s24  ;;  %s2983_s27 = sadd.s32 4294967295, %s2861_s26   ;;  %s2861_s26 = sphi %s2962_s26, %s27_s26   ;;  %s2857_s25 = sphi %s2960_s25, %s3518_s25   ;;  %s2853_s24 = sphi %s2958_s24, %s3517_s24   ;;  %s2849_s23 = sphi %s2956_s23, %s3516_s23   ;;  %s2845_s22 = sphi %s2954_s22, %s3515_s22   ;;  %s2841_s21 = sphi %s2952_s21, %s3514_s21  }
  0x13   : > { %3470 = sst [smem:[#allocation26_spill]] %s2861_s26  ;;  %p1994_p0 = scmp.ge.s32.totalorder %s2861_s26, 1 }
  0x14   : > { %p3442_p1 = scmp.eq.s32.totalorder %s2983_s27, 0  ;;  %p342_p2 = scmp.lt.s32.totalorder %s2861_s26, 3 }
  0x15   : > { %s2863_s29 = smov [#allocation5]   ;;  %s2864_s14 = smov [#allocation8]  }
  0x16   : > { %p2988_p3 = pnand %p1994_p0, %p342_p2  ;;  %s357_s30 = sshll.u32 %s2863_s29, 4  ;;  %s358_s30 = int_to_ptr.vmem [resolvable:$true] %s357_s30 }
  0x17   : > { %s373_s15 = sshll.u32 %s2864_s14, 4  ;;  %s3473_s0 = sld [smem:[#allocation29_spill]]  ;;  %s3000_s15 = int_to_ptr.vmem [resolvable:$true] %s373_s15 }
  0x18   : > { %s3471_s28 = scalar_select %p2988_p3, 1, 0 }
  0x19   : > { %p2310_p4 = pneg %p2988_p3 }
  0x1b   : > { %p2996_p5 = pnand %p2310_p4, %p3442_p1 }
  0x1d   : > { %s3472_s13 = scalar_select %p2996_p5, 1, 0 }
  0x1e   : > { %s2537_s18 = scalar_lea.hbm %s3473_s0, 256  ;;  %p3010_p7 = pneg %p2996_p5 }
  0x1f   : > { %p2538_p6 = scmp.ne.s32.totalorder %s3473_s0, %s2537_s18  ;;  %p2544_p10 = scmp.lt.u32.totalorder %s2537_s18, %s3473_s0 }
  0x21   : > { %p2540_p8 = pnand %p3010_p7, %p2538_p6 }
  0x23   : > { %p2541_p9 = pneg %p2540_p8 }
  0x25   : > { %p2546_p11 = pnand %p2544_p10, %p2541_p9 }
  0x27   : > { %2549 = shalt.err (!%p2546_p11)
}
  0x28   : > { %s2550_s16 = scalar_lea.vmem %s358_s30, 256  ;;  %p2558_p2 = scmp.lt.s32.totalorder %s358_s30, %s358_s30 }
  0x29   : > { %p2551_p12 = scmp.ne.s32.totalorder %s358_s30, %s2550_s16  ;;  %p2559_p4 = scmp.lt.s32.totalorder %s2550_s16, %s2550_s16 }
  0x2b   : > { %p2553_p13 = pnand %p2551_p12, %p3010_p7  ;;  %p2560_p1 = por %p2559_p4, %p2558_p2 }
  0x2d   : > { %p2554_p0 = pneg %p2553_p13 }
  0x2f   : > { %p2561_p3 = pnand %p2560_p1, %p2554_p0 }
  0x31   : > { %2564 = shalt.err (!%p2561_p3)
}
  0x32   : > { %s3448_s17 = smov 128   ;;  %s3450_s19 = smov 8  }
  0x33   : > { %2313 = dma.hbm_to_vmem [thread:$0]  (!%p2996_p5), %s3473_s0, 256, %s358_s30, [#allocation6], %s3448_s17, %s3448_s17, %s3450_s19  }
  0x34   : > { %s3475_s1 = sld [smem:[#allocation30_spill]] }
  0x3a   : > { %s2565_s9 = scalar_lea.hbm %s3475_s1, 256 }
  0x3b   : > { %p2566_p1 = scmp.ne.s32.totalorder %s3475_s1, %s2565_s9  ;;  %p2572_p8 = scmp.lt.u32.totalorder %s2565_s9, %s3475_s1 }
  0x3d   : > { %p2568_p3 = pnand %p2566_p1, %p3010_p7 }
  0x3f   : > { %p2569_p6 = pneg %p2568_p3 }
  0x41   : > { %p2574_p9 = pnand %p2572_p8, %p2569_p6 }
  0x43   : > { %2577 = shalt.err (!%p2574_p9)
}
  0x44   : > { %s2578_s30 = scalar_lea.vmem %s3000_s15, 256  ;;  %p2586_p13 = scmp.lt.s32.totalorder %s3000_s15, %s3000_s15 }
  0x45   : > { %p2579_p10 = scmp.ne.s32.totalorder %s3000_s15, %s2578_s30  ;;  %p2587_p0 = scmp.lt.s32.totalorder %s2578_s30, %s2578_s30 }
  0x47   : > { %p2581_p11 = pnand %p2579_p10, %p3010_p7  ;;  %p2588_p2 = por %p2587_p0, %p2586_p13 }
  0x49   : > { %p2582_p12 = pneg %p2581_p11 }
  0x4b   : > { %p2589_p4 = pnand %p2588_p2, %p2582_p12 }
  0x4d   : > { %2592 = shalt.err (!%p2589_p4)
}
  0x4e   : > { %2316 = dma.hbm_to_vmem [thread:$0]  (!%p2996_p5), %s3475_s1, 256, %s3000_s15, [#allocation9], %s3448_s17, %s3448_s17, %s3450_s19  }
  0x4f   : > { %s2867_s6 = smov [#allocation11]   ;;  %s3476_s4 = sld [smem:[#allocation33_spill]] }
  0x50   : > { %s402_s9 = sshll.u32 %s2867_s6, 4  ;;  %s403_s9 = int_to_ptr.vmem [resolvable:$true] %s402_s9 }
  0x55   : > { %s2593_s20 = scalar_lea.hbm %s3476_s4, 1024 }
  0x56   : > { %p2594_p1 = scmp.ne.s32.totalorder %s3476_s4, %s2593_s20  ;;  %p2600_p8 = scmp.lt.u32.totalorder %s2593_s20, %s3476_s4 }
  0x58   : > { %p2596_p3 = pnand %p2594_p1, %p3010_p7 }
  0x5a   : > { %p2597_p6 = pneg %p2596_p3 }
  0x5c   : > { %p2602_p9 = pnand %p2600_p8, %p2597_p6 }
  0x5e   : > { %2605 = shalt.err (!%p2602_p9)
}
  0x5f   : > { %s2606_s15 = scalar_lea.vmem %s403_s9, 1024  ;;  %p2614_p13 = scmp.lt.s32.totalorder %s403_s9, %s403_s9 }
  0x60   : > { %p2607_p10 = scmp.ne.s32.totalorder %s403_s9, %s2606_s15  ;;  %p2615_p0 = scmp.lt.s32.totalorder %s2606_s15, %s2606_s15 }
  0x62   : > { %p2609_p11 = pnand %p2607_p10, %p3010_p7  ;;  %p2616_p2 = por %p2615_p0, %p2614_p13 }
  0x64   : > { %p2610_p12 = pneg %p2609_p11 }
  0x66   : > { %p2617_p4 = pnand %p2616_p2, %p2610_p12 }
  0x68   : > { %2620 = shalt.err (!%p2617_p4)
}
  0x69   : > { %s3444_s2 = smov 64   ;;  %s3446_s0 = smov 4  }
  0x6a   : > { %2322 = dma.hbm_to_vmem [thread:$0]  (!%p2996_p5), %s3476_s4, 1024, %s403_s9, [#allocation12], %s3444_s2, %s3444_s2, %s3446_s0  }
  0x6b   : > { %s36_s12 = sadd.s32 1, %s2857_s25  ;;  %s266_s18 = sadd.s32 1, %s2849_s23 }
  0x6c   : > { %p37_p1 = scmp.ge.s32.totalorder %s36_s12, 2  ;;  %p273_p3 = scmp.ne.s32.totalorder %s2849_s23, %s2845_s22 }
  0x6d   : > { %p274_p6 = scmp.eq.s32.totalorder %s2861_s26, 0  ;;  %p279_p9 = scmp.ne.s32.totalorder %s2845_s22, %s2841_s21 }
  0x6e   : > { %s3520_s12 = smov (%p37_p1, %s36_s12), 0  ;;  %p2342_p10 = scmp.lt.s32.totalorder %s2861_s26, 2 }
  0x6f   : > { %3477 = sst [smem:[#allocation27_spill]] %s3520_s12  ;;  %p3083_p8 = por %p274_p6, %p273_p3 }
  0x70   : > { %s263_s14 = ssub.s32 %s2857_s25, %s3520_s12  ;;  %p3479_p12 = scmp.eq.s32.totalorder %s2983_s27, 0 }
  0x71   : > { %p264_p11 = scmp.eq.s32.totalorder %s263_s14, 0  ;;  %s451_s16 = sand.u32 1, %s2861_s26  }
  0x72   : > { %p3094_p13 = por %p3479_p12, %p279_p9  ;;  %s3449_s30 = sand.u32 1, %s2849_s23  }
  0x73   : > { %s3101_s15 = scalar_select %p264_p11, %s2849_s23, %s266_s18  }
  0x74   : > { %s3480_s9 = scalar_select %p3094_p13, 1, 0 }
  0x75   : > { %3481 = sst [smem:[#allocation28_spill]] %s3101_s15  ;;  %s2002_s5 = sshll.u32 %s3449_s30, 7 }
  0x76   : > { %s2103_s6 = sshll.u32 %s2857_s25, 7  ;;  %s3482_s10 = sld [smem:[#allocation37_spill]] }
  0x77   : > { %s455_s21 = scalar_lea.vmem [#allocation16], %s2002_s5  ;;  %p3115_p0 = pnand %p2342_p10, %p3083_p8 }
  0x78   : > { %s462_s14 = sshll.u32 %s455_s21, 4  ;;  %s2870_s30 = smov [#allocation10]   ;;  %s3111_s14 = int_to_ptr.vmem [resolvable:$true] %s462_s14 }
  0x79   : > { %s3483_s18 = scalar_select %p3115_p0, 1, 0 }
  0x7a   : > { %s3119_s19 = sshll.u32 %s2870_s30, 4  ;;  %s3121_s2 = scalar_lea.sflag [#allocation6], %s451_s16  ;;  %s390_s19 = int_to_ptr.vmem [resolvable:$true] %s3119_s19 }
  0x7b   : > { %p3455_p4 = pneg %p3115_p0 }
  0x7c   : > { %s3109_s17 = scalar_lea.hbm %s3482_s10, %s2103_s6  ;;  %s2626_s6 = scalar_lea.hbm %s3482_s10, 4096 }
  0x7d   : > { %s2621_s0 = scalar_lea.hbm %s3109_s17, 2048  ;;  %p2627_p6 = scmp.lt.u32.totalorder %s3109_s17, %s3482_s10 }
  0x7e   : > { %p2622_p2 = scmp.ne.s32.totalorder %s3109_s17, %s2621_s0  ;;  %p2628_p8 = scmp.lt.u32.totalorder %s2626_s6, %s2621_s0 }
  0x7f   : > { %p2630_p10 = scmp.lt.u32.totalorder %s2621_s0, %s3109_s17 }
  0x80   : > { %p2624_p1 = pnand %p3455_p4, %p2622_p2  ;;  %p2629_p9 = por %p2628_p8, %p2627_p6 }
  0x82   : > { %p2625_p3 = pneg %p2624_p1  ;;  %p2631_p11 = por %p2630_p10, %p2629_p9 }
  0x84   : > { %p2632_p12 = pnand %p2631_p11, %p2625_p3 }
  0x86   : > { %2635 = shalt.err (!%p2632_p12)
}
  0x87   : > { %s2636_s16 = scalar_lea.vmem %s3111_s14, 2048  ;;  %s2871_s30 = smov [#allocation16]  }
  0x88   : > { %p2637_p2 = scmp.ne.s32.totalorder %s3111_s14, %s2636_s16  ;;  %s2641_s20 = sshll.u32 %s2871_s30, 4  ;;  %s2642_s20 = int_to_ptr.vmem [resolvable:$false] %s2641_s20 }
  0x89   : > { %s2643_s1 = scalar_lea.vmem %s2642_s20, 4096  ;;  %p2644_p5 = scmp.lt.s32.totalorder %s3111_s14, %s2642_s20 }
  0x8a   : > { %p2639_p1 = pnand %p2637_p2, %p3455_p4  ;;  %p2645_p6 = scmp.lt.s32.totalorder %s2643_s1, %s2636_s16 }
  0x8c   : > { %p2640_p13 = pneg %p2639_p1  ;;  %p2646_p8 = por %p2645_p6, %p2644_p5 }
  0x8e   : > { %p2647_p9 = pnand %p2646_p8, %p2640_p13 }
  0x90   : > { %2650 = shalt.err (!%p2647_p9)
}
  0x91   : > { %s2872_s0 = smov 256   ;;  %s3484_s5 = smov 8  }
  0x92   : > { %s3485_s6 = smov 128   ;;  %s3486_s3 = sld [smem:[#allocation32_spill]] }
  0x93   : > { %2332 = dma.hbm_to_vmem [thread:$0]  (!%p3115_p0), %s3109_s17, 2048, %s3111_s14, %s3121_s2, %s2872_s0, %s3485_s6, %s3484_s5  }
  0x98   : > { %s2651_s20 = scalar_lea.hbm %s3486_s3, 1024 }
  0x99   : > { %p2652_p5 = scmp.ne.s32.totalorder %s3486_s3, %s2651_s20  ;;  %p2658_p10 = scmp.lt.u32.totalorder %s2651_s20, %s3486_s3 }
  0x9b   : > { %p2654_p13 = pnand %p2652_p5, %p3010_p7 }
  0x9d   : > { %p2655_p3 = pneg %p2654_p13 }
  0x9f   : > { %p2660_p11 = pnand %p2658_p10, %p2655_p3 }
  0xa1   : > { %2663 = shalt.err (!%p2660_p11)
}
  0xa2   : > { %s2664_s12 = scalar_lea.vmem %s390_s19, 1024  ;;  %p2672_p6 = scmp.lt.s32.totalorder %s390_s19, %s390_s19 }
  0xa3   : > { %p2665_p12 = scmp.ne.s32.totalorder %s390_s19, %s2664_s12  ;;  %p2673_p8 = scmp.lt.s32.totalorder %s2664_s12, %s2664_s12 }
  0xa5   : > { %p2667_p2 = pnand %p2665_p12, %p3010_p7  ;;  %p2674_p9 = por %p2673_p8, %p2672_p6 }
  0xa7   : > { %p2668_p1 = pneg %p2667_p2 }
  0xa9   : > { %p2675_p4 = pnand %p2674_p9, %p2668_p1 }
  0xab   : > { %2678 = shalt.err (!%p2675_p4)
}
  0xac   : > { %p3487_p5 = scmp.ne.s32.totalorder %s3472_s13, 0  ;;  %s3488_s17 = smov 4  }
  0xad   : > { %s3489_s14 = smov 64   ;;  %s2873_s0 = smov [#allocation13]  }
  0xae   : > { %2319 = dma.hbm_to_vmem [thread:$0]  (!%p3487_p5), %s3486_s3, 1024, %s390_s19, [#allocation9], %s3489_s14, %s3489_s14, %s3488_s17  }
  0xaf   : > { %s421_s5 = sshll.u32 %s2873_s0, 4  ;;  %s2679_s12 = scalar_lea.hbm %s3435_s7, 3072  ;;  %s422_s5 = int_to_ptr.vmem [resolvable:$true] %s421_s5 }
  0xb0   : > { %p2680_p4 = scmp.ne.s32.totalorder %s3435_s7, %s2679_s12  ;;  %p2686_p10 = scmp.lt.u32.totalorder %s2679_s12, %s3435_s7 }
  0xb2   : > { %p2682_p13 = pnand %p2680_p4, %p3010_p7 }
  0xb4   : > { %p2683_p3 = pneg %p2682_p13 }
  0xb6   : > { %p2688_p11 = pnand %p2686_p10, %p2683_p3 }
  0xb8   : > { %2691 = shalt.err (!%p2688_p11)
}
  0xb9   : > { %s2692_s19 = scalar_lea.vmem %s422_s5, 3072  ;;  %p2700_p6 = scmp.lt.s32.totalorder %s422_s5, %s422_s5 }
  0xba   : > { %p2693_p12 = scmp.ne.s32.totalorder %s422_s5, %s2692_s19  ;;  %p2701_p8 = scmp.lt.s32.totalorder %s2692_s19, %s2692_s19 }
  0xbc   : > { %p2695_p2 = pnand %p2693_p12, %p3010_p7  ;;  %p2702_p9 = por %p2701_p8, %p2700_p6 }
  0xbe   : > { %p2696_p1 = pneg %p2695_p2 }
  0xc0   : > { %p2703_p0 = pnand %p2702_p9, %p2696_p1 }
  0xc2   : > { %2706 = shalt.err (!%p2703_p0)
}
  0xc3   : > { %s2874_s4 = smov 192   ;;  %s2875_s10 = smov 12  }
  0xc4   : > { %2325 = dma.hbm_to_vmem [thread:$0]  (!%p3487_p5), %s3435_s7, 3072, %s422_s5, [#allocation12], %s2874_s4, %s2874_s4, %s2875_s10  }
  0xc5   : > { %s3490_s21 = sand.u32 1, %s2849_s23   ;;  %s2876_s30 = smov [#allocation14]  }
  0xc6   : > { %s2005_s12 = sshll.u32 %s3490_s21, 6  ;;  %s434_s20 = sshll.u32 %s2876_s30, 4  ;;  %s435_s20 = int_to_ptr.vmem [resolvable:$true] %s434_s20 }
  0xc7   : > { %s2104_s16 = sshll.u32 %s2857_s25, 10  ;;  %s2707_s3 = scalar_lea.hbm %s3436_s8, 1024 }
  0xc8   : > { %p2708_p0 = scmp.ne.s32.totalorder %s3436_s8, %s2707_s3  ;;  %p2714_p3 = scmp.lt.u32.totalorder %s2707_s3, %s3436_s8 }
  0xca   : > { %p2710_p4 = pnand %p2708_p0, %p3010_p7 }
  0xcc   : > { %p2711_p13 = pneg %p2710_p4 }
  0xce   : > { %p2716_p10 = pnand %p2714_p3, %p2711_p13 }
  0xd0   : > { %2719 = shalt.err (!%p2716_p10)
}
  0xd1   : > { %s2720_s5 = scalar_lea.vmem %s435_s20, 1024  ;;  %p2728_p1 = scmp.lt.s32.totalorder %s435_s20, %s435_s20 }
  0xd2   : > { %p2721_p11 = scmp.ne.s32.totalorder %s435_s20, %s2720_s5  ;;  %p2729_p6 = scmp.lt.s32.totalorder %s2720_s5, %s2720_s5 }
  0xd4   : > { %p2723_p12 = pnand %p2721_p11, %p3010_p7  ;;  %p2730_p8 = por %p2729_p6, %p2728_p1 }
  0xd6   : > { %p2724_p2 = pneg %p2723_p12 }
  0xd8   : > { %p2731_p9 = pnand %p2730_p8, %p2724_p2 }
  0xda   : > { %2734 = shalt.err (!%p2731_p9)
}
  0xdb   : > { %2328 = dma.hbm_to_vmem [thread:$0]  (!%p3487_p5), %s3436_s8, 1024, %s435_s20, [#allocation15], %s3489_s14, %s3489_s14, %s3488_s17  }
  0xdc   : > { %s3218_s29 = scalar_lea.hbm %s3439_s11, %s2104_s16  ;;  %s476_s4 = scalar_lea.vmem [#allocation17], %s2005_s12 }
  0xdd   : > { %s483_s10 = sshll.u32 %s476_s4, 4  ;;  %s2735_s13 = scalar_lea.hbm %s3218_s29, 1024  ;;  %s3220_s10 = int_to_ptr.vmem [resolvable:$true] %s483_s10 }
  0xde   : > { %p2736_p7 = scmp.ne.s32.totalorder %s3218_s29, %s2735_s13  ;;  %p3491_p0 = scmp.ne.s32.totalorder %s3483_s18, 0 }
  0xdf   : > { %s2740_s30 = scalar_lea.hbm %s3439_s11, 2048  ;;  %p2741_p5 = scmp.lt.u32.totalorder %s3218_s29, %s3439_s11 }
  0xe0   : > { %p3492_p4 = pneg %p3491_p0  ;;  %p2742_p10 = scmp.lt.u32.totalorder %s2740_s30, %s2735_s13 }
  0xe1   : > { %p2744_p12 = scmp.lt.u32.totalorder %s2735_s13, %s3218_s29 }
  0xe2   : > { %p2738_p13 = pnand %p2736_p7, %p3492_p4  ;;  %p2743_p11 = por %p2742_p10, %p2741_p5 }
  0xe4   : > { %p2739_p3 = pneg %p2738_p13  ;;  %p2745_p2 = por %p2744_p12, %p2743_p11 }
  0xe6   : > { %p2746_p1 = pnand %p2745_p2, %p2739_p3 }
  0xe8   : > { %2749 = shalt.err (!%p2746_p1)
}
  0xe9   : > { %s2750_s12 = scalar_lea.vmem %s3220_s10, 1024  ;;  %p3493_p8 = pmov %p3492_p4 }
  0xea   : > { %p2751_p6 = scmp.ne.s32.totalorder %s3220_s10, %s2750_s12  ;;  %s2877_s1 = smov [#allocation17]  }
  0xeb   : > { %s2755_s19 = sshll.u32 %s2877_s1, 4  ;;  %s2756_s19 = int_to_ptr.vmem [resolvable:$false] %s2755_s19 }
  0xec   : > { %p2753_p9 = pnand %p2751_p6, %p3493_p8  ;;  %s2757_s0 = scalar_lea.vmem %s2756_s19, 2048 }
  0xed   : > { %p2758_p4 = scmp.lt.s32.totalorder %s3220_s10, %s2756_s19  ;;  %p2759_p13 = scmp.lt.s32.totalorder %s2757_s0, %s2750_s12 }
  0xee   : > { %p2754_p7 = pneg %p2753_p9 }
  0xef   : > { %p2760_p5 = por %p2759_p13, %p2758_p4 }
  0xf1   : > { %p2761_p10 = pnand %p2760_p5, %p2754_p7 }
  0xf3   : > { %2764 = shalt.err (!%p2761_p10)
}
  0xf4   : > { %2335 = dma.hbm_to_vmem [thread:$0]  (!%p3491_p0), %s3218_s29, 1024, %s3220_s10, %s3121_s2, %s3489_s14, %s3489_s14, %s3488_s17  }
  0xf5   : > { %p3494_p3 = scmp.ne.s32.totalorder %s3471_s28, 0 }
  0xf6   : > { %p3495_p11 = scmp.eq.s32.totalorder (!%p3494_p3), %s2983_s27, 0 }
  0xf7   : > { %495 = sbr.rel (%p3494_p3) target bundleno = 2743 (0xab7), region = 68 }
  0xfe   : > { %2816 = dma.done.wait (%p3495_p11), [#allocation6], 256   ;;  %p3496_p12 = pmov %p3495_p11 }
  0xff   : > { %p3497_p2 = pmov %p3495_p11 }
 0x100   : > { %2818 = vsyncadd (%p3496_p12), [#allocation6], 4294967040 }
 0x101   : > { %2820 = dma.done.wait (%p3497_p2), [#allocation9], 1280   ;;  %p3498_p1 = pmov %p3497_p2 }
 0x103   : > { %2822 = vsyncadd (%p3498_p1), [#allocation9], 4294966016  ;;  %p3499_p6 = pmov %p3498_p1 }
 0x104   : > { %p3500_p0 = pmov %p3498_p1 }
 0x105   : > { %2824 = dma.done.wait (%p3499_p6), [#allocation12], 4096  }
 0x106   : > { %2826 = vsyncadd (%p3500_p0), [#allocation12], 4294963200  ;;  %p3501_p8 = pmov %p3500_p0 }
 0x107   : > { %p3502_p9 = pmov %p3500_p0 }
 0x108   : > { %2828 = dma.done.wait (%p3501_p8), [#allocation15], 1024  }
 0x109   : > { %2830 = vsyncadd (%p3502_p9), [#allocation15], 4294966272  ;;  %s521_s28 = sand.u32 1, %s2983_s27   ;;  %s523_s18 = sand.u32 1, %s2845_s22  }
 0x10a   : > { %s2015_s2 = sshll.u32 %s523_s18, 7  ;;  %s522_s17 = scalar_lea.sflag [#allocation6], %s521_s28 }
 0x10b   : > { %s3269_s14 = scalar_lea.vmem [#allocation16], %s2015_s2  ;;  %p3503_p7 = scmp.ne.s32.totalorder %s3480_s9, 0 }
 0x10d   : > { %2832 = dma.done.wait (%p3503_p7), %s522_s17, 3072  }
 0x10e   : > { %2834 = vsyncadd (%p3503_p7), %s522_s17, 4294964224  ;;  %s2016_s5 = sshll.u32 %s523_s18, 6  ;;  %s3504_s3 = sld [smem:[#allocation25_spill]] }
 0x10f   : > { %s3275_s24 = scalar_lea.vmem [#allocation17], %s2016_s5 }
 0x114   : > { %p2017_p4 = scmp.ne.s32.totalorder %s3504_s3, 0 }
 0x115   : > { %v587_v0 = vld [vmem:[#allocation8] sm:$0xff] (!%p2017_p4)  ;;  %v588_v1 = vld [vmem:[#allocation8 + $0x8] sm:$0xff] (!%p2017_p4)  ;;  %v2878_v3 = vmov (!%p2017_p4), 0.0   ;;  %v2421_v4 = vld [vmem:[#allocation11] sm:$0xff] (!%p2017_p4)   ;;  %vm2879_vm0 = vmmov (!%p2017_p4), 0   ;;  %s3505_s15 = sld [smem:[#allocation31_spill]] (!%p2017_p4) }
 0x116   : > { %584 = sbr.rel (%p2017_p4) target bundleno = 2205 (0x89d), region = 104  ;;  %v590_v2 = vmul.f32 (!%p2017_p4), %v587_v0, %v587_v0  ;;  %2158 = vmatprep.subr.bf16.mxu1 (!%p2017_p4), %v2878_v3  ;;  %1555 = vst [vmem:[#allocation4] sm:$0xff] (!%p2017_p4), %v2878_v3  ;;  %1556 = vst [vmem:[#allocation4 + $0x8] sm:$0xff] (!%p2017_p4), %v2878_v3  ;;  %v2422_v5 = vld [vmem:[#allocation11 + $0x8] sm:$0xff] (!%p2017_p4)   ;;  %v591_v6 = vmul.f32 (!%p2017_p4), %v588_v1, %v588_v1  ;;  %v2423_v7 = vld [vmem:[#allocation11 + $0x10] sm:$0xff] (!%p2017_p4)   ;;  %2174 = vmatprep.mubr.msk.bf16.mxu1 (!%p2017_p4), %vm2879_vm0, %v2878_v3  ;;  %s3506_s10 = sld [smem:[#allocation34_spill]] (!%p2017_p4) }
 0x117   : > { %2159 = vmatpush3.bf16.msra.mxu1 (!%p2017_p4), %v2421_v4  ;;  %v2424_v8 = vld [vmem:[#allocation11 + $0x18] sm:$0xff] (!%p2017_p4)   ;;  %v2425_v9 = vld [vmem:[#allocation11 + $0x20] sm:$0xff] (!%p2017_p4)   ;;  %v2426_v10 = vld [vmem:[#allocation11 + $0x28] sm:$0xff] (!%p2017_p4)   ;;  %s3507_s21 = sld [smem:[#allocation35_spill]] (!%p2017_p4)  ;;  %vm1251_vm2 = vcmask (!%p2017_p4), 64512   ;;  %s3508_s16 = sld [smem:[#allocation36_spill]] (!%p2017_p4) }
 0x118   : > { %592 = vadd.xlane.f32.xlu0 (!%p2017_p4), %v590_v2  ;;  %2160 = vmatprep.subr.bf16.mxu1 (!%p2017_p4), %v2878_v3  ;;  %v2427_v11 = vld [vmem:[#allocation11 + $0x30] sm:$0xff] (!%p2017_p4)   ;;  %v2428_v12 = vld [vmem:[#allocation11 + $0x38] sm:$0xff] (!%p2017_p4)   ;;  %v2429_v26 = vld [vmem:[#allocation10] sm:$0xff] (!%p2017_p4)  }
 0x119   : > { %v2430_v28 = vld [vmem:[#allocation10 + $0x8] sm:$0xff] (!%p2017_p4)   ;;  %v2431_v29 = vld [vmem:[#allocation10 + $0x10] sm:$0xff] (!%p2017_p4)   ;;  %v2432_v30 = vld [vmem:[#allocation10 + $0x18] sm:$0xff] (!%p2017_p4)  }
 0x11a   : > { %v2433_v31 = vld [vmem:[#allocation10 + $0x20] sm:$0xff] (!%p2017_p4)   ;;  %v2434_v32 = vld [vmem:[#allocation10 + $0x28] sm:$0xff] (!%p2017_p4)   ;;  %v2435_v33 = vld [vmem:[#allocation10 + $0x30] sm:$0xff] (!%p2017_p4)  }
 0x11b   : > { %2161 = vmatpush3.bf16.msra.mxu1 (!%p2017_p4), %v2422_v5  ;;  %v2018_v20 = vld [vmem:[%s3505_s15] ss:$0 sm:$0xff] (!%p2017_p4)  ;;  %v2436_v34 = vld [vmem:[#allocation10 + $0x38] sm:$0xff] (!%p2017_p4)   ;;  %v585_v35 = vld [vmem:[#allocation5] sm:$0xff] (!%p2017_p4) }
 0x11c   : > { %594 = vadd.xlane.f32.xlu0 (!%p2017_p4), %v591_v6  ;;  %2162 = vmatprep.subr.bf16.mxu1 (!%p2017_p4), %v2878_v3  ;;  %v586_v36 = vld [vmem:[#allocation5 + $0x8] sm:$0xff] (!%p2017_p4)  ;;  %v2437_v38 = vld [vmem:[#allocation13 + $0x4] ss:$12 sps:$4 sm:$0xff] (!%p2017_p4)   ;;  %v2445_v59 = vld [vmem:[#allocation13 + $0x34] ss:$12 sps:$4 sm:$0xff] (!%p2017_p4)  }
 0x11d   : > { %v613_v37 = vpack.c.bf16 %v586_v36, %v585_v35  ;;  %v2439_v39 = vld [vmem:[#allocation13] ss:$12 sps:$4 sm:$0xff]   ;;  %v2440_v40 = vld [vmem:[#allocation13 + $0x8] ss:$12 sps:$4 sm:$0xff]   ;;  %1018 = vmatprep.subr.bf16.mxu0 %v2437_v38  ;;  %v2443_v43 = vld [vmem:[#allocation13 + $0x18] ss:$12 sps:$4 sm:$0xff]  }
 0x11e   : > { %v2441_v41 = vld [vmem:[#allocation13 + $0x1c] ss:$12 sps:$4 sm:$0xff]   ;;  %v2444_v42 = vld [vmem:[#allocation13 + $0x20] ss:$12 sps:$4 sm:$0xff]   ;;  %1019 = vmatpush1.bf16.msra.mxu0 %v2439_v39  ;;  %v2035_v49 = vld [vmem:[%s3506_s10] ss:$0 sm:$0xff] }
 0x11f   : > { %2163 = vmatpush3.bf16.msra.mxu1 %v2423_v7  ;;  %1020 = vmatprep.subr.bf16.mxu0 %v2441_v41  ;;  %v2447_v60 = vld [vmem:[#allocation13 + $0x30] ss:$12 sps:$4 sm:$0xff]   ;;  %v2448_v61 = vld [vmem:[#allocation13 + $0x38] ss:$12 sps:$4 sm:$0xff]   ;;  %v2451_v63 = vld [vmem:[#allocation13 + $0x48] ss:$12 sps:$4 sm:$0xff]  }
 0x120   : > { %2164 = vmatprep.subr.bf16.mxu1 %v2878_v3  ;;  %v2449_v62 = vld [vmem:[#allocation13 + $0x4c] ss:$12 sps:$4 sm:$0xff]   ;;  %v2456_v4 = vld [vmem:[#allocation13 + $0x68] ss:$12 sps:$4 sm:$0xff]  }
 0x121   : > { %v2455_v2 = vld [vmem:[#allocation13 + $0x60] ss:$12 sps:$4 sm:$0xff]   ;;  %v2457_v5 = vld [vmem:[#allocation13 + $0x7c] ss:$12 sps:$4 sm:$0xff]   ;;  %v2459_v6 = vld [vmem:[#allocation13 + $0x78] ss:$12 sps:$4 sm:$0xff]  }
 0x122   : > { %1021 = vmatpush1.bf16.msra.mxu0 %v2443_v43  ;;  %v2460_v7 = vld [vmem:[#allocation13 + $0x80] ss:$12 sps:$4 sm:$0xff]  }
 0x123   : > { %2165 = vmatpush3.bf16.msra.mxu1 %v2424_v8  ;;  %1022 = vmatprep.subr.bf16.mxu0 %v2445_v59  ;;  %v2461_v8 = vld [vmem:[#allocation13 + $0x94] ss:$12 sps:$4 sm:$0xff]  }
 0x124   : > { %2166 = vmatprep.subr.bf16.mxu1 %v2878_v3 }
 0x126   : > { %1023 = vmatpush1.bf16.msra.mxu0 %v2447_v60 }
 0x127   : > { %2167 = vmatpush3.bf16.msra.mxu1 %v2425_v9  ;;  %1024 = vmatprep.subr.bf16.mxu0 %v2449_v62  ;;  %v2880_v9 = vmov 0  }
 0x128   : > { %2168 = vmatprep.subr.bf16.mxu1 %v2878_v3  ;;  %1050 = vmatprep.mubr.bf16.mxu0 %v2880_v9  ;;  %v2475_v9 = vld [vmem:[#allocation14 + $0x30] sm:$0xff]  }
 0x12a   : > { %1025 = vmatpush1.bf16.msra.mxu0 %v2451_v63 }
 0x12b   : > { %2169 = vmatpush3.bf16.msra.mxu1 %v2426_v10  ;;  %v2463_v10 = vld [vmem:[#allocation13 + $0x90] ss:$12 sps:$4 sm:$0xff]  }
 0x12c   : > { %2170 = vmatprep.subr.bf16.mxu1 %v2878_v3 }
 0x12f   : > { %2171 = vmatpush3.bf16.msra.mxu1 %v2427_v11  ;;  %v2464_v11 = vld [vmem:[#allocation13 + $0x98] ss:$12 sps:$4 sm:$0xff]  }
 0x130   : > { %2172 = vmatprep.subr.bf16.mxu1 %v2878_v3 }
 0x133   : > { %2173 = vmatpush3.bf16.msra.mxu1 %v2428_v12  ;;  %v2465_v12 = vld [vmem:[#allocation13 + $0xac] ss:$12 sps:$4 sm:$0xff]  }
 0x134   : > { %2178 = vmatprep.subr.bf16.mxu1 %v2878_v3 }
 0x1a5   : > { %v593_v13 = vpop.xlane.xlu0 %592 }
 0x1a6   : > { %v597_v14 = vmul.f32 0.0078125, %v593_v13  ;;  %v2467_v13 = vld [vmem:[#allocation13 + $0xa8] ss:$12 sps:$4 sm:$0xff]  }
 0x1a8   : > { %v599_v15 = vadd.f32 1e-06, %v597_v14  ;;  %v2468_v14 = vld [vmem:[#allocation13 + $0xb0] ss:$12 sps:$4 sm:$0xff]  }
 0x1a9   : > { %v595_v16 = vpop.xlane.xlu0 %594 }
 0x1aa   : > { %2477 = vrsqrt.f32 %v599_v15  ;;  %v598_v17 = vmul.f32 0.0078125, %v595_v16 }
 0x1ac   : > { %v600_v18 = vadd.f32 1e-06, %v598_v17 }
 0x1ae   : > { %2479 = vrsqrt.f32 %v600_v18 }
 0x1b4   : > { %v2478_v19 = vpop.eup %2477 }
 0x1b5   : > { %v609_v21 = vmul.f32 %v2478_v19, %v2018_v20 }
 0x1b7   : > { %v611_v24 = vmul.f32 %v609_v21, %v587_v0  ;;  %v2452_v0 = vld [vmem:[#allocation13 + $0x50] ss:$12 sps:$4 sm:$0xff]  }
 0x1b8   : > { %v2480_v22 = vpop.eup %2479 }
 0x1b9   : > { %v610_v23 = vmul.f32 %v2480_v22, %v2018_v20  ;;  %v2036_v22 = vld [vmem:[%s3507_s21] ss:$0 sm:$0xff] }
 0x1bb   : > { %v612_v25 = vmul.f32 %v610_v23, %v588_v1  ;;  %v2453_v1 = vld [vmem:[#allocation13 + $0x64] ss:$12 sps:$4 sm:$0xff]  }
 0x1bc   : > { %1026 = vmatprep.subr.bf16.mxu0 %v2453_v1  ;;  %v2469_v1 = vld [vmem:[#allocation14] sm:$0xff]  }
 0x1bd   : > { %v630_v27 = vpack.c.bf16 %v612_v25, %v611_v24  ;;  %1027 = vmatpush1.bf16.msra.mxu0 %v2455_v2 }
 0x1be   : > { %1028 = vmatprep.subr.bf16.mxu0 %v2457_v5  ;;  %v2471_v5 = vld [vmem:[#allocation14 + $0x10] sm:$0xff]  }
 0x1bf   : > { %2175 = vmatmul.mubr.bf16.vlgmr.msra.gmra.mrb[0].mxu1 %v630_v27 }
 0x1c0   : > { %2179 = vmatpush3.bf16.msra.mxu1 %v2429_v26  ;;  %2194 = vmatprep.mubr.msk.bf16.mxu1 %vm2879_vm0, %v2878_v3 }
 0x1c1   : > { %2180 = vmatprep.subr.bf16.mxu1 %v2878_v3  ;;  %1029 = vmatpush1.bf16.msra.mxu0 %v2459_v6  ;;  %v2472_v6 = vld [vmem:[#allocation14 + $0x18] sm:$0xff]  }
 0x1c2   : > { %1030 = vmatprep.subr.bf16.mxu0 %v2461_v8  ;;  %v2474_v8 = vld [vmem:[#allocation14 + $0x28] sm:$0xff]  }
 0x1c4   : > { %2181 = vmatpush3.bf16.msra.mxu1 %v2430_v28 }
 0x1c5   : > { %2182 = vmatprep.subr.bf16.mxu1 %v2878_v3  ;;  %1031 = vmatpush1.bf16.msra.mxu0 %v2463_v10  ;;  %v2476_v10 = vld [vmem:[#allocation14 + $0x38] sm:$0xff]  }
 0x1c6   : > { %1032 = vmatprep.subr.bf16.mxu0 %v2465_v12 }
 0x1c8   : > { %2183 = vmatpush3.bf16.msra.mxu1 %v2431_v29 }
 0x1c9   : > { %2184 = vmatprep.subr.bf16.mxu1 %v2878_v3  ;;  %1033 = vmatpush1.bf16.msra.mxu0 %v2467_v13 }
 0x1ca   : > { %2218 = vmatprep.subr.mxu0 %v2878_v3 }
 0x1cc   : > { %2185 = vmatpush3.bf16.msra.mxu1 %v2432_v30 }
 0x1cd   : > { %2186 = vmatprep.subr.bf16.mxu1 %v2878_v3 }
 0x1d0   : > { %2187 = vmatpush3.bf16.msra.mxu1 %v2433_v31 }
 0x1d1   : > { %2188 = vmatprep.subr.bf16.mxu1 %v2878_v3 }
 0x1d4   : > { %2189 = vmatpush3.bf16.msra.mxu1 %v2434_v32 }
 0x1d5   : > { %2190 = vmatprep.subr.bf16.mxu1 %v2878_v3 }
 0x1d8   : > { %2191 = vmatpush3.bf16.msra.mxu1 %v2435_v33 }
 0x1d9   : > { %2192 = vmatprep.subr.bf16.mxu1 %v2878_v3 }
 0x1dc   : > { %2193 = vmatpush3.bf16.msra.mxu1 %v2436_v34 }
 0x1dd   : > { %2198 = vmatprep.subr.bf16.mxu1 %v2878_v3 }
 0x1df   : > { %2195 = vmatmul.mubr.bf16.vlgmr.msra.gmra.mrb[4].mxu1 %v613_v37  ;;  %v1242_v37 = vlaneseq }
 0x1e0   : > { %2214 = vmatprep.mubr.msk.bf16.mxu1 %vm2879_vm0, %v2878_v3  ;;  %2199 = vmatpush3.bf16.msra.mxu1 %v2440_v40 }
 0x1e1   : > { %2200 = vmatprep.subr.bf16.mxu1 %v2878_v3  ;;  %v1243_v38 = vshrl.u32 %v1242_v37, 7  ;;  %v1245_v39 = vand.u32 127, %v1242_v37 }
 0x1e3   : > { %vm1246_vm1 = vcmp.le.s32.totalorder %v1245_v39, %v1243_v38 }
 0x1e4   : > { %2201 = vmatpush3.bf16.msra.mxu1 %v2444_v42 }
 0x1e5   : > { %2202 = vmatprep.subr.bf16.mxu1 %v2878_v3 }
 0x1e8   : > { %2203 = vmatpush3.bf16.msra.mxu1 %v2448_v61 }
 0x1e9   : > { %2204 = vmatprep.subr.bf16.mxu1 %v2878_v3 }
 0x1ec   : > { %2205 = vmatpush3.bf16.msra.mxu1 %v2452_v0 }
 0x1ed   : > { %2206 = vmatprep.subr.bf16.mxu1 %v2878_v3 }
 0x1f0   : > { %2207 = vmatpush3.bf16.msra.mxu1 %v2456_v4  ;;  %v2470_v4 = vld [vmem:[#allocation14 + $0x8] sm:$0xff]  }
 0x1f1   : > { %2208 = vmatprep.subr.bf16.mxu1 %v2878_v3 }
 0x1f4   : > { %2209 = vmatpush3.bf16.msra.mxu1 %v2460_v7  ;;  %v2473_v7 = vld [vmem:[#allocation14 + $0x20] sm:$0xff]  }
 0x1f5   : > { %2210 = vmatprep.subr.bf16.mxu1 %v2878_v3 }
 0x1f8   : > { %2211 = vmatpush3.bf16.msra.mxu1 %v2464_v11 }
 0x1f9   : > { %2212 = vmatprep.subr.bf16.mxu1 %v2878_v3 }
 0x1fc   : > { %2213 = vmatpush3.bf16.msra.mxu1 %v2468_v14 }
 0x292   : > { %v729_v44 = vpop.f32.mrb[0].mxu1 }
 0x293   : > { %v2176_v45 = vpop.f32.mrb[1].mxu1 }
 0x294   : > { %v732_v46 = vpop.f32.mrb[2].mxu1 }
 0x295   : > { %v2177_v47 = vpop.f32.mrb[3].mxu1 }
 0x2b2   : > { %v818_v48 = vpop.f32.mrb[4].mxu1 }
 0x2b3   : > { %v819_v50 = vadd.f32 %v818_v48, %v729_v44  ;;  %v2196_v51 = vpop.f32.mrb[5].mxu1 }
 0x2b4   : > { %v821_v52 = vpop.f32.mrb[6].mxu1 }
 0x2b5   : > { %v3311_v53 = vadd.f32 %v2035_v49, %v819_v50  ;;  %v822_v54 = vadd.f32 %v821_v52, %v732_v46  ;;  %v2197_v55 = vpop.f32.mrb[7].mxu1 }
 0x2b7   : > { %v3313_v56 = vadd.f32 %v2035_v49, %v822_v54  ;;  %v835_v57 = vmul.f32 %v3311_v53, %v3311_v53 }
 0x2b9   : > { %837 = vadd.xlane.f32.xlu1 %v835_v57  ;;  %v836_v58 = vmul.f32 %v3313_v56, %v3313_v56 }
 0x2bd   : > { %839 = vadd.xlane.f32.xlu1 %v836_v58 }
 0x346   : > { %v838_v15 = vpop.xlane.xlu1 %837 }
 0x347   : > { %v841_v16 = vmul.f32 0.0078125, %v838_v15 }
 0x349   : > { %v843_v17 = vadd.f32 1e-06, %v841_v16 }
 0x34a   : > { %v840_v18 = vpop.xlane.xlu1 %839 }
 0x34b   : > { %2481 = vrsqrt.f32 %v843_v17  ;;  %v842_v19 = vmul.f32 0.0078125, %v840_v18 }
 0x34d   : > { %v844_v20 = vadd.f32 1e-06, %v842_v19 }
 0x34f   : > { %2483 = vrsqrt.f32 %v844_v20 }
 0x355   : > { %v2482_v21 = vpop.eup %2481 }
 0x356   : > { %v853_v23 = vmul.f32 %v2482_v21, %v2036_v22 }
 0x358   : > { %v855_v26 = vmul.f32 %v853_v23, %v3311_v53 }
 0x359   : > { %v2484_v24 = vpop.eup %2483 }
 0x35a   : > { %v854_v25 = vmul.f32 %v2484_v24, %v2036_v22 }
 0x35c   : > { %v856_v27 = vmul.f32 %v854_v25, %v3313_v56 }
 0x35e   : > { %v857_v28 = vpack.c.bf16 %v856_v27, %v855_v26 }
 0x360   : > { %1051 = vmatmul.mubr.bf16.vlgmr.msra.gmra.mrb[0].mxu0 %v857_v28  ;;  %2215 = vmatmul.mubr.bf16.vlgmr.msra.gmra.mrb[8].mxu1 %v857_v28 }
 0x361   : > { %2220 = vmatprep.mubr.msk.f32.mxu0 %vm2879_vm0, %v2878_v3 }
 0x433   : > { %v1052_v29 = vpop.f32.mrb[0].mxu0  ;;  %v1095_v30 = vpop.f32.mrb[8].mxu1 }
 0x434   : > { %v1054_v31 = vpop.f32.mrb[1].mxu0  ;;  %v2216_v32 = vpop.f32.mrb[9].mxu1 }
 0x435   : > { %v1056_v33 = vpop.f32.mrb[2].mxu0  ;;  %v1098_v34 = vpop.f32.mrb[10].mxu1  ;;  %2219 = vmatpush3.xpose.msra.mxu0 %v1054_v31 }
 0x436   : > { %v1058_v35 = vpop.f32.mrb[3].mxu0  ;;  %v2217_v36 = vpop.f32.mrb[11].mxu1  ;;  %2223 = vmatprep.subr.mxu0 %v2878_v3 }
 0x438   : > { %2221 = vmatmul.mubr.f32.vlgmr.msra.gmra.mrb[4].mxu0 %v1052_v29 }
 0x439   : > { %2224 = vmatpush3.xpose.msra.mxu0 %v1058_v35  ;;  %2225 = vmatprep.mubr.msk.f32.mxu0 %vm2879_vm0, %v2878_v3 }
 0x43a   : > { %2228 = vmatprep.subr.mxu0 %v2878_v3 }
 0x43c   : > { %2226 = vmatmul.mubr.f32.vlgmr.msra.gmra.mrb[6].mxu0 %v1056_v33 }
 0x43d   : > { %2229 = vmatpush3.msra.mxu0 %v1095_v30  ;;  %2230 = vmatprep.mubr.msk.f32.mxu0 %vm2879_vm0, %v2878_v3 }
 0x43e   : > { %2233 = vmatprep.subr.mxu0 %v2878_v3 }
 0x50b   : > { %v1168_v40 = vpop.f32.mrb[4].mxu0 }
 0x50c   : > { %v1249_v41 = vsel %vm1246_vm1, %v1168_v40, -inf  ;;  %v2222_v42 = vpop.f32.mrb[5].mxu0 }
 0x50d   : > { %v1252_v43 = vsel %vm1251_vm2, %v1249_v41, -inf }
 0x50e   : > { %1253 = vmax.xlane.f32.xlu0 %v1252_v43 }
 0x50f   : > { %v1238_v44 = vpop.f32.mrb[6].mxu0 }
 0x510   : > { %v1250_v45 = vsel %vm1246_vm1, %v1238_v44, -inf  ;;  %v2227_v46 = vpop.f32.mrb[7].mxu0 }
 0x511   : > { %v1255_v47 = vsel %vm1251_vm2, %v1250_v45, -inf }
 0x512   : > { %1256 = vmax.xlane.f32.xlu1 %v1255_v47 }
 0x59b   : > { %v1254_v48 = vpop.xlane.xlu0 %1253 }
 0x59c   : > { %v1258_v49 = vsub.f32 %v1249_v41, %v1254_v48 }
 0x59e   : > { %v1260_v50 = vmul.f32 1.442695, %v1258_v49 }
 0x59f   : > { %v1257_v51 = vpop.xlane.xlu1 %1256 }
 0x5a0   : > { %2485 = vpow2.f32 %v1260_v50  ;;  %v1259_v52 = vsub.f32 %v1250_v45, %v1257_v51 }
 0x5a2   : > { %v1262_v54 = vmul.f32 1.442695, %v1259_v52 }
 0x5a4   : > { %2487 = vpow2.f32 %v1262_v54 }
 0x5aa   : > { %v2486_v55 = vpop.eup %2485 }
 0x5ab   : > { %v1264_v57 = vsel %vm1251_vm2, %v2486_v55, 0.0 }
 0x5ac   : > { %1265 = vadd.xlane.f32.xlu0 %v1264_v57 }
 0x5ae   : > { %v2488_v58 = vpop.eup %2487 }
 0x5af   : > { %v1267_v59 = vsel %vm1251_vm2, %v2488_v58, 0.0 }
 0x5b0   : > { %1268 = vadd.xlane.f32.xlu1 %v1267_v59 }
 0x639   : > { %v1266_v60 = vpop.xlane.xlu0 %1265 }
 0x63a   : > { %2489 = vrcp.f32 %v1266_v60 }
 0x63d   : > { %v1269_v61 = vpop.xlane.xlu1 %1268 }
 0x63e   : > { %2491 = vrcp.f32 %v1269_v61 }
 0x644   : > { %v2490_v62 = vpop.eup %2489 }
 0x645   : > { %v1272_v63 = vmul.f32 %v2490_v62, %v2486_v55 }
 0x647   : > { %2231 = vmatmul.mubr.msk.f32.vlgmr.msra.gmra.mrb[8].mxu0 %vm1251_vm2, %v1272_v63 }
 0x648   : > { %v2492_v0 = vpop.eup %2491  ;;  %2234 = vmatpush3.msra.mxu0 %v1098_v34  ;;  %2235 = vmatprep.mubr.msk.f32.mxu0 %vm2879_vm0, %v2878_v3 }
 0x649   : > { %v1273_v2 = vmul.f32 %v2492_v0, %v2488_v58  ;;  %2238 = vmatprep.subr.bf16.mxu0 %v2878_v3 }
 0x64b   : > { %2236 = vmatmul.mubr.msk.f32.vlgmr.msra.gmra.mrb[10].mxu0 %vm1251_vm2, %v1273_v2 }
 0x64c   : > { %2239 = vmatpush3.bf16.msra.mxu0 %v2469_v1  ;;  %2254 = vmatprep.mubr.msk.bf16.mxu0 %vm2879_vm0, %v2878_v3 }
 0x64d   : > { %2240 = vmatprep.subr.bf16.mxu0 %v2878_v3 }
 0x650   : > { %2241 = vmatpush3.bf16.msra.mxu0 %v2470_v4 }
 0x651   : > { %2242 = vmatprep.subr.bf16.mxu0 %v2878_v3 }
 0x654   : > { %2243 = vmatpush3.bf16.msra.mxu0 %v2471_v5 }
 0x655   : > { %2244 = vmatprep.subr.bf16.mxu0 %v2878_v3 }
 0x658   : > { %2245 = vmatpush3.bf16.msra.mxu0 %v2472_v6 }
 0x659   : > { %2246 = vmatprep.subr.bf16.mxu0 %v2878_v3 }
 0x65c   : > { %2247 = vmatpush3.bf16.msra.mxu0 %v2473_v7 }
 0x65d   : > { %2248 = vmatprep.subr.bf16.mxu0 %v2878_v3 }
 0x660   : > { %2249 = vmatpush3.bf16.msra.mxu0 %v2474_v8 }
 0x661   : > { %2250 = vmatprep.subr.bf16.mxu0 %v2878_v3 }
 0x664   : > { %2251 = vmatpush3.bf16.msra.mxu0 %v2475_v9 }
 0x665   : > { %2252 = vmatprep.subr.bf16.mxu0 %v2878_v3 }
 0x668   : > { %2253 = vmatpush3.bf16.msra.mxu0 %v2476_v10 }
 0x71a   : > { %v1343_v11 = vpop.f32.mrb[8].mxu0 }
 0x71b   : > { %v2232_v12 = vpop.f32.mrb[9].mxu0 }
 0x71e   : > { %v1416_v13 = vpop.f32.mrb[10].mxu0 }
 0x71f   : > { %v1420_v14 = vpack.c.bf16 %v1416_v13, %v1343_v11  ;;  %v2237_v15 = vpop.f32.mrb[11].mxu0 }
 0x721   : > { %2255 = vmatmul.mubr.bf16.vlgmr.msra.gmra.mrb[12].mxu0 %v1420_v14 }
 0x7f4   : > { %v1519_v16 = vpop.f32.mrb[12].mxu0 }
 0x7f5   : > { %v1526_v17 = vadd.f32 %v1519_v16, %v3311_v53  ;;  %v2256_v18 = vpop.f32.mrb[13].mxu0  ;;  %v2071_v53 = vld [vmem:[%s3508_s16] ss:$0 sm:$0xff] }
 0x7f6   : > { %v1522_v19 = vpop.f32.mrb[14].mxu0 }
 0x7f7   : > { %1528 = vst [vmem:[#allocation2] sm:$0xff] %v1526_v17  ;;  %v1527_v20 = vadd.f32 %v1522_v19, %v3313_v56  ;;  %v2257_v21 = vpop.f32.mrb[15].mxu0  ;;  %v1531_v22 = vmul.f32 %v1526_v17, %v1526_v17 }
 0x7f9   : > { %1529 = vst [vmem:[#allocation2 + $0x8] sm:$0xff] %v1527_v20  ;;  %1533 = vadd.xlane.f32.xlu0 %v1531_v22  ;;  %v1532_v3 = vmul.f32 %v1527_v20, %v1527_v20 }
 0x7fb   : > { %1535 = vadd.xlane.f32.xlu1 %v1532_v3 }
 0x886   : > { %v1534_v23 = vpop.xlane.xlu0 %1533 }
 0x887   : > { %v1537_v24 = vmul.f32 0.0078125, %v1534_v23 }
 0x888   : > { %v1536_v25 = vpop.xlane.xlu1 %1535 }
 0x889   : > { %v1539_v26 = vadd.f32 1e-06, %v1537_v24  ;;  %v1538_v27 = vmul.f32 0.0078125, %v1536_v25 }
 0x88b   : > { %2493 = vrsqrt.f32 %v1539_v26  ;;  %v1540_v28 = vadd.f32 1e-06, %v1538_v27 }
 0x88d   : > { %2495 = vrsqrt.f32 %v1540_v28 }
 0x895   : > { %v2494_v29 = vpop.eup %2493 }
 0x896   : > { %v1549_v56 = vmul.f32 %v2494_v29, %v2071_v53 }
 0x897   : > { %v2496_v30 = vpop.eup %2495 }
 0x898   : > { %v1551_v31 = vmul.f32 %v1549_v56, %v1526_v17  ;;  %v1550_v32 = vmul.f32 %v2496_v30, %v2071_v53 }
 0x89a   : > { %1553 = vst [vmem:[#allocation3] sm:$0xff] %v1551_v31  ;;  %v1552_v33 = vmul.f32 %v1550_v32, %v1527_v20 }
 0x89c   : > { %1554 = vst [vmem:[#allocation3 + $0x8] sm:$0xff] %v1552_v33 }
 0x89d PF: > { %v2497_v34 = vld [vmem:[%s3269_s14 + $0x4] ss:$8 sps:$4 sm:$0xff]   ;;  %v2499_v35 = vld [vmem:[%s3269_s14] ss:$8 sps:$4 sm:$0xff]   ;;  %v2881_v36 = vmov 0   ;;  %v2882_v57 = vmov 0.0  }
 0x89e   : > { %1688 = vmatprep.mubr.bf16.mxu0 %v2881_v36  ;;  %1656 = vmatprep.subr.bf16.mxu0 %v2497_v34  ;;  %v2500_v37 = vld [vmem:[%s3269_s14 + $0x14] ss:$8 sps:$4 sm:$0xff]   ;;  %v2502_v38 = vld [vmem:[%s3269_s14 + $0x10] ss:$8 sps:$4 sm:$0xff]   ;;  %v2503_v39 = vld [vmem:[%s3269_s14 + $0x24] ss:$8 sps:$4 sm:$0xff]  }
 0x89f   : > { %1657 = vmatpush1.bf16.msra.mxu0 %v2499_v35  ;;  %v2505_v40 = vld [vmem:[%s3269_s14 + $0x20] ss:$8 sps:$4 sm:$0xff]   ;;  %v2506_v41 = vld [vmem:[%s3269_s14 + $0x34] ss:$8 sps:$4 sm:$0xff]   ;;  %v2508_v42 = vld [vmem:[%s3269_s14 + $0x30] ss:$8 sps:$4 sm:$0xff]   ;;  %2258 = vmatprep.subr.bf16.mxu1 %v2882_v57 }
 0x8a0   : > { %1658 = vmatprep.subr.bf16.mxu0 %v2500_v37  ;;  %v2509_v43 = vld [vmem:[%s3269_s14 + $0x44] ss:$8 sps:$4 sm:$0xff]   ;;  %v2511_v44 = vld [vmem:[%s3269_s14 + $0x40] ss:$8 sps:$4 sm:$0xff]   ;;  %v2512_v45 = vld [vmem:[%s3269_s14 + $0x54] ss:$8 sps:$4 sm:$0xff]  }
 0x8a1   : > { %v2514_v46 = vld [vmem:[%s3269_s14 + $0x50] ss:$8 sps:$4 sm:$0xff]   ;;  %v2515_v47 = vld [vmem:[%s3269_s14 + $0x64] ss:$8 sps:$4 sm:$0xff]   ;;  %v2517_v48 = vld [vmem:[%s3269_s14 + $0x60] ss:$8 sps:$4 sm:$0xff]  }
 0x8a2   : > { %v2518_v49 = vld [vmem:[%s3269_s14 + $0x74] ss:$8 sps:$4 sm:$0xff]   ;;  %v2520_v50 = vld [vmem:[%s3269_s14 + $0x70] ss:$8 sps:$4 sm:$0xff]   ;;  %v1557_v51 = vld [vmem:[#allocation3] sm:$0xff]  ;;  %vm2883_vm3 = vmmov 0  }
 0x8a3   : > { %1659 = vmatpush1.bf16.msra.mxu0 %v2502_v38  ;;  %v1558_v52 = vld [vmem:[#allocation3 + $0x8] sm:$0xff]  ;;  %v2521_v55 = vld [vmem:[%s3275_s24] sm:$0xff]   ;;  %v2523_v59 = vld [vmem:[%s3275_s24 + $0x10] sm:$0xff]   ;;  %2274 = vmatprep.mubr.msk.bf16.mxu1 %vm2883_vm3, %v2882_v57  ;;  %s3509_s12 = sld [smem:[#allocation25_spill]] }
 0x8a4   : > { %1660 = vmatprep.subr.bf16.mxu0 %v2503_v39  ;;  %v1559_v54 = vpack.c.bf16 %v1558_v52, %v1557_v51  ;;  %2259 = vmatpush3.bf16.msra.mxu1 %v2521_v55  ;;  %v2522_v58 = vld [vmem:[%s3275_s24 + $0x8] sm:$0xff]   ;;  %v2524_v60 = vld [vmem:[%s3275_s24 + $0x18] sm:$0xff]   ;;  %v2525_v61 = vld [vmem:[%s3275_s24 + $0x20] sm:$0xff]  }
 0x8a5   : > { %2260 = vmatprep.subr.bf16.mxu1 %v2882_v57  ;;  %v2526_v62 = vld [vmem:[%s3275_s24 + $0x28] sm:$0xff]   ;;  %v2527_v63 = vld [vmem:[%s3275_s24 + $0x30] sm:$0xff]   ;;  %v2528_v0 = vld [vmem:[%s3275_s24 + $0x38] sm:$0xff]  }
 0x8a6   : > { %v1716_v19 = vld [vmem:[#allocation4] sm:$0xff]  ;;  %v1717_v21 = vld [vmem:[#allocation4 + $0x8] sm:$0xff] }
 0x8a7   : > { %1661 = vmatpush1.bf16.msra.mxu0 %v2505_v40 }
 0x8a8   : > { %1662 = vmatprep.subr.bf16.mxu0 %v2506_v41  ;;  %2261 = vmatpush3.bf16.msra.mxu1 %v2522_v58 }
 0x8a9   : > { %2262 = vmatprep.subr.bf16.mxu1 %v2882_v57  ;;  %p2098_p13 = scmp.ne.s32.totalorder %s3509_s12, 1 }
 0x8aa   : > { %v1831_v26 = vld [vmem:[#allocation2] sm:$0xff] (!%p2098_p13)  ;;  %v1832_v28 = vld [vmem:[#allocation2 + $0x8] sm:$0xff] (!%p2098_p13) }
 0x8ab   : > { %1663 = vmatpush1.bf16.msra.mxu0 %v2508_v42 }
 0x8ac   : > { %1664 = vmatprep.subr.bf16.mxu0 %v2509_v43  ;;  %2263 = vmatpush3.bf16.msra.mxu1 %v2523_v59 }
 0x8ad   : > { %2264 = vmatprep.subr.bf16.mxu1 %v2882_v57 }
 0x8af   : > { %1665 = vmatpush1.bf16.msra.mxu0 %v2511_v44 }
 0x8b0   : > { %1666 = vmatprep.subr.bf16.mxu0 %v2512_v45  ;;  %2265 = vmatpush3.bf16.msra.mxu1 %v2524_v60 }
 0x8b1   : > { %2266 = vmatprep.subr.bf16.mxu1 %v2882_v57 }
 0x8b3   : > { %1667 = vmatpush1.bf16.msra.mxu0 %v2514_v46 }
 0x8b4   : > { %1668 = vmatprep.subr.bf16.mxu0 %v2515_v47  ;;  %2267 = vmatpush3.bf16.msra.mxu1 %v2525_v61 }
 0x8b5   : > { %2268 = vmatprep.subr.bf16.mxu1 %v2882_v57 }
 0x8b7   : > { %1669 = vmatpush1.bf16.msra.mxu0 %v2517_v48 }
 0x8b8   : > { %1670 = vmatprep.subr.bf16.mxu0 %v2518_v49  ;;  %2269 = vmatpush3.bf16.msra.mxu1 %v2526_v62 }
 0x8b9   : > { %2270 = vmatprep.subr.bf16.mxu1 %v2882_v57 }
 0x8bb   : > { %1671 = vmatpush1.bf16.msra.mxu0 %v2520_v50 }
 0x8bc   : > { %2271 = vmatpush3.bf16.msra.mxu1 %v2527_v63 }
 0x8bd   : > { %2272 = vmatprep.subr.bf16.mxu1 %v2882_v57 }
 0x8be   : > { %1689 = vmatmul.mubr.bf16.vlgmr.msra.gmra.mrb[0].mxu0 %v1559_v54 }
 0x8c0   : > { %2273 = vmatpush3.bf16.msra.mxu1 %v2528_v0 }
 0x991   : > { %v1690_v1 = vpop.f32.mrb[0].mxu0 }
 0x992   : > { %v2088_v2 = vmul.f32 -1.442695, %v1690_v1  ;;  %v1692_v4 = vpop.f32.mrb[1].mxu0 }
 0x993   : > { %v1694_v5 = vpop.f32.mrb[2].mxu0 }
 0x994   : > { %2529 = vpow2.f32 %v2088_v2  ;;  %v2089_v6 = vmul.f32 -1.442695, %v1694_v5  ;;  %v1696_v7 = vpop.f32.mrb[3].mxu0 }
 0x996   : > { %2531 = vpow2.f32 %v2089_v6 }
 0x99e   : > { %v2530_v8 = vpop.eup %2529 }
 0x99f   : > { %v1705_v9 = vadd.f32 1.0, %v2530_v8 }
 0x9a0   : > { %v2532_v10 = vpop.eup %2531 }
 0x9a1   : > { %2533 = vrcp.f32 %v1705_v9  ;;  %v1706_v11 = vadd.f32 1.0, %v2532_v10 }
 0x9a3   : > { %2535 = vrcp.f32 %v1706_v11 }
 0x9ab   : > { %v2534_v12 = vpop.eup %2533 }
 0x9ac   : > { %v1711_v13 = vmul.f32 %v2534_v12, %v1690_v1 }
 0x9ad   : > { %v2536_v14 = vpop.eup %2535 }
 0x9ae   : > { %v1713_v15 = vmul.f32 %v1711_v13, %v1692_v4  ;;  %v1712_v16 = vmul.f32 %v2536_v14, %v1694_v5 }
 0x9b0   : > { %v1714_v17 = vmul.f32 %v1712_v16, %v1696_v7 }
 0x9b2   : > { %v1715_v18 = vpack.c.bf16 %v1714_v17, %v1713_v15 }
 0x9b4   : > { %2275 = vmatmul.mubr.bf16.vlgmr.msra.gmra.mrb[0].mxu1 %v1715_v18 }
 0xa86   : > { %1830 = sbr.rel (%p2098_p13) target bundleno = 2711 (0xa97), region = 108 }
 0xa87   : > { %v1816_v20 = vpop.f32.mrb[0].mxu1 }
 0xa88   : > { %v1823_v22 = vadd.f32 %v1816_v20, %v1716_v19  ;;  %v2276_v3 = vpop.f32.mrb[1].mxu1 }
 0xa89   : > { %v1819_v23 = vpop.f32.mrb[2].mxu1 }
 0xa8a   : > { %1825 = vst [vmem:[#allocation4] sm:$0xff] %v1823_v22  ;;  %v1824_v24 = vadd.f32 %v1819_v23, %v1717_v21  ;;  %v2277_v25 = vpop.f32.mrb[3].mxu1 }
 0xa8c   : > { %1826 = vst [vmem:[#allocation4 + $0x8] sm:$0xff] %v1824_v24 }
 0xa91   : > { %v1833_v27 = vld [vmem:[#allocation4] sm:$0xff] }
 0xa92   : > { %v1835_v53 = vadd.f32 %v1833_v27, %v1831_v26 }
 0xa93   : > { %v1834_v29 = vld [vmem:[#allocation4 + $0x8] sm:$0xff] }
 0xa94   : > { %v1836_v56 = vadd.f32 %v1834_v29, %v1832_v28  ;;  %1837 = vst [vmem:[#allocation18] sm:$0xff] %v1835_v53 }
 0xa96   : > { %1838 = vst [vmem:[#allocation18 + $0x8] sm:$0xff] %v1836_v56 }
 0xa97 PF: > { %p2349_p5 = scmp.eq.s32.totalorder %s2983_s27, 1  ;;  %s2884_s1 = smov [#allocation18]  }
 0xa98   : > { %s1848_s19 = sshll.u32 %s2884_s1, 4  ;;  %s1849_s19 = int_to_ptr.vmem [resolvable:$true] %s1848_s19 }
 0xa99   : > { %s2765_s0 = scalar_lea.vmem %s1849_s19, 256  ;;  %p2772_p12 = scmp.lt.s32.totalorder %s1849_s19, %s1849_s19 }
 0xa9a   : > { %p2766_p10 = scmp.ne.s32.totalorder %s1849_s19, %s2765_s0  ;;  %p2773_p2 = scmp.lt.s32.totalorder %s2765_s0, %s2765_s0 }
 0xa9c   : > { %p2767_p3 = pnand %p2766_p10, %p2349_p5  ;;  %p2774_p1 = por %p2773_p2, %p2772_p12 }
 0xa9e   : > { %p2768_p11 = pneg %p2767_p3 }
 0xaa0   : > { %p2775_p6 = pnand %p2774_p1, %p2768_p11 }
 0xaa2   : > { %2778 = shalt.err (!%p2775_p6)
}
 0xaa3   : > { %s3510_s2 = sld [smem:[#allocation38_spill]] }
 0xaa9   : > { %s2779_s17 = scalar_lea.hbm %s3510_s2, 256 }
 0xaaa   : > { %p2780_p0 = scmp.ne.s32.totalorder %s3510_s2, %s2779_s17  ;;  %p2785_p7 = scmp.lt.u32.totalorder %s2779_s17, %s3510_s2 }
 0xaac   : > { %p2781_p8 = pnand %p2780_p0, %p2349_p5 }
 0xaae   : > { %p2782_p9 = pneg %p2781_p8 }
 0xab0   : > { %p2787_p4 = pnand %p2785_p7, %p2782_p9 }
 0xab2   : > { %2790 = shalt.err (!%p2787_p4)
}
 0xab3   : > { %s2885_s9 = smov 128   ;;  %s2886_s26 = smov 8  }
 0xab4   : > { %2307 = dma.vmem_to_hbm [thread:$0]  (%p2349_p5), %s1849_s19, 256, %s3510_s2, [#allocation7], %s2885_s9, %s2885_s9, %s2886_s26  }
 0xab5   : > { %2836 = dma.done.wait (%p2349_p5), [#allocation7], 256  }
 0xab6   : > { %2838 = vsyncadd (%p2349_p5), [#allocation7], 4294967040 }
 0xab7 PF: > { %s3511_s4 = sld [smem:[#allocation26_spill]]  ;;  %s3512_s10 = sld [smem:[#allocation28_spill]] }
 0xab8   : > { %s3513_s13 = sld [smem:[#allocation27_spill]]  ;;  %s3514_s21 = smov %s2845_s22 }
 0xab9   : > { %s3515_s22 = smov %s2849_s23  ;;  %s3517_s24 = smov %s2857_s25 }
 0xabd   : > { %s27_s26 = sadd.s32 1, %s3511_s4   ;;  %s3516_s23 = smov %s3512_s10 }
 0xabe   : > { %p24_p13 = scmp.ge.s32.totalorder %s27_s26, 4   ;;  %s3518_s25 = smov %s3513_s13 }
 0xac0   :  { %26 = sbr.rel (!%p24_p13) target bundleno = 18 (0x12), region = 150 }
 0xac7   :  { %1864 = vsyncpa [#allocation6], 1 }
 0xac8   :  { %1866 = vsyncpa [#allocation6 + $0x1], 1 }
 0xac9   :  { %1867 = vsyncpa [#allocation9], 1 }
 0xaca   :  { %1868 = vsyncpa [#allocation12], 1 }
 0xacb   :  { %1869 = vsyncpa [#allocation15], 1 }
 0xacc   :  { %1870 = vsyncpa [#allocation7], 1 }
 0xacd   :  { %1872 = vsyncpa [#allocation7 + $0x1], 1 }

// kernel: tpu_custom_call.1
= control target key start
LH: loop header
LB: loop body
LE: loop exit
PB: predicated region body
PF: predicated region fallthrough
CT: control target
= control target key end

     0   :  { %s3428_s0 = inlined_call_operand.hbm [shape: f32[2,8,128], index: 0, kind: input, shape index: {}]   ;;  %s3429_s1 = inlined_call_operand.hbm [shape: f32[2,8,128], index: 1, kind: input, shape index: {}]   ;;  %s3430_s2 = inlined_call_operand.vmem [shape: f32[1,128], index: 2, kind: input, shape index: {}]   ;;  %s3431_s3 = inlined_call_operand.hbm [shape: bf16[128,128], index: 3, kind: input, shape index: {}]   ;;  %s3432_s4 = inlined_call_operand.hbm [shape: bf16[128,128], index: 4, kind: input, shape index: {}]   ;;  %s3433_s5 = inlined_call_operand.vmem [shape: f32[1,128], index: 5, kind: input, shape index: {}]   ;;  %s3434_s6 = inlined_call_operand.vmem [shape: f32[1,128], index: 6, kind: input, shape index: {}]   ;;  %s3435_s7 = inlined_call_operand.hbm [shape: bf16[128,384], index: 7, kind: input, shape index: {}]   ;;  %s3436_s8 = inlined_call_operand.hbm [shape: bf16[128,128], index: 8, kind: input, shape index: {}]   ;;  %s3437_s9 = inlined_call_operand.vmem [shape: f32[1,128], index: 9, kind: input, shape index: {}]   ;;  %s3438_s10 = inlined_call_operand.hbm [shape: bf16[128,512], index: 10, kind: input, shape index: {}]   ;;  %s3439_s11 = inlined_call_operand.hbm [shape: bf16[256,128], index: 11, kind: input, shape index: {}]   ;;  %s3440_s12 = inlined_call_operand.hbm [shape: f32[2,8,128], index: 12, kind: output, shape index: {}]  }
   0x1   :  { %3459 = sst [smem:[#allocation29_spill]] %s3428_s0 }
   0x2   :  { %3460 = sst [smem:[#allocation30_spill]] %s3429_s1 }
   0x3   :  { %3461 = sst [smem:[#allocation31_spill]] %s3430_s2 }
   0x4   :  { %3462 = sst [smem:[#allocation32_spill]] %s3431_s3 }
   0x5   :  { %3463 = sst [smem:[#allocation33_spill]] %s3432_s4 }
   0x6   :  { %3464 = sst [smem:[#allocation34_spill]] %s3433_s5 }
   0x7   :  { %3465 = sst [smem:[#allocation35_spill]] %s3434_s6 }
   0x8   :  { %3466 = sst [smem:[#allocation36_spill]] %s3437_s9 }
   0x9   :  { %3467 = sst [smem:[#allocation37_spill]] %s3438_s10 }
   0xa   :  { %3468 = sst [smem:[#allocation38_spill]] %s3440_s12 }
   0xb   :  { %17 = vsyncpa [#allocation6], 0 }
   0xc   :  { %18 = vsyncpa [#allocation9], 0 }
   0xd   :  { %19 = vsyncpa [#allocation12], 0 }
   0xe   :  { %20 = vsyncpa [#allocation15], 0 }
   0xf   :  { %21 = vsyncpa [#allocation7], 0  ;;  %s2952_s21 = smov 0   ;;  %s2954_s22 = smov 0  }
  0x10   :  { %s2956_s23 = smov 0   ;;  %s2958_s24 = smov 0  }
  0x11   :  { %s2960_s25 = smov 0   ;;  %s2962_s26 = smov 0  }
  0x12 LB: > { %3469 = sst [smem:[#allocation25_spill]] %s2853_s24  ;;  %s2983_s27 = sadd.s32 4294967295, %s2861_s26   ;;  %s2861_s26 = sphi %s2962_s26, %s27_s26   ;;  %s2857_s25 = sphi %s2960_s25, %s3518_s25   ;;  %s2853_s24 = sphi %s2958_s24, %s3517_s24   ;;  %s2849_s23 = sphi %s2956_s23, %s3516_s23   ;;  %s2845_s22 = sphi %s2954_s22, %s3515_s22   ;;  %s2841_s21 = sphi %s2952_s21, %s3514_s21  }
  0x13   : > { %3470 = sst [smem:[#allocation26_spill]] %s2861_s26  ;;  %p1994_p0 = scmp.ge.s32.totalorder %s2861_s26, 1 }
  0x14   : > { %p3442_p1 = scmp.eq.s32.totalorder %s2983_s27, 0  ;;  %p342_p2 = scmp.lt.s32.totalorder %s2861_s26, 3 }
  0x15   : > { %s2863_s29 = smov [#allocation5]   ;;  %s2864_s14 = smov [#allocation8]  }
  0x16   : > { %p2988_p3 = pnand %p1994_p0, %p342_p2  ;;  %s357_s30 = sshll.u32 %s2863_s29, 4  ;;  %s358_s30 = int_to_ptr.vmem [resolvable:$true] %s357_s30 }
  0x17   : > { %s373_s15 = sshll.u32 %s2864_s14, 4  ;;  %s3473_s0 = sld [smem:[#allocation29_spill]]  ;;  %s3000_s15 = int_to_ptr.vmem [resolvable:$true] %s373_s15 }
  0x18   : > { %s3471_s28 = scalar_select %p2988_p3, 1, 0 }
  0x19   : > { %p2310_p4 = pneg %p2988_p3 }
  0x1b   : > { %p2996_p5 = pnand %p2310_p4, %p3442_p1 }
  0x1d   : > { %s3472_s13 = scalar_select %p2996_p5, 1, 0 }
  0x1e   : > { %s2537_s18 = scalar_lea.hbm %s3473_s0, 256  ;;  %p3010_p7 = pneg %p2996_p5 }
  0x1f   : > { %p2538_p6 = scmp.ne.s32.totalorder %s3473_s0, %s2537_s18  ;;  %p2544_p10 = scmp.lt.u32.totalorder %s2537_s18, %s3473_s0 }
  0x21   : > { %p2540_p8 = pnand %p3010_p7, %p2538_p6 }
  0x23   : > { %p2541_p9 = pneg %p2540_p8 }
  0x25   : > { %p2546_p11 = pnand %p2544_p10, %p2541_p9 }
  0x27   : > { %2549 = shalt.err (!%p2546_p11)
}
  0x28   : > { %s2550_s16 = scalar_lea.vmem %s358_s30, 256  ;;  %p2558_p2 = scmp.lt.s32.totalorder %s358_s30, %s358_s30 }
  0x29   : > { %p2551_p12 = scmp.ne.s32.totalorder %s358_s30, %s2550_s16  ;;  %p2559_p4 = scmp.lt.s32.totalorder %s2550_s16, %s2550_s16 }
  0x2b   : > { %p2553_p13 = pnand %p2551_p12, %p3010_p7  ;;  %p2560_p1 = por %p2559_p4, %p2558_p2 }
  0x2d   : > { %p2554_p0 = pneg %p2553_p13 }
  0x2f   : > { %p2561_p3 = pnand %p2560_p1, %p2554_p0 }
  0x31   : > { %2564 = shalt.err (!%p2561_p3)
}
  0x32   : > { %s3448_s17 = smov 128   ;;  %s3450_s19 = smov 8  }
  0x33   : > { %2313 = dma.hbm_to_vmem [thread:$0]  (!%p2996_p5), %s3473_s0, 256, %s358_s30, [#allocation6], %s3448_s17, %s3448_s17, %s3450_s19  }
  0x34   : > { %s3475_s1 = sld [smem:[#allocation30_spill]] }
  0x3a   : > { %s2565_s9 = scalar_lea.hbm %s3475_s1, 256 }
  0x3b   : > { %p2566_p1 = scmp.ne.s32.totalorder %s3475_s1, %s2565_s9  ;;  %p2572_p8 = scmp.lt.u32.totalorder %s2565_s9, %s3475_s1 }
  0x3d   : > { %p2568_p3 = pnand %p2566_p1, %p3010_p7 }
  0x3f   : > { %p2569_p6 = pneg %p2568_p3 }
  0x41   : > { %p2574_p9 = pnand %p2572_p8, %p2569_p6 }
  0x43   : > { %2577 = shalt.err (!%p2574_p9)
}
  0x44   : > { %s2578_s30 = scalar_lea.vmem %s3000_s15, 256  ;;  %p2586_p13 = scmp.lt.s32.totalorder %s3000_s15, %s3000_s15 }
  0x45   : > { %p2579_p10 = scmp.ne.s32.totalorder %s3000_s15, %s2578_s30  ;;  %p2587_p0 = scmp.lt.s32.totalorder %s2578_s30, %s2578_s30 }
  0x47   : > { %p2581_p11 = pnand %p2579_p10, %p3010_p7  ;;  %p2588_p2 = por %p2587_p0, %p2586_p13 }
  0x49   : > { %p2582_p12 = pneg %p2581_p11 }
  0x4b   : > { %p2589_p4 = pnand %p2588_p2, %p2582_p12 }
  0x4d   : > { %2592 = shalt.err (!%p2589_p4)
}
  0x4e   : > { %2316 = dma.hbm_to_vmem [thread:$0]  (!%p2996_p5), %s3475_s1, 256, %s3000_s15, [#allocation9], %s3448_s17, %s3448_s17, %s3450_s19  }
  0x4f   : > { %s2867_s6 = smov [#allocation11]   ;;  %s3476_s4 = sld [smem:[#allocation33_spill]] }
  0x50   : > { %s402_s9 = sshll.u32 %s2867_s6, 4  ;;  %s403_s9 = int_to_ptr.vmem [resolvable:$true] %s402_s9 }
  0x55   : > { %s2593_s20 = scalar_lea.hbm %s3476_s4, 1024 }
  0x56   : > { %p2594_p1 = scmp.ne.s32.totalorder %s3476_s4, %s2593_s20  ;;  %p2600_p8 = scmp.lt.u32.totalorder %s2593_s20, %s3476_s4 }
  0x58   : > { %p2596_p3 = pnand %p2594_p1, %p3010_p7 }
  0x5a   : > { %p2597_p6 = pneg %p2596_p3 }
  0x5c   : > { %p2602_p9 = pnand %p2600_p8, %p2597_p6 }
  0x5e   : > { %2605 = shalt.err (!%p2602_p9)
}
  0x5f   : > { %s2606_s15 = scalar_lea.vmem %s403_s9, 1024  ;;  %p2614_p13 = scmp.lt.s32.totalorder %s403_s9, %s403_s9 }
  0x60   : > { %p2607_p10 = scmp.ne.s32.totalorder %s403_s9, %s2606_s15  ;;  %p2615_p0 = scmp.lt.s32.totalorder %s2606_s15, %s2606_s15 }
  0x62   : > { %p2609_p11 = pnand %p2607_p10, %p3010_p7  ;;  %p2616_p2 = por %p2615_p0, %p2614_p13 }
  0x64   : > { %p2610_p12 = pneg %p2609_p11 }
  0x66   : > { %p2617_p4 = pnand %p2616_p2, %p2610_p12 }
  0x68   : > { %2620 = shalt.err (!%p2617_p4)
}
  0x69   : > { %s3444_s2 = smov 64   ;;  %s3446_s0 = smov 4  }
  0x6a   : > { %2322 = dma.hbm_to_vmem [thread:$0]  (!%p2996_p5), %s3476_s4, 1024, %s403_s9, [#allocation12], %s3444_s2, %s3444_s2, %s3446_s0  }
  0x6b   : > { %s36_s12 = sadd.s32 1, %s2857_s25  ;;  %s266_s18 = sadd.s32 1, %s2849_s23 }
  0x6c   : > { %p37_p1 = scmp.ge.s32.totalorder %s36_s12, 2  ;;  %p273_p3 = scmp.ne.s32.totalorder %s2849_s23, %s2845_s22 }
  0x6d   : > { %p274_p6 = scmp.eq.s32.totalorder %s2861_s26, 0  ;;  %p279_p9 = scmp.ne.s32.totalorder %s2845_s22, %s2841_s21 }
  0x6e   : > { %s3520_s12 = smov (%p37_p1, %s36_s12), 0  ;;  %p2342_p10 = scmp.lt.s32.totalorder %s2861_s26, 2 }
  0x6f   : > { %3477 = sst [smem:[#allocation27_spill]] %s3520_s12  ;;  %p3083_p8 = por %p274_p6, %p273_p3 }
  0x70   : > { %s263_s14 = ssub.s32 %s2857_s25, %s3520_s12  ;;  %p3479_p12 = scmp.eq.s32.totalorder %s2983_s27, 0 }
  0x71   : > { %p264_p11 = scmp.eq.s32.totalorder %s263_s14, 0  ;;  %s451_s16 = sand.u32 1, %s2861_s26  }
  0x72   : > { %p3094_p13 = por %p3479_p12, %p279_p9  ;;  %s3449_s30 = sand.u32 1, %s2849_s23  }
  0x73   : > { %s3101_s15 = scalar_select %p264_p11, %s2849_s23, %s266_s18  }
  0x74   : > { %s3480_s9 = scalar_select %p3094_p13, 1, 0 }
  0x75   : > { %3481 = sst [smem:[#allocation28_spill]] %s3101_s15  ;;  %s2002_s5 = sshll.u32 %s3449_s30, 7 }
  0x76   : > { %s2103_s6 = sshll.u32 %s2857_s25, 7  ;;  %s3482_s10 = sld [smem:[#allocation37_spill]] }
  0x77   : > { %s455_s21 = scalar_lea.vmem [#allocation16], %s2002_s5  ;;  %p3115_p0 = pnand %p2342_p10, %p3083_p8 }
  0x78   : > { %s462_s14 = sshll.u32 %s455_s21, 4  ;;  %s2870_s30 = smov [#allocation10]   ;;  %s3111_s14 = int_to_ptr.vmem [resolvable:$true] %s462_s14 }
  0x79   : > { %s3483_s18 = scalar_select %p3115_p0, 1, 0 }
  0x7a   : > { %s3119_s19 = sshll.u32 %s2870_s30, 4  ;;  %s3121_s2 = scalar_lea.sflag [#allocation6], %s451_s16  ;;  %s390_s19 = int_to_ptr.vmem [resolvable:$true] %s3119_s19 }
  0x7b   : > { %p3455_p4 = pneg %p3115_p0 }
  0x7c   : > { %s3109_s17 = scalar_lea.hbm %s3482_s10, %s2103_s6  ;;  %s2626_s6 = scalar_lea.hbm %s3482_s10, 4096 }
  0x7d   : > { %s2621_s0 = scalar_lea.hbm %s3109_s17, 2048  ;;  %p2627_p6 = scmp.lt.u32.totalorder %s3109_s17, %s3482_s10 }
  0x7e   : > { %p2622_p2 = scmp.ne.s32.totalorder %s3109_s17, %s2621_s0  ;;  %p2628_p8 = scmp.lt.u32.totalorder %s2626_s6, %s2621_s0 }
  0x7f   : > { %p2630_p10 = scmp.lt.u32.totalorder %s2621_s0, %s3109_s17 }
  0x80   : > { %p2624_p1 = pnand %p3455_p4, %p2622_p2  ;;  %p2629_p9 = por %p2628_p8, %p2627_p6 }
  0x82   : > { %p2625_p3 = pneg %p2624_p1  ;;  %p2631_p11 = por %p2630_p10, %p2629_p9 }
  0x84   : > { %p2632_p12 = pnand %p2631_p11, %p2625_p3 }
  0x86   : > { %2635 = shalt.err (!%p2632_p12)
}
  0x87   : > { %s2636_s16 = scalar_lea.vmem %s3111_s14, 2048  ;;  %s2871_s30 = smov [#allocation16]  }
  0x88   : > { %p2637_p2 = scmp.ne.s32.totalorder %s3111_s14, %s2636_s16  ;;  %s2641_s20 = sshll.u32 %s2871_s30, 4  ;;  %s2642_s20 = int_to_ptr.vmem [resolvable:$false] %s2641_s20 }
  0x89   : > { %s2643_s1 = scalar_lea.vmem %s2642_s20, 4096  ;;  %p2644_p5 = scmp.lt.s32.totalorder %s3111_s14, %s2642_s20 }
  0x8a   : > { %p2639_p1 = pnand %p2637_p2, %p3455_p4  ;;  %p2645_p6 = scmp.lt.s32.totalorder %s2643_s1, %s2636_s16 }
  0x8c   : > { %p2640_p13 = pneg %p2639_p1  ;;  %p2646_p8 = por %p2645_p6, %p2644_p5 }
  0x8e   : > { %p2647_p9 = pnand %p2646_p8, %p2640_p13 }
  0x90   : > { %2650 = shalt.err (!%p2647_p9)
}
  0x91   : > { %s2872_s0 = smov 256   ;;  %s3484_s5 = smov 8  }
  0x92   : > { %s3485_s6 = smov 128   ;;  %s3486_s3 = sld [smem:[#allocation32_spill]] }
  0x93   : > { %2332 = dma.hbm_to_vmem [thread:$0]  (!%p3115_p0), %s3109_s17, 2048, %s3111_s14, %s3121_s2, %s2872_s0, %s3485_s6, %s3484_s5  }
  0x98   : > { %s2651_s20 = scalar_lea.hbm %s3486_s3, 1024 }
  0x99   : > { %p2652_p5 = scmp.ne.s32.totalorder %s3486_s3, %s2651_s20  ;;  %p2658_p10 = scmp.lt.u32.totalorder %s2651_s20, %s3486_s3 }
  0x9b   : > { %p2654_p13 = pnand %p2652_p5, %p3010_p7 }
  0x9d   : > { %p2655_p3 = pneg %p2654_p13 }
  0x9f   : > { %p2660_p11 = pnand %p2658_p10, %p2655_p3 }
  0xa1   : > { %2663 = shalt.err (!%p2660_p11)
}
  0xa2   : > { %s2664_s12 = scalar_lea.vmem %s390_s19, 1024  ;;  %p2672_p6 = scmp.lt.s32.totalorder %s390_s19, %s390_s19 }
  0xa3   : > { %p2665_p12 = scmp.ne.s32.totalorder %s390_s19, %s2664_s12  ;;  %p2673_p8 = scmp.lt.s32.totalorder %s2664_s12, %s2664_s12 }
  0xa5   : > { %p2667_p2 = pnand %p2665_p12, %p3010_p7  ;;  %p2674_p9 = por %p2673_p8, %p2672_p6 }
  0xa7   : > { %p2668_p1 = pneg %p2667_p2 }
  0xa9   : > { %p2675_p4 = pnand %p2674_p9, %p2668_p1 }
  0xab   : > { %2678 = shalt.err (!%p2675_p4)
}
  0xac   : > { %p3487_p5 = scmp.ne.s32.totalorder %s3472_s13, 0  ;;  %s3488_s17 = smov 4  }
  0xad   : > { %s3489_s14 = smov 64   ;;  %s2873_s0 = smov [#allocation13]  }
  0xae   : > { %2319 = dma.hbm_to_vmem [thread:$0]  (!%p3487_p5), %s3486_s3, 1024, %s390_s19, [#allocation9], %s3489_s14, %s3489_s14, %s3488_s17  }
  0xaf   : > { %s421_s5 = sshll.u32 %s2873_s0, 4  ;;  %s2679_s12 = scalar_lea.hbm %s3435_s7, 3072  ;;  %s422_s5 = int_to_ptr.vmem [resolvable:$true] %s421_s5 }
  0xb0   : > { %p2680_p4 = scmp.ne.s32.totalorder %s3435_s7, %s2679_s12  ;;  %p2686_p10 = scmp.lt.u32.totalorder %s2679_s12, %s3435_s7 }
  0xb2   : > { %p2682_p13 = pnand %p2680_p4, %p3010_p7 }
  0xb4   : > { %p2683_p3 = pneg %p2682_p13 }
  0xb6   : > { %p2688_p11 = pnand %p2686_p10, %p2683_p3 }
  0xb8   : > { %2691 = shalt.err (!%p2688_p11)
}
  0xb9   : > { %s2692_s19 = scalar_lea.vmem %s422_s5, 3072  ;;  %p2700_p6 = scmp.lt.s32.totalorder %s422_s5, %s422_s5 }
  0xba   : > { %p2693_p12 = scmp.ne.s32.totalorder %s422_s5, %s2692_s19  ;;  %p2701_p8 = scmp.lt.s32.totalorder %s2692_s19, %s2692_s19 }
  0xbc   : > { %p2695_p2 = pnand %p2693_p12, %p3010_p7  ;;  %p2702_p9 = por %p2701_p8, %p2700_p6 }
  0xbe   : > { %p2696_p1 = pneg %p2695_p2 }
  0xc0   : > { %p2703_p0 = pnand %p2702_p9, %p2696_p1 }
  0xc2   : > { %2706 = shalt.err (!%p2703_p0)
}
  0xc3   : > { %s2874_s4 = smov 192   ;;  %s2875_s10 = smov 12  }
  0xc4   : > { %2325 = dma.hbm_to_vmem [thread:$0]  (!%p3487_p5), %s3435_s7, 3072, %s422_s5, [#allocation12], %s2874_s4, %s2874_s4, %s2875_s10  }
  0xc5   : > { %s3490_s21 = sand.u32 1, %s2849_s23   ;;  %s2876_s30 = smov [#allocation14]  }
  0xc6   : > { %s2005_s12 = sshll.u32 %s3490_s21, 6  ;;  %s434_s20 = sshll.u32 %s2876_s30, 4  ;;  %s435_s20 = int_to_ptr.vmem [resolvable:$true] %s434_s20 }
  0xc7   : > { %s2104_s16 = sshll.u32 %s2857_s25, 10  ;;  %s2707_s3 = scalar_lea.hbm %s3436_s8, 1024 }
  0xc8   : > { %p2708_p0 = scmp.ne.s32.totalorder %s3436_s8, %s2707_s3  ;;  %p2714_p3 = scmp.lt.u32.totalorder %s2707_s3, %s3436_s8 }
  0xca   : > { %p2710_p4 = pnand %p2708_p0, %p3010_p7 }
  0xcc   : > { %p2711_p13 = pneg %p2710_p4 }
  0xce   : > { %p2716_p10 = pnand %p2714_p3, %p2711_p13 }
  0xd0   : > { %2719 = shalt.err (!%p2716_p10)
}
  0xd1   : > { %s2720_s5 = scalar_lea.vmem %s435_s20, 1024  ;;  %p2728_p1 = scmp.lt.s32.totalorder %s435_s20, %s435_s20 }
  0xd2   : > { %p2721_p11 = scmp.ne.s32.totalorder %s435_s20, %s2720_s5  ;;  %p2729_p6 = scmp.lt.s32.totalorder %s2720_s5, %s2720_s5 }
  0xd4   : > { %p2723_p12 = pnand %p2721_p11, %p3010_p7  ;;  %p2730_p8 = por %p2729_p6, %p2728_p1 }
  0xd6   : > { %p2724_p2 = pneg %p2723_p12 }
  0xd8   : > { %p2731_p9 = pnand %p2730_p8, %p2724_p2 }
  0xda   : > { %2734 = shalt.err (!%p2731_p9)
}
  0xdb   : > { %2328 = dma.hbm_to_vmem [thread:$0]  (!%p3487_p5), %s3436_s8, 1024, %s435_s20, [#allocation15], %s3489_s14, %s3489_s14, %s3488_s17  }
  0xdc   : > { %s3218_s29 = scalar_lea.hbm %s3439_s11, %s2104_s16  ;;  %s476_s4 = scalar_lea.vmem [#allocation17], %s2005_s12 }
  0xdd   : > { %s483_s10 = sshll.u32 %s476_s4, 4  ;;  %s2735_s13 = scalar_lea.hbm %s3218_s29, 1024  ;;  %s3220_s10 = int_to_ptr.vmem [resolvable:$true] %s483_s10 }
  0xde   : > { %p2736_p7 = scmp.ne.s32.totalorder %s3218_s29, %s2735_s13  ;;  %p3491_p0 = scmp.ne.s32.totalorder %s3483_s18, 0 }
  0xdf   : > { %s2740_s30 = scalar_lea.hbm %s3439_s11, 2048  ;;  %p2741_p5 = scmp.lt.u32.totalorder %s3218_s29, %s3439_s11 }
  0xe0   : > { %p3492_p4 = pneg %p3491_p0  ;;  %p2742_p10 = scmp.lt.u32.totalorder %s2740_s30, %s2735_s13 }
  0xe1   : > { %p2744_p12 = scmp.lt.u32.totalorder %s2735_s13, %s3218_s29 }
  0xe2   : > { %p2738_p13 = pnand %p2736_p7, %p3492_p4  ;;  %p2743_p11 = por %p2742_p10, %p2741_p5 }
  0xe4   : > { %p2739_p3 = pneg %p2738_p13  ;;  %p2745_p2 = por %p2744_p12, %p2743_p11 }
  0xe6   : > { %p2746_p1 = pnand %p2745_p2, %p2739_p3 }
  0xe8   : > { %2749 = shalt.err (!%p2746_p1)
}
  0xe9   : > { %s2750_s12 = scalar_lea.vmem %s3220_s10, 1024  ;;  %p3493_p8 = pmov %p3492_p4 }
  0xea   : > { %p2751_p6 = scmp.ne.s32.totalorder %s3220_s10, %s2750_s12  ;;  %s2877_s1 = smov [#allocation17]  }
  0xeb   : > { %s2755_s19 = sshll.u32 %s2877_s1, 4  ;;  %s2756_s19 = int_to_ptr.vmem [resolvable:$false] %s2755_s19 }
  0xec   : > { %p2753_p9 = pnand %p2751_p6, %p3493_p8  ;;  %s2757_s0 = scalar_lea.vmem %s2756_s19, 2048 }
  0xed   : > { %p2758_p4 = scmp.lt.s32.totalorder %s3220_s10, %s2756_s19  ;;  %p2759_p13 = scmp.lt.s32.totalorder %s2757_s0, %s2750_s12 }
  0xee   : > { %p2754_p7 = pneg %p2753_p9 }
  0xef   : > { %p2760_p5 = por %p2759_p13, %p2758_p4 }
  0xf1   : > { %p2761_p10 = pnand %p2760_p5, %p2754_p7 }
  0xf3   : > { %2764 = shalt.err (!%p2761_p10)
}
  0xf4   : > { %2335 = dma.hbm_to_vmem [thread:$0]  (!%p3491_p0), %s3218_s29, 1024, %s3220_s10, %s3121_s2, %s3489_s14, %s3489_s14, %s3488_s17  }
  0xf5   : > { %p3494_p3 = scmp.ne.s32.totalorder %s3471_s28, 0 }
  0xf6   : > { %p3495_p11 = scmp.eq.s32.totalorder (!%p3494_p3), %s2983_s27, 0 }
  0xf7   : > { %495 = sbr.rel (%p3494_p3) target bundleno = 2743 (0xab7), region = 68 }
  0xfe   : > { %2816 = dma.done.wait (%p3495_p11), [#allocation6], 256   ;;  %p3496_p12 = pmov %p3495_p11 }
  0xff   : > { %p3497_p2 = pmov %p3495_p11 }
 0x100   : > { %2818 = vsyncadd (%p3496_p12), [#allocation6], 4294967040 }
 0x101   : > { %2820 = dma.done.wait (%p3497_p2), [#allocation9], 1280   ;;  %p3498_p1 = pmov %p3497_p2 }
 0x103   : > { %2822 = vsyncadd (%p3498_p1), [#allocation9], 4294966016  ;;  %p3499_p6 = pmov %p3498_p1 }
 0x104   : > { %p3500_p0 = pmov %p3498_p1 }
 0x105   : > { %2824 = dma.done.wait (%p3499_p6), [#allocation12], 4096  }
 0x106   : > { %2826 = vsyncadd (%p3500_p0), [#allocation12], 4294963200  ;;  %p3501_p8 = pmov %p3500_p0 }
 0x107   : > { %p3502_p9 = pmov %p3500_p0 }
 0x108   : > { %2828 = dma.done.wait (%p3501_p8), [#allocation15], 1024  }
 0x109   : > { %2830 = vsyncadd (%p3502_p9), [#allocation15], 4294966272  ;;  %s521_s28 = sand.u32 1, %s2983_s27   ;;  %s523_s18 = sand.u32 1, %s2845_s22  }
 0x10a   : > { %s2015_s2 = sshll.u32 %s523_s18, 7  ;;  %s522_s17 = scalar_lea.sflag [#allocation6], %s521_s28 }
 0x10b   : > { %s3269_s14 = scalar_lea.vmem [#allocation16], %s2015_s2  ;;  %p3503_p7 = scmp.ne.s32.totalorder %s3480_s9, 0 }
 0x10d   : > { %2832 = dma.done.wait (%p3503_p7), %s522_s17, 3072  }
 0x10e   : > { %2834 = vsyncadd (%p3503_p7), %s522_s17, 4294964224  ;;  %s2016_s5 = sshll.u32 %s523_s18, 6  ;;  %s3504_s3 = sld [smem:[#allocation25_spill]] }
 0x10f   : > { %s3275_s24 = scalar_lea.vmem [#allocation17], %s2016_s5 }
 0x114   : > { %p2017_p4 = scmp.ne.s32.totalorder %s3504_s3, 0 }
 0x115   : > { %v587_v0 = vld [vmem:[#allocation8] sm:$0xff] (!%p2017_p4)  ;;  %v588_v1 = vld [vmem:[#allocation8 + $0x8] sm:$0xff] (!%p2017_p4)  ;;  %v2878_v3 = vmov (!%p2017_p4), 0.0   ;;  %v2421_v4 = vld [vmem:[#allocation11] sm:$0xff] (!%p2017_p4)   ;;  %vm2879_vm0 = vmmov (!%p2017_p4), 0   ;;  %s3505_s15 = sld [smem:[#allocation31_spill]] (!%p2017_p4) }
 0x116   : > { %584 = sbr.rel (%p2017_p4) target bundleno = 2205 (0x89d), region = 104  ;;  %v590_v2 = vmul.f32 (!%p2017_p4), %v587_v0, %v587_v0  ;;  %2158 = vmatprep.subr.bf16.mxu1 (!%p2017_p4), %v2878_v3  ;;  %1555 = vst [vmem:[#allocation4] sm:$0xff] (!%p2017_p4), %v2878_v3  ;;  %1556 = vst [vmem:[#allocation4 + $0x8] sm:$0xff] (!%p2017_p4), %v2878_v3  ;;  %v2422_v5 = vld [vmem:[#allocation11 + $0x8] sm:$0xff] (!%p2017_p4)   ;;  %v591_v6 = vmul.f32 (!%p2017_p4), %v588_v1, %v588_v1  ;;  %v2423_v7 = vld [vmem:[#allocation11 + $0x10] sm:$0xff] (!%p2017_p4)   ;;  %2174 = vmatprep.mubr.msk.bf16.mxu1 (!%p2017_p4), %vm2879_vm0, %v2878_v3  ;;  %s3506_s10 = sld [smem:[#allocation34_spill]] (!%p2017_p4) }
 0x117   : > { %2159 = vmatpush3.bf16.msra.mxu1 (!%p2017_p4), %v2421_v4  ;;  %v2424_v8 = vld [vmem:[#allocation11 + $0x18] sm:$0xff] (!%p2017_p4)   ;;  %v2425_v9 = vld [vmem:[#allocation11 + $0x20] sm:$0xff] (!%p2017_p4)   ;;  %v2426_v10 = vld [vmem:[#allocation11 + $0x28] sm:$0xff] (!%p2017_p4)   ;;  %s3507_s21 = sld [smem:[#allocation35_spill]] (!%p2017_p4)  ;;  %vm1251_vm2 = vcmask (!%p2017_p4), 64512   ;;  %s3508_s16 = sld [smem:[#allocation36_spill]] (!%p2017_p4) }
 0x118   : > { %592 = vadd.xlane.f32.xlu0 (!%p2017_p4), %v590_v2  ;;  %2160 = vmatprep.subr.bf16.mxu1 (!%p2017_p4), %v2878_v3  ;;  %v2427_v11 = vld [vmem:[#allocation11 + $0x30] sm:$0xff] (!%p2017_p4)   ;;  %v2428_v12 = vld [vmem:[#allocation11 + $0x38] sm:$0xff] (!%p2017_p4)   ;;  %v2429_v26 = vld [vmem:[#allocation10] sm:$0xff] (!%p2017_p4)  }
 0x119   : > { %v2430_v28 = vld [vmem:[#allocation10 + $0x8] sm:$0xff] (!%p2017_p4)   ;;  %v2431_v29 = vld [vmem:[#allocation10 + $0x10] sm:$0xff] (!%p2017_p4)   ;;  %v2432_v30 = vld [vmem:[#allocation10 + $0x18] sm:$0xff] (!%p2017_p4)  }
 0x11a   : > { %v2433_v31 = vld [vmem:[#allocation10 + $0x20] sm:$0xff] (!%p2017_p4)   ;;  %v2434_v32 = vld [vmem:[#allocation10 + $0x28] sm:$0xff] (!%p2017_p4)   ;;  %v2435_v33 = vld [vmem:[#allocation10 + $0x30] sm:$0xff] (!%p2017_p4)  }
 0x11b   : > { %2161 = vmatpush3.bf16.msra.mxu1 (!%p2017_p4), %v2422_v5  ;;  %v2018_v20 = vld [vmem:[%s3505_s15] ss:$0 sm:$0xff] (!%p2017_p4)  ;;  %v2436_v34 = vld [vmem:[#allocation10 + $0x38] sm:$0xff] (!%p2017_p4)   ;;  %v585_v35 = vld [vmem:[#allocation5] sm:$0xff] (!%p2017_p4) }
 0x11c   : > { %594 = vadd.xlane.f32.xlu0 (!%p2017_p4), %v591_v6  ;;  %2162 = vmatprep.subr.bf16.mxu1 (!%p2017_p4), %v2878_v3  ;;  %v586_v36 = vld [vmem:[#allocation5 + $0x8] sm:$0xff] (!%p2017_p4)  ;;  %v2437_v38 = vld [vmem:[#allocation13 + $0x4] ss:$12 sps:$4 sm:$0xff] (!%p2017_p4)   ;;  %v2445_v59 = vld [vmem:[#allocation13 + $0x34] ss:$12 sps:$4 sm:$0xff] (!%p2017_p4)  }
 0x11d   : > { %v613_v37 = vpack.c.bf16 %v586_v36, %v585_v35  ;;  %v2439_v39 = vld [vmem:[#allocation13] ss:$12 sps:$4 sm:$0xff]   ;;  %v2440_v40 = vld [vmem:[#allocation13 + $0x8] ss:$12 sps:$4 sm:$0xff]   ;;  %1018 = vmatprep.subr.bf16.mxu0 %v2437_v38  ;;  %v2443_v43 = vld [vmem:[#allocation13 + $0x18] ss:$12 sps:$4 sm:$0xff]  }
 0x11e   : > { %v2441_v41 = vld [vmem:[#allocation13 + $0x1c] ss:$12 sps:$4 sm:$0xff]   ;;  %v2444_v42 = vld [vmem:[#allocation13 + $0x20] ss:$12 sps:$4 sm:$0xff]   ;;  %1019 = vmatpush1.bf16.msra.mxu0 %v2439_v39  ;;  %v2035_v49 = vld [vmem:[%s3506_s10] ss:$0 sm:$0xff] }
 0x11f   : > { %2163 = vmatpush3.bf16.msra.mxu1 %v2423_v7  ;;  %1020 = vmatprep.subr.bf16.mxu0 %v2441_v41  ;;  %v2447_v60 = vld [vmem:[#allocation13 + $0x30] ss:$12 sps:$4 sm:$0xff]   ;;  %v2448_v61 = vld [vmem:[#allocation13 + $0x38] ss:$12 sps:$4 sm:$0xff]   ;;  %v2451_v63 = vld [vmem:[#allocation13 + $0x48] ss:$12 sps:$4 sm:$0xff]  }
 0x120   : > { %2164 = vmatprep.subr.bf16.mxu1 %v2878_v3  ;;  %v2449_v62 = vld [vmem:[#allocation13 + $0x4c] ss:$12 sps:$4 sm:$0xff]   ;;  %v2456_v4 = vld [vmem:[#allocation13 + $0x68] ss:$12 sps:$4 sm:$0xff]  }
 0x121   : > { %v2455_v2 = vld [vmem:[#allocation13 + $0x60] ss:$12 sps:$4 sm:$0xff]   ;;  %v2457_v5 = vld [vmem:[#allocation13 + $0x7c] ss:$12 sps:$4 sm:$0xff]   ;;  %v2459_v6 = vld [vmem:[#allocation13 + $0x78] ss:$12 sps:$4 sm:$0xff]  }
 0x122   : > { %1021 = vmatpush1.bf16.msra.mxu0 %v2443_v43  ;;  %v2460_v7 = vld [vmem:[#allocation13 + $0x80] ss:$12 sps:$4 sm:$0xff]  }
 0x123   : > { %2165 = vmatpush3.bf16.msra.mxu1 %v2424_v8  ;;  %1022 = vmatprep.subr.bf16.mxu0 %v2445_v59  ;;  %v2461_v8 = vld [vmem:[#allocation13 + $0x94] ss:$12 sps:$4 sm:$0xff]  }
 0x124   : > { %2166 = vmatprep.subr.bf16.mxu1 %v2878_v3 }
 0x126   : > { %1023 = vmatpush1.bf16.msra.mxu0 %v2447_v60 }
 0x127   : > { %2167 = vmatpush3.bf16.msra.mxu1 %v2425_v9  ;;  %1024 = vmatprep.subr.bf16.mxu0 %v2449_v62  ;;  %v2880_v9 = vmov 0  }
 0x128   : > { %2168 = vmatprep.subr.bf16.mxu1 %v2878_v3  ;;  %1050 = vmatprep.mubr.bf16.mxu0 %v2880_v9  ;;  %v2475_v9 = vld [vmem:[#allocation14 + $0x30] sm:$0xff]  }
 0x12a   : > { %1025 = vmatpush1.bf16.msra.mxu0 %v2451_v63 }
 0x12b   : > { %2169 = vmatpush3.bf16.msra.mxu1 %v2426_v10  ;;  %v2463_v10 = vld [vmem:[#allocation13 + $0x90] ss:$12 sps:$4 sm:$0xff]  }
 0x12c   : > { %2170 = vmatprep.subr.bf16.mxu1 %v2878_v3 }
 0x12f   : > { %2171 = vmatpush3.bf16.msra.mxu1 %v2427_v11  ;;  %v2464_v11 = vld [vmem:[#allocation13 + $0x98] ss:$12 sps:$4 sm:$0xff]  }
 0x130   : > { %2172 = vmatprep.subr.bf16.mxu1 %v2878_v3 }
 0x133   : > { %2173 = vmatpush3.bf16.msra.mxu1 %v2428_v12  ;;  %v2465_v12 = vld [vmem:[#allocation13 + $0xac] ss:$12 sps:$4 sm:$0xff]  }
 0x134   : > { %2178 = vmatprep.subr.bf16.mxu1 %v2878_v3 }
 0x1a5   : > { %v593_v13 = vpop.xlane.xlu0 %592 }
 0x1a6   : > { %v597_v14 = vmul.f32 0.0078125, %v593_v13  ;;  %v2467_v13 = vld [vmem:[#allocation13 + $0xa8] ss:$12 sps:$4 sm:$0xff]  }
 0x1a8   : > { %v599_v15 = vadd.f32 1e-06, %v597_v14  ;;  %v2468_v14 = vld [vmem:[#allocation13 + $0xb0] ss:$12 sps:$4 sm:$0xff]  }
 0x1a9   : > { %v595_v16 = vpop.xlane.xlu0 %594 }
 0x1aa   : > { %2477 = vrsqrt.f32 %v599_v15  ;;  %v598_v17 = vmul.f32 0.0078125, %v595_v16 }
 0x1ac   : > { %v600_v18 = vadd.f32 1e-06, %v598_v17 }
 0x1ae   : > { %2479 = vrsqrt.f32 %v600_v18 }
 0x1b4   : > { %v2478_v19 = vpop.eup %2477 }
 0x1b5   : > { %v609_v21 = vmul.f32 %v2478_v19, %v2018_v20 }
 0x1b7   : > { %v611_v24 = vmul.f32 %v609_v21, %v587_v0  ;;  %v2452_v0 = vld [vmem:[#allocation13 + $0x50] ss:$12 sps:$4 sm:$0xff]  }
 0x1b8   : > { %v2480_v22 = vpop.eup %2479 }
 0x1b9   : > { %v610_v23 = vmul.f32 %v2480_v22, %v2018_v20  ;;  %v2036_v22 = vld [vmem:[%s3507_s21] ss:$0 sm:$0xff] }
 0x1bb   : > { %v612_v25 = vmul.f32 %v610_v23, %v588_v1  ;;  %v2453_v1 = vld [vmem:[#allocation13 + $0x64] ss:$12 sps:$4 sm:$0xff]  }
 0x1bc   : > { %1026 = vmatprep.subr.bf16.mxu0 %v2453_v1  ;;  %v2469_v1 = vld [vmem:[#allocation14] sm:$0xff]  }
 0x1bd   : > { %v630_v27 = vpack.c.bf16 %v612_v25, %v611_v24  ;;  %1027 = vmatpush1.bf16.msra.mxu0 %v2455_v2 }
 0x1be   : > { %1028 = vmatprep.subr.bf16.mxu0 %v2457_v5  ;;  %v2471_v5 = vld [vmem:[#allocation14 + $0x10] sm:$0xff]  }
 0x1bf   : > { %2175 = vmatmul.mubr.bf16.vlgmr.msra.gmra.mrb[0].mxu1 %v630_v27 }
 0x1c0   : > { %2179 = vmatpush3.bf16.msra.mxu1 %v2429_v26  ;;  %2194 = vmatprep.mubr.msk.bf16.mxu1 %vm2879_vm0, %v2878_v3 }
 0x1c1   : > { %2180 = vmatprep.subr.bf16.mxu1 %v2878_v3  ;;  %1029 = vmatpush1.bf16.msra.mxu0 %v2459_v6  ;;  %v2472_v6 = vld [vmem:[#allocation14 + $0x18] sm:$0xff]  }
 0x1c2   : > { %1030 = vmatprep.subr.bf16.mxu0 %v2461_v8  ;;  %v2474_v8 = vld [vmem:[#allocation14 + $0x28] sm:$0xff]  }
 0x1c4   : > { %2181 = vmatpush3.bf16.msra.mxu1 %v2430_v28 }
 0x1c5   : > { %2182 = vmatprep.subr.bf16.mxu1 %v2878_v3  ;;  %1031 = vmatpush1.bf16.msra.mxu0 %v2463_v10  ;;  %v2476_v10 = vld [vmem:[#allocation14 + $0x38] sm:$0xff]  }
 0x1c6   : > { %1032 = vmatprep.subr.bf16.mxu0 %v2465_v12 }
 0x1c8   : > { %2183 = vmatpush3.bf16.msra.mxu1 %v2431_v29 }
 0x1c9   : > { %2184 = vmatprep.subr.bf16.mxu1 %v2878_v3  ;;  %1033 = vmatpush1.bf16.msra.mxu0 %v2467_v13 }
 0x1ca   : > { %2218 = vmatprep.subr.mxu0 %v2878_v3 }
 0x1cc   : > { %2185 = vmatpush3.bf16.msra.mxu1 %v2432_v30 }
 0x1cd   : > { %2186 = vmatprep.subr.bf16.mxu1 %v2878_v3 }
 0x1d0   : > { %2187 = vmatpush3.bf16.msra.mxu1 %v2433_v31 }
 0x1d1   : > { %2188 = vmatprep.subr.bf16.mxu1 %v2878_v3 }
 0x1d4   : > { %2189 = vmatpush3.bf16.msra.mxu1 %v2434_v32 }
 0x1d5   : > { %2190 = vmatprep.subr.bf16.mxu1 %v2878_v3 }
 0x1d8   : > { %2191 = vmatpush3.bf16.msra.mxu1 %v2435_v33 }
 0x1d9   : > { %2192 = vmatprep.subr.bf16.mxu1 %v2878_v3 }
 0x1dc   : > { %2193 = vmatpush3.bf16.msra.mxu1 %v2436_v34 }
 0x1dd   : > { %2198 = vmatprep.subr.bf16.mxu1 %v2878_v3 }
 0x1df   : > { %2195 = vmatmul.mubr.bf16.vlgmr.msra.gmra.mrb[4].mxu1 %v613_v37  ;;  %v1242_v37 = vlaneseq }
 0x1e0   : > { %2214 = vmatprep.mubr.msk.bf16.mxu1 %vm2879_vm0, %v2878_v3  ;;  %2199 = vmatpush3.bf16.msra.mxu1 %v2440_v40 }
 0x1e1   : > { %2200 = vmatprep.subr.bf16.mxu1 %v2878_v3  ;;  %v1243_v38 = vshrl.u32 %v1242_v37, 7  ;;  %v1245_v39 = vand.u32 127, %v1242_v37 }
 0x1e3   : > { %vm1246_vm1 = vcmp.le.s32.totalorder %v1245_v39, %v1243_v38 }
 0x1e4   : > { %2201 = vmatpush3.bf16.msra.mxu1 %v2444_v42 }
 0x1e5   : > { %2202 = vmatprep.subr.bf16.mxu1 %v2878_v3 }
 0x1e8   : > { %2203 = vmatpush3.bf16.msra.mxu1 %v2448_v61 }
 0x1e9   : > { %2204 = vmatprep.subr.bf16.mxu1 %v2878_v3 }
 0x1ec   : > { %2205 = vmatpush3.bf16.msra.mxu1 %v2452_v0 }
 0x1ed   : > { %2206 = vmatprep.subr.bf16.mxu1 %v2878_v3 }
 0x1f0   : > { %2207 = vmatpush3.bf16.msra.mxu1 %v2456_v4  ;;  %v2470_v4 = vld [vmem:[#allocation14 + $0x8] sm:$0xff]  }
 0x1f1   : > { %2208 = vmatprep.subr.bf16.mxu1 %v2878_v3 }
 0x1f4   : > { %2209 = vmatpush3.bf16.msra.mxu1 %v2460_v7  ;;  %v2473_v7 = vld [vmem:[#allocation14 + $0x20] sm:$0xff]  }
 0x1f5   : > { %2210 = vmatprep.subr.bf16.mxu1 %v2878_v3 }
 0x1f8   : > { %2211 = vmatpush3.bf16.msra.mxu1 %v2464_v11 }
 0x1f9   : > { %2212 = vmatprep.subr.bf16.mxu1 %v2878_v3 }
 0x1fc   : > { %2213 = vmatpush3.bf16.msra.mxu1 %v2468_v14 }
 0x292   : > { %v729_v44 = vpop.f32.mrb[0].mxu1 }
 0x293   : > { %v2176_v45 = vpop.f32.mrb[1].mxu1 }
 0x294   : > { %v732_v46 = vpop.f32.mrb[2].mxu1 }
 0x295   : > { %v2177_v47 = vpop.f32.mrb[3].mxu1 }
 0x2b2   : > { %v818_v48 = vpop.f32.mrb[4].mxu1 }
 0x2b3   : > { %v819_v50 = vadd.f32 %v818_v48, %v729_v44  ;;  %v2196_v51 = vpop.f32.mrb[5].mxu1 }
 0x2b4   : > { %v821_v52 = vpop.f32.mrb[6].mxu1 }
 0x2b5   : > { %v3311_v53 = vadd.f32 %v2035_v49, %v819_v50  ;;  %v822_v54 = vadd.f32 %v821_v52, %v732_v46  ;;  %v2197_v55 = vpop.f32.mrb[7].mxu1 }
 0x2b7   : > { %v3313_v56 = vadd.f32 %v2035_v49, %v822_v54  ;;  %v835_v57 = vmul.f32 %v3311_v53, %v3311_v53 }
 0x2b9   : > { %837 = vadd.xlane.f32.xlu1 %v835_v57  ;;  %v836_v58 = vmul.f32 %v3313_v56, %v3313_v56 }
 0x2bd   : > { %839 = vadd.xlane.f32.xlu1 %v836_v58 }
 0x346   : > { %v838_v15 = vpop.xlane.xlu1 %837 }
 0x347   : > { %v841_v16 = vmul.f32 0.0078125, %v838_v15 }
 0x349   : > { %v843_v17 = vadd.f32 1e-06, %v841_v16 }
 0x34a   : > { %v840_v18 = vpop.xlane.xlu1 %839 }
 0x34b   : > { %2481 = vrsqrt.f32 %v843_v17  ;;  %v842_v19 = vmul.f32 0.0078125, %v840_v18 }
 0x34d   : > { %v844_v20 = vadd.f32 1e-06, %v842_v19 }
 0x34f   : > { %2483 = vrsqrt.f32 %v844_v20 }
 0x355   : > { %v2482_v21 = vpop.eup %2481 }
 0x356   : > { %v853_v23 = vmul.f32 %v2482_v21, %v2036_v22 }
 0x358   : > { %v855_v26 = vmul.f32 %v853_v23, %v3311_v53 }
 0x359   : > { %v2484_v24 = vpop.eup %2483 }
 0x35a   : > { %v854_v25 = vmul.f32 %v2484_v24, %v2036_v22 }
 0x35c   : > { %v856_v27 = vmul.f32 %v854_v25, %v3313_v56 }
 0x35e   : > { %v857_v28 = vpack.c.bf16 %v856_v27, %v855_v26 }
 0x360   : > { %1051 = vmatmul.mubr.bf16.vlgmr.msra.gmra.mrb[0].mxu0 %v857_v28  ;;  %2215 = vmatmul.mubr.bf16.vlgmr.msra.gmra.mrb[8].mxu1 %v857_v28 }
 0x361   : > { %2220 = vmatprep.mubr.msk.f32.mxu0 %vm2879_vm0, %v2878_v3 }
 0x433   : > { %v1052_v29 = vpop.f32.mrb[0].mxu0  ;;  %v1095_v30 = vpop.f32.mrb[8].mxu1 }
 0x434   : > { %v1054_v31 = vpop.f32.mrb[1].mxu0  ;;  %v2216_v32 = vpop.f32.mrb[9].mxu1 }
 0x435   : > { %v1056_v33 = vpop.f32.mrb[2].mxu0  ;;  %v1098_v34 = vpop.f32.mrb[10].mxu1  ;;  %2219 = vmatpush3.xpose.msra.mxu0 %v1054_v31 }
 0x436   : > { %v1058_v35 = vpop.f32.mrb[3].mxu0  ;;  %v2217_v36 = vpop.f32.mrb[11].mxu1  ;;  %2223 = vmatprep.subr.mxu0 %v2878_v3 }
 0x438   : > { %2221 = vmatmul.mubr.f32.vlgmr.msra.gmra.mrb[4].mxu0 %v1052_v29 }
 0x439   : > { %2224 = vmatpush3.xpose.msra.mxu0 %v1058_v35  ;;  %2225 = vmatprep.mubr.msk.f32.mxu0 %vm2879_vm0, %v2878_v3 }
 0x43a   : > { %2228 = vmatprep.subr.mxu0 %v2878_v3 }
 0x43c   : > { %2226 = vmatmul.mubr.f32.vlgmr.msra.gmra.mrb[6].mxu0 %v1056_v33 }
 0x43d   : > { %2229 = vmatpush3.msra.mxu0 %v1095_v30  ;;  %2230 = vmatprep.mubr.msk.f32.mxu0 %vm2879_vm0, %v2878_v3 }
 0x43e   : > { %2233 = vmatprep.subr.mxu0 %v2878_v3 }
 0x50b   : > { %v1168_v40 = vpop.f32.mrb[4].mxu0 }
 0x50c   : > { %v1249_v41 = vsel %vm1246_vm1, %v1168_v40, -inf  ;;  %v2222_v42 = vpop.f32.mrb[5].mxu0 }
 0x50d   : > { %v1252_v43 = vsel %vm1251_vm2, %v1249_v41, -inf }
 0x50e   : > { %1253 = vmax.xlane.f32.xlu0 %v1252_v43 }
 0x50f   : > { %v1238_v44 = vpop.f32.mrb[6].mxu0 }
 0x510   : > { %v1250_v45 = vsel %vm1246_vm1, %v1238_v44, -inf  ;;  %v2227_v46 = vpop.f32.mrb[7].mxu0 }
 0x511   : > { %v1255_v47 = vsel %vm1251_vm2, %v1250_v45, -inf }
 0x512   : > { %1256 = vmax.xlane.f32.xlu1 %v1255_v47 }
 0x59b   : > { %v1254_v48 = vpop.xlane.xlu0 %1253 }
 0x59c   : > { %v1258_v49 = vsub.f32 %v1249_v41, %v1254_v48 }
 0x59e   : > { %v1260_v50 = vmul.f32 1.442695, %v1258_v49 }
 0x59f   : > { %v1257_v51 = vpop.xlane.xlu1 %1256 }
 0x5a0   : > { %2485 = vpow2.f32 %v1260_v50  ;;  %v1259_v52 = vsub.f32 %v1250_v45, %v1257_v51 }
 0x5a2   : > { %v1262_v54 = vmul.f32 1.442695, %v1259_v52 }
 0x5a4   : > { %2487 = vpow2.f32 %v1262_v54 }
 0x5aa   : > { %v2486_v55 = vpop.eup %2485 }
 0x5ab   : > { %v1264_v57 = vsel %vm1251_vm2, %v2486_v55, 0.0 }
 0x5ac   : > { %1265 = vadd.xlane.f32.xlu0 %v1264_v57 }
 0x5ae   : > { %v2488_v58 = vpop.eup %2487 }
 0x5af   : > { %v1267_v59 = vsel %vm1251_vm2, %v2488_v58, 0.0 }
 0x5b0   : > { %1268 = vadd.xlane.f32.xlu1 %v1267_v59 }
 0x639   : > { %v1266_v60 = vpop.xlane.xlu0 %1265 }
 0x63a   : > { %2489 = vrcp.f32 %v1266_v60 }
 0x63d   : > { %v1269_v61 = vpop.xlane.xlu1 %1268 }
 0x63e   : > { %2491 = vrcp.f32 %v1269_v61 }
 0x644   : > { %v2490_v62 = vpop.eup %2489 }
 0x645   : > { %v1272_v63 = vmul.f32 %v2490_v62, %v2486_v55 }
 0x647   : > { %2231 = vmatmul.mubr.msk.f32.vlgmr.msra.gmra.mrb[8].mxu0 %vm1251_vm2, %v1272_v63 }
 0x648   : > { %v2492_v0 = vpop.eup %2491  ;;  %2234 = vmatpush3.msra.mxu0 %v1098_v34  ;;  %2235 = vmatprep.mubr.msk.f32.mxu0 %vm2879_vm0, %v2878_v3 }
 0x649   : > { %v1273_v2 = vmul.f32 %v2492_v0, %v2488_v58  ;;  %2238 = vmatprep.subr.bf16.mxu0 %v2878_v3 }
 0x64b   : > { %2236 = vmatmul.mubr.msk.f32.vlgmr.msra.gmra.mrb[10].mxu0 %vm1251_vm2, %v1273_v2 }
 0x64c   : > { %2239 = vmatpush3.bf16.msra.mxu0 %v2469_v1  ;;  %2254 = vmatprep.mubr.msk.bf16.mxu0 %vm2879_vm0, %v2878_v3 }
 0x64d   : > { %2240 = vmatprep.subr.bf16.mxu0 %v2878_v3 }
 0x650   : > { %2241 = vmatpush3.bf16.msra.mxu0 %v2470_v4 }
 0x651   : > { %2242 = vmatprep.subr.bf16.mxu0 %v2878_v3 }
 0x654   : > { %2243 = vmatpush3.bf16.msra.mxu0 %v2471_v5 }
 0x655   : > { %2244 = vmatprep.subr.bf16.mxu0 %v2878_v3 }
 0x658   : > { %2245 = vmatpush3.bf16.msra.mxu0 %v2472_v6 }
 0x659   : > { %2246 = vmatprep.subr.bf16.mxu0 %v2878_v3 }
 0x65c   : > { %2247 = vmatpush3.bf16.msra.mxu0 %v2473_v7 }
 0x65d   : > { %2248 = vmatprep.subr.bf16.mxu0 %v2878_v3 }
 0x660   : > { %2249 = vmatpush3.bf16.msra.mxu0 %v2474_v8 }
 0x661   : > { %2250 = vmatprep.subr.bf16.mxu0 %v2878_v3 }
 0x664   : > { %2251 = vmatpush3.bf16.msra.mxu0 %v2475_v9 }
 0x665   : > { %2252 = vmatprep.subr.bf16.mxu0 %v2878_v3 }
 0x668   : > { %2253 = vmatpush3.bf16.msra.mxu0 %v2476_v10 }
 0x71a   : > { %v1343_v11 = vpop.f32.mrb[8].mxu0 }
 0x71b   : > { %v2232_v12 = vpop.f32.mrb[9].mxu0 }
 0x71e   : > { %v1416_v13 = vpop.f32.mrb[10].mxu0 }
 0x71f   : > { %v1420_v14 = vpack.c.bf16 %v1416_v13, %v1343_v11  ;;  %v2237_v15 = vpop.f32.mrb[11].mxu0 }
 0x721   : > { %2255 = vmatmul.mubr.bf16.vlgmr.msra.gmra.mrb[12].mxu0 %v1420_v14 }
 0x7f4   : > { %v1519_v16 = vpop.f32.mrb[12].mxu0 }
 0x7f5   : > { %v1526_v17 = vadd.f32 %v1519_v16, %v3311_v53  ;;  %v2256_v18 = vpop.f32.mrb[13].mxu0  ;;  %v2071_v53 = vld [vmem:[%s3508_s16] ss:$0 sm:$0xff] }
 0x7f6   : > { %v1522_v19 = vpop.f32.mrb[14].mxu0 }
 0x7f7   : > { %1528 = vst [vmem:[#allocation2] sm:$0xff] %v1526_v17  ;;  %v1527_v20 = vadd.f32 %v1522_v19, %v3313_v56  ;;  %v2257_v21 = vpop.f32.mrb[15].mxu0  ;;  %v1531_v22 = vmul.f32 %v1526_v17, %v1526_v17 }
 0x7f9   : > { %1529 = vst [vmem:[#allocation2 + $0x8] sm:$0xff] %v1527_v20  ;;  %1533 = vadd.xlane.f32.xlu0 %v1531_v22  ;;  %v1532_v3 = vmul.f32 %v1527_v20, %v1527_v20 }
 0x7fb   : > { %1535 = vadd.xlane.f32.xlu1 %v1532_v3 }
 0x886   : > { %v1534_v23 = vpop.xlane.xlu0 %1533 }
 0x887   : > { %v1537_v24 = vmul.f32 0.0078125, %v1534_v23 }
 0x888   : > { %v1536_v25 = vpop.xlane.xlu1 %1535 }
 0x889   : > { %v1539_v26 = vadd.f32 1e-06, %v1537_v24  ;;  %v1538_v27 = vmul.f32 0.0078125, %v1536_v25 }
 0x88b   : > { %2493 = vrsqrt.f32 %v1539_v26  ;;  %v1540_v28 = vadd.f32 1e-06, %v1538_v27 }
 0x88d   : > { %2495 = vrsqrt.f32 %v1540_v28 }
 0x895   : > { %v2494_v29 = vpop.eup %2493 }
 0x896   : > { %v1549_v56 = vmul.f32 %v2494_v29, %v2071_v53 }
 0x897   : > { %v2496_v30 = vpop.eup %2495 }
 0x898   : > { %v1551_v31 = vmul.f32 %v1549_v56, %v1526_v17  ;;  %v1550_v32 = vmul.f32 %v2496_v30, %v2071_v53 }
 0x89a   : > { %1553 = vst [vmem:[#allocation3] sm:$0xff] %v1551_v31  ;;  %v1552_v33 = vmul.f32 %v1550_v32, %v1527_v20 }
 0x89c   : > { %1554 = vst [vmem:[#allocation3 + $0x8] sm:$0xff] %v1552_v33 }
 0x89d PF: > { %v2497_v34 = vld [vmem:[%s3269_s14 + $0x4] ss:$8 sps:$4 sm:$0xff]   ;;  %v2499_v35 = vld [vmem:[%s3269_s14] ss:$8 sps:$4 sm:$0xff]   ;;  %v2881_v36 = vmov 0   ;;  %v2882_v57 = vmov 0.0  }
 0x89e   : > { %1688 = vmatprep.mubr.bf16.mxu0 %v2881_v36  ;;  %1656 = vmatprep.subr.bf16.mxu0 %v2497_v34  ;;  %v2500_v37 = vld [vmem:[%s3269_s14 + $0x14] ss:$8 sps:$4 sm:$0xff]   ;;  %v2502_v38 = vld [vmem:[%s3269_s14 + $0x10] ss:$8 sps:$4 sm:$0xff]   ;;  %v2503_v39 = vld [vmem:[%s3269_s14 + $0x24] ss:$8 sps:$4 sm:$0xff]  }
 0x89f   : > { %1657 = vmatpush1.bf16.msra.mxu0 %v2499_v35  ;;  %v2505_v40 = vld [vmem:[%s3269_s14 + $0x20] ss:$8 sps:$4 sm:$0xff]   ;;  %v2506_v41 = vld [vmem:[%s3269_s14 + $0x34] ss:$8 sps:$4 sm:$0xff]   ;;  %v2508_v42 = vld [vmem:[%s3269_s14 + $0x30] ss:$8 sps:$4 sm:$0xff]   ;;  %2258 = vmatprep.subr.bf16.mxu1 %v2882_v57 }
 0x8a0   : > { %1658 = vmatprep.subr.bf16.mxu0 %v2500_v37  ;;  %v2509_v43 = vld [vmem:[%s3269_s14 + $0x44] ss:$8 sps:$4 sm:$0xff]   ;;  %v2511_v44 = vld [vmem:[%s3269_s14 + $0x40] ss:$8 sps:$4 sm:$0xff]   ;;  %v2512_v45 = vld [vmem:[%s3269_s14 + $0x54] ss:$8 sps:$4 sm:$0xff]  }
 0x8a1   : > { %v2514_v46 = vld [vmem:[%s3269_s14 + $0x50] ss:$8 sps:$4 sm:$0xff]   ;;  %v2515_v47 = vld [vmem:[%s3269_s14 + $0x64] ss:$8 sps:$4 sm:$0xff]   ;;  %v2517_v48 = vld [vmem:[%s3269_s14 + $0x60] ss:$8 sps:$4 sm:$0xff]  }
 0x8a2   : > { %v2518_v49 = vld [vmem:[%s3269_s14 + $0x74] ss:$8 sps:$4 sm:$0xff]   ;;  %v2520_v50 = vld [vmem:[%s3269_s14 + $0x70] ss:$8 sps:$4 sm:$0xff]   ;;  %v1557_v51 = vld [vmem:[#allocation3] sm:$0xff]  ;;  %vm2883_vm3 = vmmov 0  }
 0x8a3   : > { %1659 = vmatpush1.bf16.msra.mxu0 %v2502_v38  ;;  %v1558_v52 = vld [vmem:[#allocation3 + $0x8] sm:$0xff]  ;;  %v2521_v55 = vld [vmem:[%s3275_s24] sm:$0xff]   ;;  %v2523_v59 = vld [vmem:[%s3275_s24 + $0x10] sm:$0xff]   ;;  %2274 = vmatprep.mubr.msk.bf16.mxu1 %vm2883_vm3, %v2882_v57  ;;  %s3509_s12 = sld [smem:[#allocation25_spill]] }
 0x8a4   : > { %1660 = vmatprep.subr.bf16.mxu0 %v2503_v39  ;;  %v1559_v54 = vpack.c.bf16 %v1558_v52, %v1557_v51  ;;  %2259 = vmatpush3.bf16.msra.mxu1 %v2521_v55  ;;  %v2522_v58 = vld [vmem:[%s3275_s24 + $0x8] sm:$0xff]   ;;  %v2524_v60 = vld [vmem:[%s3275_s24 + $0x18] sm:$0xff]   ;;  %v2525_v61 = vld [vmem:[%s3275_s24 + $0x20] sm:$0xff]  }
 0x8a5   : > { %2260 = vmatprep.subr.bf16.mxu1 %v2882_v57  ;;  %v2526_v62 = vld [vmem:[%s3275_s24 + $0x28] sm:$0xff]   ;;  %v2527_v63 = vld [vmem:[%s3275_s24 + $0x30] sm:$0xff]   ;;  %v2528_v0 = vld [vmem:[%s3275_s24 + $0x38] sm:$0xff]  }
 0x8a6   : > { %v1716_v19 = vld [vmem:[#allocation4] sm:$0xff]  ;;  %v1717_v21 = vld [vmem:[#allocation4 + $0x8] sm:$0xff] }
 0x8a7   : > { %1661 = vmatpush1.bf16.msra.mxu0 %v2505_v40 }
 0x8a8   : > { %1662 = vmatprep.subr.bf16.mxu0 %v2506_v41  ;;  %2261 = vmatpush3.bf16.msra.mxu1 %v2522_v58 }
 0x8a9   : > { %2262 = vmatprep.subr.bf16.mxu1 %v2882_v57  ;;  %p2098_p13 = scmp.ne.s32.totalorder %s3509_s12, 1 }
 0x8aa   : > { %v1831_v26 = vld [vmem:[#allocation2] sm:$0xff] (!%p2098_p13)  ;;  %v1832_v28 = vld [vmem:[#allocation2 + $0x8] sm:$0xff] (!%p2098_p13) }
 0x8ab   : > { %1663 = vmatpush1.bf16.msra.mxu0 %v2508_v42 }
 0x8ac   : > { %1664 = vmatprep.subr.bf16.mxu0 %v2509_v43  ;;  %2263 = vmatpush3.bf16.msra.mxu1 %v2523_v59 }
 0x8ad   : > { %2264 = vmatprep.subr.bf16.mxu1 %v2882_v57 }
 0x8af   : > { %1665 = vmatpush1.bf16.msra.mxu0 %v2511_v44 }
 0x8b0   : > { %1666 = vmatprep.subr.bf16.mxu0 %v2512_v45  ;;  %2265 = vmatpush3.bf16.msra.mxu1 %v2524_v60 }
 0x8b1   : > { %2266 = vmatprep.subr.bf16.mxu1 %v2882_v57 }
 0x8b3   : > { %1667 = vmatpush1.bf16.msra.mxu0 %v2514_v46 }
 0x8b4   : > { %1668 = vmatprep.subr.bf16.mxu0 %v2515_v47  ;;  %2267 = vmatpush3.bf16.msra.mxu1 %v2525_v61 }
 0x8b5   : > { %2268 = vmatprep.subr.bf16.mxu1 %v2882_v57 }
 0x8b7   : > { %1669 = vmatpush1.bf16.msra.mxu0 %v2517_v48 }
 0x8b8   : > { %1670 = vmatprep.subr.bf16.mxu0 %v2518_v49  ;;  %2269 = vmatpush3.bf16.msra.mxu1 %v2526_v62 }
 0x8b9   : > { %2270 = vmatprep.subr.bf16.mxu1 %v2882_v57 }
 0x8bb   : > { %1671 = vmatpush1.bf16.msra.mxu0 %v2520_v50 }
 0x8bc   : > { %2271 = vmatpush3.bf16.msra.mxu1 %v2527_v63 }
 0x8bd   : > { %2272 = vmatprep.subr.bf16.mxu1 %v2882_v57 }
 0x8be   : > { %1689 = vmatmul.mubr.bf16.vlgmr.msra.gmra.mrb[0].mxu0 %v1559_v54 }
 0x8c0   : > { %2273 = vmatpush3.bf16.msra.mxu1 %v2528_v0 }
 0x991   : > { %v1690_v1 = vpop.f32.mrb[0].mxu0 }
 0x992   : > { %v2088_v2 = vmul.f32 -1.442695, %v1690_v1  ;;  %v1692_v4 = vpop.f32.mrb[1].mxu0 }
 0x993   : > { %v1694_v5 = vpop.f32.mrb[2].mxu0 }
 0x994   : > { %2529 = vpow2.f32 %v2088_v2  ;;  %v2089_v6 = vmul.f32 -1.442695, %v1694_v5  ;;  %v1696_v7 = vpop.f32.mrb[3].mxu0 }
 0x996   : > { %2531 = vpow2.f32 %v2089_v6 }
 0x99e   : > { %v2530_v8 = vpop.eup %2529 }
 0x99f   : > { %v1705_v9 = vadd.f32 1.0, %v2530_v8 }
 0x9a0   : > { %v2532_v10 = vpop.eup %2531 }
 0x9a1   : > { %2533 = vrcp.f32 %v1705_v9  ;;  %v1706_v11 = vadd.f32 1.0, %v2532_v10 }
 0x9a3   : > { %2535 = vrcp.f32 %v1706_v11 }
 0x9ab   : > { %v2534_v12 = vpop.eup %2533 }
 0x9ac   : > { %v1711_v13 = vmul.f32 %v2534_v12, %v1690_v1 }
 0x9ad   : > { %v2536_v14 = vpop.eup %2535 }
 0x9ae   : > { %v1713_v15 = vmul.f32 %v1711_v13, %v1692_v4  ;;  %v1712_v16 = vmul.f32 %v2536_v14, %v1694_v5 }
 0x9b0   : > { %v1714_v17 = vmul.f32 %v1712_v16, %v1696_v7 }
 0x9b2   : > { %v1715_v18 = vpack.c.bf16 %v1714_v17, %v1713_v15 }
 0x9b4   : > { %2275 = vmatmul.mubr.bf16.vlgmr.msra.gmra.mrb[0].mxu1 %v1715_v18 }
 0xa86   : > { %1830 = sbr.rel (%p2098_p13) target bundleno = 2711 (0xa97), region = 108 }
 0xa87   : > { %v1816_v20 = vpop.f32.mrb[0].mxu1 }
 0xa88   : > { %v1823_v22 = vadd.f32 %v1816_v20, %v1716_v19  ;;  %v2276_v3 = vpop.f32.mrb[1].mxu1 }
 0xa89   : > { %v1819_v23 = vpop.f32.mrb[2].mxu1 }
 0xa8a   : > { %1825 = vst [vmem:[#allocation4] sm:$0xff] %v1823_v22  ;;  %v1824_v24 = vadd.f32 %v1819_v23, %v1717_v21  ;;  %v2277_v25 = vpop.f32.mrb[3].mxu1 }
 0xa8c   : > { %1826 = vst [vmem:[#allocation4 + $0x8] sm:$0xff] %v1824_v24 }
 0xa91   : > { %v1833_v27 = vld [vmem:[#allocation4] sm:$0xff] }
 0xa92   : > { %v1835_v53 = vadd.f32 %v1833_v27, %v1831_v26 }
 0xa93   : > { %v1834_v29 = vld [vmem:[#allocation4 + $0x8] sm:$0xff] }
 0xa94   : > { %v1836_v56 = vadd.f32 %v1834_v29, %v1832_v28  ;;  %1837 = vst [vmem:[#allocation18] sm:$0xff] %v1835_v53 }
 0xa96   : > { %1838 = vst [vmem:[#allocation18 + $0x8] sm:$0xff] %v1836_v56 }
 0xa97 PF: > { %p2349_p5 = scmp.eq.s32.totalorder %s2983_s27, 1  ;;  %s2884_s1 = smov [#allocation18]  }
 0xa98   : > { %s1848_s19 = sshll.u32 %s2884_s1, 4  ;;  %s1849_s19 = int_to_ptr.vmem [resolvable:$true] %s1848_s19 }
 0xa99   : > { %s2765_s0 = scalar_lea.vmem %s1849_s19, 256  ;;  %p2772_p12 = scmp.lt.s32.totalorder %s1849_s19, %s1849_s19 }
 0xa9a   : > { %p2766_p10 = scmp.ne.s32.totalorder %s1849_s19, %s2765_s0  ;;  %p2773_p2 = scmp.lt.s32.totalorder %s2765_s0, %s2765_s0 }
 0xa9c   : > { %p2767_p3 = pnand %p2766_p10, %p2349_p5  ;;  %p2774_p1 = por %p2773_p2, %p2772_p12 }
 0xa9e   : > { %p2768_p11 = pneg %p2767_p3 }
 0xaa0   : > { %p2775_p6 = pnand %p2774_p1, %p2768_p11 }
 0xaa2   : > { %2778 = shalt.err (!%p2775_p6)
}
 0xaa3   : > { %s3510_s2 = sld [smem:[#allocation38_spill]] }
 0xaa9   : > { %s2779_s17 = scalar_lea.hbm %s3510_s2, 256 }
 0xaaa   : > { %p2780_p0 = scmp.ne.s32.totalorder %s3510_s2, %s2779_s17  ;;  %p2785_p7 = scmp.lt.u32.totalorder %s2779_s17, %s3510_s2 }
 0xaac   : > { %p2781_p8 = pnand %p2780_p0, %p2349_p5 }
 0xaae   : > { %p2782_p9 = pneg %p2781_p8 }
 0xab0   : > { %p2787_p4 = pnand %p2785_p7, %p2782_p9 }
 0xab2   : > { %2790 = shalt.err (!%p2787_p4)
}
 0xab3   : > { %s2885_s9 = smov 128   ;;  %s2886_s26 = smov 8  }
 0xab4   : > { %2307 = dma.vmem_to_hbm [thread:$0]  (%p2349_p5), %s1849_s19, 256, %s3510_s2, [#allocation7], %s2885_s9, %s2885_s9, %s2886_s26  }
 0xab5   : > { %2836 = dma.done.wait (%p2349_p5), [#allocation7], 256  }
 0xab6   : > { %2838 = vsyncadd (%p2349_p5), [#allocation7], 4294967040 }
 0xab7 PF: > { %s3511_s4 = sld [smem:[#allocation26_spill]]  ;;  %s3512_s10 = sld [smem:[#allocation28_spill]] }
 0xab8   : > { %s3513_s13 = sld [smem:[#allocation27_spill]]  ;;  %s3514_s21 = smov %s2845_s22 }
 0xab9   : > { %s3515_s22 = smov %s2849_s23  ;;  %s3517_s24 = smov %s2857_s25 }
 0xabd   : > { %s27_s26 = sadd.s32 1, %s3511_s4   ;;  %s3516_s23 = smov %s3512_s10 }
 0xabe   : > { %p24_p13 = scmp.ge.s32.totalorder %s27_s26, 4   ;;  %s3518_s25 = smov %s3513_s13 }
 0xac0   :  { %26 = sbr.rel (!%p24_p13) target bundleno = 18 (0x12), region = 150 }
 0xac7   :  { %1864 = vsyncpa [#allocation6], 1 }
 0xac8   :  { %1866 = vsyncpa [#allocation6 + $0x1], 1 }
 0xac9   :  { %1867 = vsyncpa [#allocation9], 1 }
 0xaca   :  { %1868 = vsyncpa [#allocation12], 1 }
 0xacb   :  { %1869 = vsyncpa [#allocation15], 1 }
 0xacc   :  { %1870 = vsyncpa [#allocation7], 1 }
 0xacd   :  { %1872 = vsyncpa [#allocation7 + $0x1], 1 }

</bundles_post_ra>
